<compile_context>
chip_gen: v6e
topology: v6e:2x2x1
jax: 0.10.0
libtpu: 0.0.40
codegen_flags: <defaults>
</compile_context>

<pallas_src>
import functools

import jax
import jax.numpy as jnp
from jax.experimental import pallas as pl
from jax.experimental.pallas import tpu as pltpu


def _round_up(x, m):
    return ((x + m - 1) // m) * m


def _lane_pad(n):
    return _round_up(n, 128)


def _convlstm_kernel(main_ref, halo_ref, w_ref, b_ref, c_ref,
                     h_out_ref, c_out_ref, *, hidden, wp, kh_sz, kw_sz, tm):
    # main_ref : (1, TM,   Cin) bf16  flat padded comb pixels [t*TM, (t+1)*TM)
    # halo_ref : (1, HALO, Cin) bf16  next HALO pixels (bottom/right halo)
    # w_ref    : (K, 4*hidden)  bf16  conv weight, (kh, kw, cin)-major rows
    # b_ref    : (1, 4*hidden)  f32
    # c_ref    : (1, TM, hidden) f32  current cell state for these pixels
    # outs     : (1, TM, hidden)      h_next (x dtype), c_next (f32)

    # Flat shift-invariant conv: with pixels indexed m = i*Wp + j on the
    # padded-width grid, tap (kh, kw) for output m reads pixel m + kh*Wp + kw.
    band = jnp.concatenate([main_ref[0], halo_ref[0]], axis=0)   # (TM+HALO, Cin)

    # In-VMEM im2col: statically shifted views, lane-concatenated into one
    # (TM, K) operand feeding a single MXU contraction (K = KH*KW*Cin).
    cols = [band[kh * wp + kw: kh * wp + kw + tm, :]
            for kh in range(kh_sz) for kw in range(kw_sz)]
    patches = jnp.concatenate(cols, axis=-1)                     # (TM, K) bf16

    gates = jnp.dot(patches, w_ref[...],
                    preferred_element_type=jnp.float32)          # (TM, 4*hidden)
    gates = gates + b_ref[...]

    # Lane-dense gate nonlinearities: one full-width tanh pass; sigmoid via
    # sigmoid(x) = 0.5 * (tanh(x/2) + 1) on the i/f/o lane groups.
    lane = jax.lax.broadcasted_iota(jnp.int32, gates.shape, dimension=1)
    is_sig = lane < 3 * hidden
    t = jnp.tanh(jnp.where(is_sig, 0.5 * gates, gates))
    acts = jnp.where(is_sig, 0.5 * t + 0.5, t)

    i = acts[:, 0 * hidden:1 * hidden]
    f = acts[:, 1 * hidden:2 * hidden]
    o = acts[:, 2 * hidden:3 * hidden]
    g = acts[:, 3 * hidden:4 * hidden]

    c_cur = c_ref[0]
    c_next = f * c_cur + i * g
    h_next = o * jnp.tanh(c_next)

    h_out_ref[0] = h_next.astype(h_out_ref.dtype)
    c_out_ref[0] = c_next.astype(c_out_ref.dtype)


def _pick_tile(m_valid, halo, cin, hidden, k, h_bytes, tile_m,
               budget=38 * 1024 * 1024):
    """Largest TM (multiple of HALO, hence of 16) whose estimated VMEM
    footprint (double-buffered pipeline blocks + in-kernel temps) fits."""
    def vmem_bytes(tm):
        lp = _lane_pad
        pipe = 2 * (2 * tm * lp(cin)              # comb main block (bf16)
                    + 2 * halo * lp(cin)          # comb halo block (bf16)
                    + 4 * tm * lp(hidden)         # c_in  (f32)
                    + h_bytes * tm * lp(hidden)   # h_out
                    + 4 * tm * lp(hidden))        # c_out (f32)
        temps = (2 * (tm + halo) * lp(cin)        # band concat (bf16)
                 + 2 * tm * lp(k)                 # patches (bf16)
                 + 2 * 4 * tm * lp(4 * hidden)    # gates + acts (f32)
                 + 3 * 4 * tm * lp(hidden))       # LSTM update temps (f32)
        return pipe + temps + 2 * k * lp(4 * hidden) + 4 * lp(4 * hidden)

    tm = _round_up(max(1, min(tile_m, m_valid)), halo)
    while tm > halo and vmem_bytes(tm) > budget:
        tm -= halo
    return tm


def convlstm_cell_forward_nhwc(x, h, c, weight_oihw, bias,
                               *, kernel_size=(3, 3), tile_m=8192):
    """ConvLSTMCell forward, NHWC layout (the layout-native entry point).

    x : (B, H, W, input_dim), h/c : (B, H, W, hidden)
    weight_oihw : (4*hidden, input_dim + hidden, KH, KW), bias : (4*hidden,)
    Returns (h_next, c_next) in NHWC.
    """
    B, H, W, Cx = x.shape
    hidden = h.shape[-1]
    KH, KW = kernel_size
    if KH % 2 == 0 or KW % 2 == 0:
        raise ValueError("only odd kernel sizes match PyTorch padding=k//2")
    ph, pw = KH // 2, KW // 2
    Cin = Cx + hidden
    Hp, Wp = H + 2 * ph, W + 2 * pw
    K = KH * KW * Cin

    # ---- wrapper glue (plain JAX, fused by jit): pad + flatten, no im2col --
    comb = jnp.concatenate([x, h], axis=-1).astype(jnp.bfloat16)   # (B,H,W,Cin)
    comb = jnp.pad(comb, ((0, 0), (ph, ph), (pw, pw), (0, 0)))     # (B,Hp,Wp,Cin)
    comb_flat = comb.reshape(B, Hp * Wp, Cin)

    # Outputs live on the padded-width grid: m = i*Wp + j, i in [0,H).
    m_valid = H * Wp
    halo = _round_up((KH - 1) * Wp + (KW - 1), 16)   # max tap offset, 16-aligned
    h_bytes = jnp.dtype(x.dtype).itemsize
    tm = _pick_tile(m_valid, halo, Cin, hidden, K, h_bytes, tile_m)
    nb = pl.cdiv(m_valid, tm)
    m_total = nb * tm
    flat_len = (nb + 1) * tm                         # covers all halo reads

    comb_flat = jnp.pad(comb_flat, ((0, 0), (0, flat_len - Hp * Wp), (0, 0)))

    c32 = c.astype(jnp.float32)
    c_pad = jnp.pad(c32, ((0, 0), (0, 0), (0, Wp - W), (0, 0)))    # (B,H,Wp,hid)
    c_flat = jnp.pad(c_pad.reshape(B, H * Wp, hidden),
                     ((0, 0), (0, m_total - H * Wp), (0, 0)))

    # PyTorch OIHW -> (KH, KW, Cin, 4*hidden) -> (K, 4*hidden), bf16.
    w_mat = jnp.transpose(weight_oihw, (2, 3, 1, 0)).reshape(K, 4 * hidden)
    w_mat = w_mat.astype(jnp.bfloat16)
    b2 = bias.reshape(1, 4 * hidden).astype(jnp.float32)

    halo_steps = tm // halo
    kernel = functools.partial(_convlstm_kernel, hidden=hidden, wp=Wp,
                               kh_sz=KH, kw_sz=KW, tm=tm)

    grid_spec = pltpu.PrefetchScalarGridSpec(
        num_scalar_prefetch=0,
        grid=(B, nb),
        in_specs=[
            pl.BlockSpec((1, tm, Cin), lambda b, t: (b, t, 0)),
            pl.BlockSpec((1, halo, Cin),
                         lambda b, t: (b, (t + 1) * halo_steps, 0)),
            pl.BlockSpec((K, 4 * hidden), lambda b, t: (0, 0)),
            pl.BlockSpec((1, 4 * hidden), lambda b, t: (0, 0)),
            pl.BlockSpec((1, tm, hidden), lambda b, t: (b, t, 0)),
        ],
        out_specs=[
            pl.BlockSpec((1, tm, hidden), lambda b, t: (b, t, 0)),
            pl.BlockSpec((1, tm, hidden), lambda b, t: (b, t, 0)),
        ],
    )

    h_flat, c_flat_next = pl.pallas_call(
        kernel,
        out_shape=(jax.ShapeDtypeStruct((B, m_total, hidden), x.dtype),
                   jax.ShapeDtypeStruct((B, m_total, hidden), jnp.float32)),
        grid_spec=grid_spec,
        compiler_params=pltpu.CompilerParams(
            dimension_semantics=("parallel", "parallel"),
            vmem_limit_bytes=48 * 1024 * 1024),
    )(comb_flat, comb_flat, w_mat, b2, c_flat)

    # Drop the padded-width junk columns / padded tail rows (fuses with any
    # downstream op under jit).
    h_next = h_flat[:, :H * Wp, :].reshape(B, H, Wp, hidden)[:, :, :W, :]
    c_next = c_flat_next[:, :H * Wp, :].reshape(B, H, Wp, hidden)[:, :, :W, :]
    return h_next, c_next.astype(c.dtype)


@functools.partial(jax.jit, static_argnames=("kernel_size", "tile_m"))
def convlstm_cell_forward(x_nchw, h_nchw, c_nchw, weight_oihw, bias,
                          *, kernel_size=(3, 3), tile_m=8192):
    """PyTorch-layout (NCHW) parity wrapper around the NHWC-native kernel.

    TODO(synk): a time-unrolled sequence driver should call the NHWC entry
    point directly and keep h/c (and x) NHWC across timesteps; these
    transposes are only for single-step PyTorch parity.
    """
    x = jnp.transpose(x_nchw, (0, 2, 3, 1))
    h = jnp.transpose(h_nchw, (0, 2, 3, 1))
    c = jnp.transpose(c_nchw, (0, 2, 3, 1))
    h_next, c_next = convlstm_cell_forward_nhwc(
        x, h, c, weight_oihw, bias, kernel_size=kernel_size, tile_m=tile_m)
    return (jnp.transpose(h_next, (0, 3, 1, 2)),
            jnp.transpose(c_next, (0, 3, 1, 2)))


def _reference_forward(x_nchw, h_nchw, c_nchw, weight_oihw, bias):
    """Pure-JAX reference (lax.conv).  Conv operands cast to bf16 with f32
    accumulation, exactly like the kernel path; cell state stays f32.
    (PyTorch itself uses fp32 conv operands; documented tolerance 1e-3.)"""
    combined = jnp.concatenate([x_nchw, h_nchw], axis=1).astype(jnp.bfloat16)
    conv = jax.lax.conv_general_dilated(
        combined, weight_oihw.astype(jnp.bfloat16),
        window_strides=(1, 1), padding="SAME",
        dimension_numbers=("NCHW", "OIHW", "NCHW"),
        preferred_element_type=jnp.float32)
    conv = conv + bias.reshape(1, -1, 1, 1)
    cc_i, cc_f, cc_o, cc_g = jnp.split(conv, 4, axis=1)
    i = jax.nn.sigmoid(cc_i)
    f = jax.nn.sigmoid(cc_f)
    o = jax.nn.sigmoid(cc_o)
    g = jnp.tanh(cc_g)
    c_next = f * c_nchw.astype(jnp.float32) + i * g
    h_next = o * jnp.tanh(c_next)
    return h_next.astype(x_nchw.dtype), c_next.astype(c_nchw.dtype)


if __name__ == "__main__":
    # Small, module-consistent shapes.
    B, input_dim, hidden, H, W = 2, 4, 32, 16, 16
    KH, KW = 3, 3
    Cin = input_dim + hidden

    key = jax.random.PRNGKey(0)
    kx, kh_, kc, kw_, kb = jax.random.split(key, 5)

    x = jax.random.normal(kx, (B, input_dim, H, W), jnp.float32)
    h_cur = jax.random.normal(kh_, (B, hidden, H, W), jnp.float32)
    c_cur = jax.random.normal(kc, (B, hidden, H, W), jnp.float32)

    # Deterministic synthetic Conv2d(Cin -> 4*hidden, 3x3) parameters (OIHW).
    fan_in = Cin * KH * KW
    w_scale = 1.0 / jnp.sqrt(jnp.float32(fan_in))
    weight = jax.random.uniform(kw_, (4 * hidden, Cin, KH, KW), jnp.float32,
                                minval=-w_scale, maxval=w_scale)
    bias = jax.random.uniform(kb, (4 * hidden,), jnp.float32,
                              minval=-w_scale, maxval=w_scale)

    h_next, c_next = convlstm_cell_forward(x, h_cur, c_cur, weight, bias,
                                           kernel_size=(KH, KW))
    jax.block_until_ready((h_next, c_next))

    # Verify against the pure-JAX reference (same bf16 conv operands).
    h_ref, c_ref = _reference_forward(x, h_cur, c_cur, weight, bias)
    assert jnp.allclose(h_next, h_ref, rtol=1e-3, atol=1e-3), "h_next mismatch"
    assert jnp.allclose(c_next, c_ref, rtol=1e-3, atol=1e-3), "c_next mismatch"

    print("KERNEL_OK")
</pallas_src>

<mosaic_0001>
module attributes {stable_mosaic.version = 11 : i64} {
  func.func @_convlstm_kernel(%arg0: i32, %arg1: i32, %arg2: memref<1x288x36xbf16, #tpu.memory_space<vmem>>, %arg3: memref<1x48x36xbf16, #tpu.memory_space<vmem>>, %arg4: memref<324x128xbf16, #tpu.memory_space<vmem>>, %arg5: memref<1x128xf32, #tpu.memory_space<vmem>>, %arg6: memref<1x288x32xf32, #tpu.memory_space<vmem>>, %arg7: memref<1x288x32xf32, #tpu.memory_space<vmem>>, %arg8: memref<1x288x32xf32, #tpu.memory_space<vmem>>) attributes {dimension_semantics = [#tpu.dimension_semantics<parallel>, #tpu.dimension_semantics<parallel>], iteration_bounds = array<i64: 2, 1>, scalar_prefetch = 0 : i64, scratch_operands = 0 : i64, tpu.core_type = #tpu.core_type<tc>, window_params = [{transform_indices = @transform_0, window_bounds = array<i64: 1, 288, 36>}, {transform_indices = @transform_1, window_bounds = array<i64: 1, 48, 36>}, {pipeline_mode = #tpu.pipeline_mode<synchronous>, transform_indices = @transform_2, window_bounds = array<i64: 324, 128>}, {pipeline_mode = #tpu.pipeline_mode<synchronous>, transform_indices = @transform_3, window_bounds = array<i64: 1, 128>}, {transform_indices = @transform_4, window_bounds = array<i64: 1, 288, 32>}, {transform_indices = @transform_5, window_bounds = array<i64: 1, 288, 32>}, {transform_indices = @transform_6, window_bounds = array<i64: 1, 288, 32>}]} {
    %c0 = arith.constant 0 : index
    %c0_0 = arith.constant 0 : index
    %c0_1 = arith.constant 0 : index
    %0 = vector.load %arg2[%c0, %c0_0, %c0_1] : memref<1x288x36xbf16, #tpu.memory_space<vmem>>, vector<1x288x36xbf16>
    %1 = vector.shape_cast %0 : vector<1x288x36xbf16> to vector<288x36xbf16>
    %c0_2 = arith.constant 0 : index
    %c0_3 = arith.constant 0 : index
    %c0_4 = arith.constant 0 : index
    %2 = vector.load %arg3[%c0_2, %c0_3, %c0_4] : memref<1x48x36xbf16, #tpu.memory_space<vmem>>, vector<1x48x36xbf16>
    %3 = vector.shape_cast %2 : vector<1x48x36xbf16> to vector<48x36xbf16>
    %4 = tpu.concatenate %1, %3 in 0 : vector<288x36xbf16>, vector<48x36xbf16> -> vector<336x36xbf16>
    %5 = vector.extract_strided_slice %4 {offsets = [0, 0], sizes = [288, 36], strides = [1, 1]} : vector<336x36xbf16> to vector<288x36xbf16>
    %6 = vector.extract_strided_slice %4 {offsets = [1, 0], sizes = [288, 36], strides = [1, 1]} : vector<336x36xbf16> to vector<288x36xbf16>
    %7 = vector.extract_strided_slice %4 {offsets = [2, 0], sizes = [288, 36], strides = [1, 1]} : vector<336x36xbf16> to vector<288x36xbf16>
    %8 = vector.extract_strided_slice %4 {offsets = [18, 0], sizes = [288, 36], strides = [1, 1]} : vector<336x36xbf16> to vector<288x36xbf16>
    %9 = vector.extract_strided_slice %4 {offsets = [19, 0], sizes = [288, 36], strides = [1, 1]} : vector<336x36xbf16> to vector<288x36xbf16>
    %10 = vector.extract_strided_slice %4 {offsets = [20, 0], sizes = [288, 36], strides = [1, 1]} : vector<336x36xbf16> to vector<288x36xbf16>
    %11 = vector.extract_strided_slice %4 {offsets = [36, 0], sizes = [288, 36], strides = [1, 1]} : vector<336x36xbf16> to vector<288x36xbf16>
    %12 = vector.extract_strided_slice %4 {offsets = [37, 0], sizes = [288, 36], strides = [1, 1]} : vector<336x36xbf16> to vector<288x36xbf16>
    %13 = vector.extract_strided_slice %4 {offsets = [38, 0], sizes = [288, 36], strides = [1, 1]} : vector<336x36xbf16> to vector<288x36xbf16>
    %14 = tpu.concatenate %5, %6, %7, %8, %9, %10, %11, %12, %13 in 1 : vector<288x36xbf16>, vector<288x36xbf16>, vector<288x36xbf16>, vector<288x36xbf16>, vector<288x36xbf16>, vector<288x36xbf16>, vector<288x36xbf16>, vector<288x36xbf16>, vector<288x36xbf16> -> vector<288x324xbf16>
    %c0_5 = arith.constant 0 : index
    %c0_6 = arith.constant 0 : index
    %15 = vector.load %arg4[%c0_5, %c0_6] : memref<324x128xbf16, #tpu.memory_space<vmem>>, vector<324x128xbf16>
    %cst = arith.constant dense<0.000000e+00> : vector<288x128xf32>
    %16 = tpu.matmul %14, %15, %cst {dimension_numbers = #tpu.dot_dimension_numbers<[1], [0], [0], [1], [0, 0, 1, 1], [], []>} : vector<288x324xbf16>, vector<324x128xbf16>, vector<288x128xf32> -> vector<288x128xf32>
    %c0_7 = arith.constant 0 : index
    %c0_8 = arith.constant 0 : index
    %17 = vector.load %arg5[%c0_7, %c0_8] : memref<1x128xf32, #tpu.memory_space<vmem>>, vector<1x128xf32>
    %18 = vector.broadcast %17 : vector<1x128xf32> to vector<288x128xf32>
    %19 = arith.addf %16, %18 : vector<288x128xf32>
    %20 = tpu.iota {dimensions = array<i32: 1>} : vector<288x128xi32>
    %c96_i32 = arith.constant 96 : i32
    %21 = vector.broadcast %c96_i32 : i32 to vector<288x128xi32>
    %22 = arith.cmpi slt, %20, %21 : vector<288x128xi32>
    %cst_9 = arith.constant 5.000000e-01 : f32
    %23 = vector.broadcast %cst_9 : f32 to vector<288x128xf32>
    %24 = arith.mulf %23, %19 : vector<288x128xf32>
    %25 = arith.select %22, %24, %19 : vector<288x128xi1>, vector<288x128xf32>
    %26 = math.tanh %25 : vector<288x128xf32>
    %cst_10 = arith.constant 5.000000e-01 : f32
    %27 = vector.broadcast %cst_10 : f32 to vector<288x128xf32>
    %28 = arith.mulf %27, %26 : vector<288x128xf32>
    %cst_11 = arith.constant 5.000000e-01 : f32
    %29 = vector.broadcast %cst_11 : f32 to vector<288x128xf32>
    %30 = arith.addf %28, %29 : vector<288x128xf32>
    %31 = arith.select %22, %30, %26 : vector<288x128xi1>, vector<288x128xf32>
    %32 = vector.extract_strided_slice %31 {offsets = [0, 0], sizes = [288, 32], strides = [1, 1]} : vector<288x128xf32> to vector<288x32xf32>
    %33 = vector.extract_strided_slice %31 {offsets = [0, 32], sizes = [288, 32], strides = [1, 1]} : vector<288x128xf32> to vector<288x32xf32>
    %34 = vector.extract_strided_slice %31 {offsets = [0, 64], sizes = [288, 32], strides = [1, 1]} : vector<288x128xf32> to vector<288x32xf32>
    %35 = vector.extract_strided_slice %31 {offsets = [0, 96], sizes = [288, 32], strides = [1, 1]} : vector<288x128xf32> to vector<288x32xf32>
    %c0_12 = arith.constant 0 : index
    %c0_13 = arith.constant 0 : index
    %c0_14 = arith.constant 0 : index
    %36 = vector.load %arg6[%c0_12, %c0_13, %c0_14] : memref<1x288x32xf32, #tpu.memory_space<vmem>>, vector<1x288x32xf32>
    %37 = vector.shape_cast %36 : vector<1x288x32xf32> to vector<288x32xf32>
    %38 = arith.mulf %33, %37 : vector<288x32xf32>
    %39 = arith.mulf %32, %35 : vector<288x32xf32>
    %40 = arith.addf %38, %39 : vector<288x32xf32>
    %41 = math.tanh %40 : vector<288x32xf32>
    %42 = arith.mulf %34, %41 : vector<288x32xf32>
    %c0_15 = arith.constant 0 : index
    %c0_16 = arith.constant 0 : index
    %c0_17 = arith.constant 0 : index
    %43 = vector.load %arg7[%c0_15, %c0_16, %c0_17] : memref<1x288x32xf32, #tpu.memory_space<vmem>>, vector<1x288x32xf32>
    %44 = vector.shape_cast %43 : vector<1x288x32xf32> to vector<288x32xf32>
    %45 = vector.shape_cast %42 : vector<288x32xf32> to vector<1x288x32xf32>
    tpu.vector_store %arg7[%c0_15, %c0_16, %c0_17], %45 {strides = array<i32>} : memref<1x288x32xf32, #tpu.memory_space<vmem>>, vector<1x288x32xf32>,
    %c0_18 = arith.constant 0 : index
    %c0_19 = arith.constant 0 : index
    %c0_20 = arith.constant 0 : index
    %46 = vector.load %arg8[%c0_18, %c0_19, %c0_20] : memref<1x288x32xf32, #tpu.memory_space<vmem>>, vector<1x288x32xf32>
    %47 = vector.shape_cast %46 : vector<1x288x32xf32> to vector<288x32xf32>
    %48 = vector.shape_cast %40 : vector<288x32xf32> to vector<1x288x32xf32>
    tpu.vector_store %arg8[%c0_18, %c0_19, %c0_20], %48 {strides = array<i32>} : memref<1x288x32xf32, #tpu.memory_space<vmem>>, vector<1x288x32xf32>,
    return
  }
  func.func @transform_0(%arg0: i32, %arg1: i32) -> (i32, i32, i32) {
    %c0_i32 = arith.constant 0 : i32
    %c0_i32_0 = arith.constant 0 : i32
    return %arg0, %arg1, %c0_i32 : i32, i32, i32
  }
  func.func @transform_1(%arg0: i32, %arg1: i32) -> (i32, i32, i32) {
    %c1_i32 = arith.constant 1 : i32
    %0 = arith.addi %arg1, %c1_i32 : i32
    %c6_i32 = arith.constant 6 : i32
    %1 = arith.muli %0, %c6_i32 : i32
    %c0_i32 = arith.constant 0 : i32
    %c0_i32_0 = arith.constant 0 : i32
    return %arg0, %1, %c0_i32 : i32, i32, i32
  }
  func.func @transform_2(%arg0: i32, %arg1: i32) -> (i32, i32) {
    %c0_i32 = arith.constant 0 : i32
    %c0_i32_0 = arith.constant 0 : i32
    %c0_i32_1 = arith.constant 0 : i32
    return %c0_i32, %c0_i32_0 : i32, i32
  }
  func.func @transform_3(%arg0: i32, %arg1: i32) -> (i32, i32) {
    %c0_i32 = arith.constant 0 : i32
    %c0_i32_0 = arith.constant 0 : i32
    %c0_i32_1 = arith.constant 0 : i32
    return %c0_i32, %c0_i32_0 : i32, i32
  }
  func.func @transform_4(%arg0: i32, %arg1: i32) -> (i32, i32, i32) {
    %c0_i32 = arith.constant 0 : i32
    %c0_i32_0 = arith.constant 0 : i32
    return %arg0, %arg1, %c0_i32 : i32, i32, i32
  }
  func.func @transform_5(%arg0: i32, %arg1: i32) -> (i32, i32, i32) {
    %c0_i32 = arith.constant 0 : i32
    %c0_i32_0 = arith.constant 0 : i32
    return %arg0, %arg1, %c0_i32 : i32, i32, i32
  }
  func.func @transform_6(%arg0: i32, %arg1: i32) -> (i32, i32, i32) {
    %c0_i32 = arith.constant 0 : i32
    %c0_i32_0 = arith.constant 0 : i32
    return %arg0, %arg1, %c0_i32 : i32, i32, i32
  }
}

</mosaic_0001>

<bundles_post_ra>
// kernel: convlstm_cell_forward.1
= control target key start
LH: loop header
LB: loop body
LE: loop exit
PB: predicated region body
PF: predicated region fallthrough
CT: control target
= control target key end

     0   :  { %s4201_s21 = smov 0   ;;  %s4203_s22 = smov 0   ;;  %s6497_s0 = inlined_call_operand.vmem [shape: bf16[2,576,36], index: 0, kind: input, shape index: {}, may-alias: {0,1}]   ;;  %s6498_s1 = inlined_call_operand.vmem [shape: bf16[2,576,36], index: 1, kind: input, shape index: {}, may-alias: {0,1}]   ;;  %s6499_s2 = inlined_call_operand.vmem [shape: bf16[324,128], index: 2, kind: input, shape index: {}]   ;;  %s6500_s3 = inlined_call_operand.vmem [shape: f32[1,128], index: 3, kind: input, shape index: {}]   ;;  %s6501_s4 = inlined_call_operand.vmem [shape: f32[2,288,32], index: 4, kind: input, shape index: {}]   ;;  %s6502_s5 = inlined_call_operand.vmem [shape: f32[2,288,32], index: 5, kind: output, shape index: {0}]   ;;  %s6503_s6 = inlined_call_operand.vmem [shape: f32[2,288,32], index: 6, kind: output, shape index: {1}]  }
   0x1   :  { %s4205_s23 = smov 0  }
   0x2 LB: > { %s29_s24 = sadd.s32 1, %s4149_s22  ;;  %p3714_p0 = scmp.ge.s32.totalorder %s4153_s23, 1  ;;  %s4153_s23 = sphi %s4205_s23, %s17_s23   ;;  %s4149_s22 = sphi %s4203_s22, %s6627_s22   ;;  %s4145_s21 = sphi %s4201_s21, %s6626_s21  }
   0x3   : > { %p31_p1 = scmp.ge.s32.totalorder %s29_s24, 2  ;;  %p280_p2 = scmp.lt.s32.totalorder %s4153_s23, 3 }
   0x5   : > { %s6629_s24 = smov (%p31_p1, %s29_s24), 0  ;;  %p281_p3 = pnand %p3714_p0, %p280_p2 }
   0x7   : > { %284 = sbr.rel (%p281_p3) target bundleno = 1160 (0x488), region = 40 }
   0xc   : > { %p348_p4 = scmp.lt.s32.totalorder %s4145_s21, 1  ;;  %vm549_vm0 = vsmask.f32 7424  ;;  %s4155_s29 = smov 36   ;;  %vm846_vm1 = vsmask.f32 6400 }
   0xd   : > { %vm1077_vm2 = vsmask.f32 5376  ;;  %vm734_vm3 = vcmask 1046528   ;;  %s4156_s10 = smov 72   ;;  %vm965_vm4 = vcmask 1045504   ;;  %s4160_s13 = smov 88  }
   0xe   : > { %s6631_s21 = smov (!%p348_p4, %s4145_s21), 1  ;;  %s4161_s16 = smov 52   ;;  %vm1808_vm5 = vcmask 1041408   ;;  %vm1268_vm6 = vcmask 293888   ;;  %vm1305_vm7 = vcmask 588800   ;;  %vm1194_vm8 = vcmask 1044480  }
   0xf   : > { %s4219_s25 = smul.u32 288, %s6631_s21  ;;  %s4162_s19 = smov 124   ;;  %vm1397_vm9 = vcmask 130048   ;;  %vm1434_vm10 = vcmask 424960   ;;  %vm1471_vm11 = vcmask 719872   ;;  %vm1508_vm12 = vcmask 1014784  }
  0x10   : > { %s4163_s18 = smov 32   ;;  %vm1342_vm13 = vcmask 883712   ;;  %vm1563_vm14 = vcmask 261120   ;;  %vm1771_vm15 = vcmask 556032   ;;  %s4165_s15 = smov 64  }
  0x11   : > { %s4225_s28 = scalar_lea.vmem %s6497_s0, %s4219_s25  ;;  %s3784_s30 = sadd.s32 144, %s4219_s25 }
  0x12   : > { %v4228_v0 = vld [vmem:[%s4225_s28 + $0x10] sm:$0xff]   ;;  %v4231_v1 = vld [vmem:[%s4225_s28 + $0x18] sm:$0xff]   ;;  %v4243_v5 = vld [vmem:[%s4225_s28] sm:$0xff]   ;;  %s4397_s9 = scalar_lea.vmem %s6498_s1, %s3784_s30  ;;  %s4158_s30 = smov 108  }
  0x13   : > { %v4234_v2 = vshll.u32 %v4228_v0, 16  ;;  %v4237_v3 = vshrl.u32 %v4228_v0, 16  ;;  %v4240_v4 = vshll.u32 %v4231_v1, 16  ;;  %v4246_v6 = vld [vmem:[%s4225_s28 + $0x8] sm:$0xff]   ;;  %v4249_v7 = vshrl.u32 %v4231_v1, 16  ;;  %v4256_v12 = vld [vmem:[%s4225_s28 + $0x20] sm:$0xff]   ;;  %s6235_s14 = scalar_lea.vmem %s6503_s6, %s4219_s25  ;;  %s6402_s20 = scalar_lea.vmem %s6502_s5, %s4219_s25 }
  0x14   : > { %v551_v10 = vshrl.u32 %v4243_v5, 16  ;;  %v553_v11 = vshll.u32 %v4243_v5, 16  ;;  %v4259_v13 = vld [vmem:[%s4225_s28 + $0x28] sm:$0xff]   ;;  %v6504_v14 = vshll.u32 %v4246_v6, 16  ;;  %v6505_v15 = vshrl.u32 %v4246_v6, 16  ;;  %v4271_v21 = vld [vmem:[%s4225_s28 + $0x30] sm:$0xff]  }
  0x15   : > { %v568_v8 = vrot.slane %v4234_v2, 1  ;;  %v576_v9 = vrot.slane %v4240_v4, 1  ;;  %v4266_v19 = vshll.u32 %v4256_v12, 16  ;;  %6534 = vst [vmem:[#allocation2_spill] sm:$0xff] %v4271_v21  ;;  %v4274_v22 = vshll.u32 %v4259_v13, 16  ;;  %v4283_v25 = vld [vmem:[%s4225_s28 + $0x38] sm:$0xff]  }
  0x16   : > { %v555_v17 = vrot.slane %v553_v11, 1  ;;  %v560_v20 = vrot.slane %v6504_v14, 1  ;;  %v4277_v23 = vshrl.u32 %v4259_v13, 16  ;;  %v4280_v24 = vshrl.u32 %v4256_v12, 16  ;;  %6535 = vst [vmem:[#allocation3_spill] sm:$0xff] %v4283_v25  ;;  %v4288_v29 = vld [vmem:[%s4225_s28 + $0x40] sm:$0xff]  }
  0x17   : > { %v572_v16 = vor.u32 %v4237_v3, %v568_v8  ;;  %v580_v18 = vor.u32 %v4249_v7, %v576_v9  ;;  %v584_v28 = vrot.slane %v4266_v19, 1  ;;  %v592_v31 = vrot.slane %v4274_v22, 1  ;;  %v4303_v36 = vld [vmem:[%s4225_s28 + $0x48] sm:$0xff]   ;;  %v4321_v45 = vld [vmem:[%s4225_s28 + $0x50] sm:$0xff]   ;;  %v4331_v48 = vld [vmem:[%s4225_s28 + $0x58] sm:$0xff]  }
  0x18   : > { %v556_v27 = vor.u32 %v555_v17, %v551_v10  ;;  %v564_v30 = vor.u32 %v6505_v15, %v560_v20  ;;  %v4295_v32 = vshll.u32 %v4271_v21, 16  ;;  %v4300_v35 = vshll.u32 %v4283_v25, 16  ;;  %v4346_v56 = vld [vmem:[%s4225_s28 + $0x60] sm:$0xff]   ;;  %v4352_v58 = vld [vmem:[%s4225_s28 + $0x68] sm:$0xff]   ;;  %v4360_v61 = vld [vmem:[%s4225_s28 + $0x70] sm:$0xff]  }
  0x19   : > { %v577_v26 = vsel %vm549_vm0, %v572_v16, %v576_v9  ;;  %v585_v34 = vsel %vm549_vm0, %v580_v18, %v584_v28  ;;  %v596_v37 = vor.u32 %v4277_v23, %v592_v31  ;;  %v588_v39 = vor.u32 %v4280_v24, %v584_v28  ;;  %v4387_v28 = vld [vmem:[%s4225_s28 + $0x78] sm:$0xff]  }
  0x1a   : > { %702 = vrot.lane.b32.xlu1 %v577_v26, %s4155_s29  ;;  %v561_v33 = vsel %vm549_vm0, %v556_v27, %v560_v20  ;;  %v600_v38 = vrot.slane %v4295_v32, 1  ;;  %v4310_v40 = vshrl.u32 %v4283_v25, 16  ;;  %v569_v41 = vsel %vm549_vm0, %v564_v30, %v568_v8 }
  0x1b   : > { %698 = vrot.lane.b32.xlu0 %v561_v33, %s4155_s29  ;;  %v608_v42 = vrot.slane %v4300_v35, 1  ;;  %v4315_v43 = vshll.u32 %v4288_v29, 16  ;;  %v4318_v44 = vshrl.u32 %v4271_v21, 16  ;;  %v4325_v46 = vshll.u32 %v4303_v36, 16 }
  0x1c   : > { %v4328_v47 = vshrl.u32 %v4303_v36, 16  ;;  %v601_v49 = vsel %vm549_vm0, %v596_v37, %v600_v38  ;;  %v4337_v52 = vshll.u32 %v4321_v45, 16  ;;  %v4343_v55 = vshrl.u32 %v4288_v29, 16 }
  0x1d   : > { %v612_v50 = vor.u32 %v4310_v40, %v608_v42  ;;  %v616_v51 = vrot.slane %v4315_v43, 1  ;;  %v604_v53 = vor.u32 %v4318_v44, %v600_v38  ;;  %v624_v54 = vrot.slane %v4325_v46, 1  ;;  %v4405_v38 = vld [vmem:[%s4225_s28 + $0x88] sm:$0xff]  }
  0x1e   : > { %704 = vrot.lane.b32.xlu1 %v585_v34, %s4155_s29  ;;  %v4349_v57 = vshll.u32 %v4331_v48, 16  ;;  %v593_v59 = vsel %vm549_vm0, %v588_v39, %v592_v31  ;;  %v4357_v60 = vshrl.u32 %v4331_v48, 16  ;;  %v632_v62 = vrot.slane %v4337_v52, 1  ;;  %v4392_v31 = vld [vmem:[%s4225_s28 + $0x80] sm:$0xff]  }
  0x1f   : > { %700 = vrot.lane.b32.xlu0 %v569_v41, %s4155_s29  ;;  %v4365_v63 = vshll.u32 %v4346_v56, 16  ;;  %v617_v8 = vsel %vm549_vm0, %v612_v50, %v616_v51  ;;  %v628_v9 = vor.u32 %v4328_v47, %v624_v54  ;;  %v4371_v11 = vshll.u32 %v4352_v58, 16 }
  0x20   : > { %6536 = vst [vmem:[#allocation4_spill] sm:$0xff] %v4349_v57  ;;  %6537 = vst [vmem:[#allocation5_spill] sm:$0xff] %v4357_v60  ;;  %v640_v10 = vrot.slane %v4349_v57, 1  ;;  %v609_v16 = vsel %vm549_vm0, %v604_v53, %v608_v42  ;;  %v4376_v17 = vshrl.u32 %v4321_v45, 16  ;;  %v620_v18 = vor.u32 %v4343_v55, %v616_v51 }
  0x21   : > { %6538 = vst [vmem:[#allocation6_spill] sm:$0xff] %v4365_v63  ;;  %6539 = vst [vmem:[#allocation7_spill] sm:$0xff] %v4371_v11  ;;  %v648_v20 = vrot.slane %v4365_v63, 1  ;;  %v4381_v26 = vshrl.u32 %v4352_v58, 16  ;;  %v4384_v27 = vshll.u32 %v4360_v61, 16  ;;  %v656_v30 = vrot.slane %v4371_v11, 1 }
  0x22   : > { %708 = vrot.lane.b32.xlu1 %v601_v49, %s4155_s29  ;;  %v633_v33 = vsel %vm549_vm0, %v628_v9, %v632_v62  ;;  %v644_v34 = vor.u32 %v4357_v60, %v640_v10  ;;  %v4402_v37 = vshll.u32 %v4387_v28, 16  ;;  %v625_v39 = vsel %vm549_vm0, %v620_v18, %v624_v54  ;;  %v4414_v49 = vld [vmem:[%s4397_s9] sm:$0xff]  }
  0x23   : > { %706 = vrot.lane.b32.xlu0 %v593_v59, %s4155_s29  ;;  %6540 = vst [vmem:[#allocation8_spill] sm:$0xff] %v4381_v26  ;;  %6541 = vst [vmem:[#allocation9_spill] sm:$0xff] %v4384_v27  ;;  %v636_v41 = vor.u32 %v4376_v17, %v632_v62  ;;  %v4411_v42 = vshrl.u32 %v4346_v56, 16  ;;  %v664_v50 = vrot.slane %v4384_v27, 1  ;;  %v4419_v51 = vshrl.u32 %v4387_v28, 16 }
  0x24   : > { %v4422_v53 = vshll.u32 %v4392_v31, 16  ;;  %v649_v59 = vsel %vm549_vm0, %v644_v34, %v648_v20  ;;  %v660_v54 = vor.u32 %v4381_v26, %v656_v30  ;;  %v672_v62 = vrot.slane %v4402_v37, 1 }
  0x25   : > { %6542 = vst [vmem:[#allocation10_spill] sm:$0xff] %v4411_v42  ;;  %v4432_v9 = vshrl.u32 %v4360_v61, 16  ;;  %v652_v18 = vor.u32 %v4411_v42, %v648_v20  ;;  %v4440_v34 = vshll.u32 %v4414_v49, 16  ;;  %v736_v63 = vrot.slane %v4246_v6, 1 }
  0x26   : > { %712 = vrot.lane.b32.xlu1 %v617_v8, %s4155_s29  ;;  %v4428_v8 = vshll.u32 %v4405_v38, 16  ;;  %v665_v14 = vsel %vm549_vm0, %v660_v54, %v664_v50  ;;  %v676_v15 = vor.u32 %v4419_v51, %v672_v62  ;;  %v735_v57 = vrot.slane %v4243_v5, 1 }
  0x27   : > { %710 = vrot.lane.b32.xlu0 %v609_v16, %s4155_s29  ;;  %6543 = vst [vmem:[#allocation11_spill] sm:$0xff] %v4432_v9  ;;  %v641_v16 = vsel %vm549_vm0, %v636_v41, %v640_v10  ;;  %v657_v10 = vsel %vm549_vm0, %v652_v18, %v656_v30  ;;  %v668_v20 = vor.u32 %v4432_v9, %v664_v50  ;;  %v4451_v41 = vshrl.u32 %v4392_v31, 16 }
  0x28   : > { %v688_v27 = vrot.slane %v4428_v8, 1  ;;  %v696_v11 = vrot.slane %v4440_v34, 1  ;;  %v6545_v18 = vshll.u32 %v4246_v6, 16  ;;  %v851_v9 = vrot.slane %v4234_v2, 2 }
  0x29   : > { %v673_v30 = vsel %vm549_vm0, %v668_v20, %v672_v62  ;;  %v1079_v20 = vrot.slane %v4234_v2, 3  ;;  %v855_v5 = vrot.slane %v4240_v4, 2  ;;  %v1089_v60 = vrot.slane %v4277_v23, 2 }
  0x2a   : > { %716 = vrot.lane.b32.xlu1 %v633_v33, %s4155_s29  ;;  %v4437_v33 = vshrl.u32 %v4405_v38, 16 }
  0x2b   : > { %714 = vrot.lane.b32.xlu0 %v625_v39, %s4155_s29  ;;  %v680_v39 = vrot.slane %v4422_v53, 1 }
  0x2c   : > { %v692_v54 = vor.u32 %v4437_v33, %v688_v27 }
  0x2d   : > { %v684_v50 = vor.u32 %v4451_v41, %v680_v39 }
  0x2e   : > { %720 = vrot.lane.b32.xlu1 %v649_v59, %s4155_s29  ;;  %v681_v59 = vsel %vm549_vm0, %v676_v15, %v680_v39  ;;  %v850_v15 = vrot.slane %v4237_v3, 1  ;;  %v1078_v39 = vrot.slane %v4237_v3, 2 }
  0x2f   : > { %718 = vrot.lane.b32.xlu0 %v641_v16, %s4155_s29  ;;  %v6544_v16 = vshrl.u32 %v4246_v6, 16 }
  0x30   : > { %v852_v62 = vor.u32 %v851_v9, %v850_v15  ;;  %v1080_v3 = vor.u32 %v1079_v20, %v1078_v39  ;;  %v748_v39 = vrot.slane %v4283_v25, 1 }
  0x31   : > { %v847_v26 = vrot.slane %v6544_v16, 1  ;;  %v738_v16 = vrot.slane %v4228_v0, 1 }
  0x32   : > { %724 = vrot.lane.b32.xlu1 %v665_v14, %s4155_s29  ;;  %v848_v14 = vrot.slane %v6545_v18, 2  ;;  %v1081_v18 = vrot.slane %v4249_v7, 2 }
  0x33   : > { %722 = vrot.lane.b32.xlu0 %v657_v10, %s4155_s29  ;;  %v697_v10 = vsel %vm549_vm0, %v692_v54, %v696_v11  ;;  %v1082_v11 = vrot.slane %v4240_v4, 3  ;;  %v740_v54 = vrot.slane %v4231_v1, 1  ;;  %v4484_v2 = vsel %vm734_vm3, %v736_v63, %v738_v16 }
  0x34   : > { %v849_v42 = vor.u32 %v848_v14, %v847_v26  ;;  %v742_v26 = vrot.slane %v4256_v12, 1  ;;  %v744_v14 = vrot.slane %v4259_v13, 1  ;;  %v1133_v4 = vrot.slane %v4451_v41, 2 }
  0x36   : > { %728 = vrot.lane.b32.xlu1 %v681_v59, %s4155_s29  ;;  %v689_v59 = vsel %vm549_vm0, %v684_v50, %v688_v27  ;;  %v4481_v9 = vsel %vm846_vm1, %v849_v42, %v852_v62  ;;  %v854_v27 = vrot.slane %v4249_v7, 1  ;;  %v737_v50 = vsel %vm734_vm3, %v735_v57, %v736_v63 }
  0x37   : > { %726 = vrot.lane.b32.xlu0 %v673_v30, %s4155_s29  ;;  %v1083_v30 = vor.u32 %v1082_v11, %v1081_v18  ;;  %v4500_v7 = vsel %vm734_vm3, %v738_v16, %v740_v54  ;;  %v1134_v57 = vrot.slane %v4422_v53, 3  ;;  %v746_v63 = vrot.slane %v4271_v21, 1 }
  0x38   : > { %v856_v42 = vor.u32 %v855_v5, %v854_v27  ;;  %v1137_v18 = vrot.slane %v4437_v33, 2  ;;  %v1138_v16 = vrot.slane %v4428_v8, 3  ;;  %v1085_v11 = vrot.slane %v4280_v24, 2 }
  0x39   : > { %v4492_v15 = vsel %vm1077_vm2, %v1080_v3, %v1083_v30  ;;  %v858_v3 = vrot.slane %v4280_v24, 1  ;;  %v859_v27 = vrot.slane %v4266_v19, 2  ;;  %v910_v5 = vrot.slane %v4437_v33, 1 }
  0x3a   : > { %732 = vrot.lane.b32.xlu1 %v697_v10, %s4155_s29  ;;  %v4497_v10 = vsel %vm734_vm3, %v740_v54, %v742_v26  ;;  %v4507_v20 = vsel %vm846_vm1, %v852_v62, %v856_v42  ;;  %v1086_v54 = vrot.slane %v4266_v19, 3  ;;  %v911_v62 = vrot.slane %v4428_v8, 2 }
  0x3b   : > { %730 = vrot.lane.b32.xlu0 %v689_v59, %s4155_s29  ;;  %v4511_v59 = vor.u32 %v1134_v57, %v1133_v4  ;;  %v4523_v4 = vor.u32 %v1138_v16, %v1137_v18  ;;  %v4527_v25 = vsel %vm734_vm3, %v744_v14, %v746_v63  ;;  %v860_v24 = vor.u32 %v859_v27, %v858_v3 }
  0x3c   : > { %v1087_v57 = vor.u32 %v1086_v54, %v1085_v11  ;;  %v4529_v21 = vor.u32 %v911_v62, %v910_v5  ;;  %v1090_v19 = vrot.slane %v4274_v22, 3  ;;  %v4535_v8 = vsel %vm734_vm3, %v742_v26, %v744_v14 }
  0x3d   : > { %v914_v33 = vshrl.u32 %v4414_v49, 16  ;;  %v752_v18 = vrot.slane %v4303_v36, 1  ;;  %v754_v16 = vrot.slane %v4321_v45, 1  ;;  %v4544_v11 = vsel %vm846_vm1, %v856_v42, %v860_v24  ;;  %v3945_v42 = vld [vmem:[%s6499_s2 + $0x38] sm:$0xff]  }
  0x3e   : > { %774 = vrot.lane.b32.xlu1 %v4484_v2, %s4156_s10  ;;  %v1091_v54 = vor.u32 %v1090_v19, %v1089_v60  ;;  %v1142_v26 = vrot.slane %v4440_v34, 3  ;;  %v862_v14 = vrot.slane %v4277_v23, 1  ;;  %v917_v60 = vrot.slane %v4440_v34, 2 }
  0x3f   : > { %772 = vrot.lane.b32.xlu0 %v737_v50, %s4156_s10  ;;  %v750_v50 = vrot.slane %v4288_v29, 1  ;;  %v4538_v29 = vsel %vm1077_vm2, %v1083_v30, %v1087_v57  ;;  %v1141_v3 = vrot.slane %v914_v33, 2  ;;  %v863_v30 = vrot.slane %v4274_v22, 2 }
  0x40   : > { %v4555_v36 = vsel %vm1077_vm2, %v1087_v57, %v1091_v54  ;;  %v916_v45 = vrot.slane %v914_v33, 1  ;;  %v1093_v5 = vrot.slane %v4318_v44, 2  ;;  %v1094_v62 = vrot.slane %v4295_v32, 3 }
  0x41   : > { %v4552_v27 = vsel %vm734_vm3, %v748_v39, %v750_v50  ;;  %v4563_v23 = vor.u32 %v1142_v26, %v1141_v3  ;;  %v864_v22 = vor.u32 %v863_v30, %v862_v14  ;;  %v4568_v57 = vsel %vm734_vm3, %v746_v63, %v748_v39  ;;  %v4584_v14 = vld [vmem:[%s4397_s9 + $0x8] sm:$0xff]  }
  0x42   : > { %778 = vrot.lane.b32.xlu1 %v4497_v10, %s4156_s10  ;;  %6546 = vst [vmem:[#allocation12_spill] sm:$0xff] %v4552_v27  ;;  %6547 = vst [vmem:[#allocation13_spill] sm:$0xff] %v4568_v57  ;;  %v4570_v19 = vor.u32 %v917_v60, %v916_v45  ;;  %v756_v34 = vrot.slane %v4331_v48, 1  ;;  %v1095_v26 = vor.u32 %v1094_v62, %v1093_v5  ;;  %v4157_v63 = vmov 0  }
  0x43   : > { %776 = vrot.lane.b32.xlu0 %v4500_v7, %s4156_s10  ;;  %v4578_v33 = vsel %vm1077_vm2, %v4523_v4, %v4563_v23  ;;  %v4581_v3 = vsel %vm846_vm1, %v860_v24, %v864_v22  ;;  %1812 = vmatprep.subr.bf16.mxu0 %v4157_v63  ;;  %v4588_v39 = vsel %vm734_vm3, %v752_v18, %v754_v16  ;;  %v758_v30 = vrot.slane %v4346_v56, 1  ;;  %v3946_v24 = vld [vmem:[%s6499_s2 + $0x30] sm:$0xff]  }
  0x44   : > { %6548 = vst [vmem:[#allocation14_spill] sm:$0xff] %v4588_v39  ;;  %v4594_v48 = vsel %vm846_vm1, %v4529_v21, %v4570_v19  ;;  %1813 = vmatpush1.bf16.msra.mxu0 %v3945_v42  ;;  %v866_v45 = vrot.slane %v4318_v44, 1  ;;  %3854 = vmatprep.subr.bf16.mxu1 %v4157_v63  ;;  %v6526_v60 = vrot.slane %v4414_v49, 1  ;;  %v4605_v56 = vsel %vm1077_vm2, %v1091_v54, %v1095_v26 }
  0x45   : > { %1814 = vmatprep.subr.bf16.mxu0 %v4157_v63  ;;  %v867_v5 = vrot.slane %v4295_v32, 2  ;;  %v808_v62 = vrot.slane %v4584_v14, 1  ;;  %3870 = vmatpush1.bf16.msra.mxu1 %v3945_v42  ;;  %v1097_v54 = vrot.slane %v4310_v40, 2  ;;  %v4623_v32 = vsel %vm734_vm3, %v756_v34, %v758_v30  ;;  %v3947_v42 = vld [vmem:[%s6499_s2 + $0x28] sm:$0xff]  }
  0x46   : > { %782 = vrot.lane.b32.xlu1 %v4527_v25, %s4156_s10  ;;  %3855 = vmatprep.subr.bf16.mxu1 %v4157_v63  ;;  %6550 = vst [vmem:[#allocation16_spill] sm:$0xff] %v4623_v32 }
  0x47   : > { %780 = vrot.lane.b32.xlu0 %v4535_v8, %s4156_s10  ;;  %v868_v44 = vor.u32 %v867_v5, %v866_v45  ;;  %v1098_v45 = vrot.slane %v4300_v35, 3 }
  0x48   : > { %1815 = vmatpush1.bf16.msra.mxu0 %v3946_v24 }
  0x49   : > { %v4634_v5 = vsel %vm846_vm1, %v864_v22, %v868_v44  ;;  %1816 = vmatprep.subr.bf16.mxu0 %v4157_v63  ;;  %3871 = vmatpush1.bf16.msra.mxu1 %v3946_v24  ;;  %v871_v22 = vrot.slane %v4300_v35, 2  ;;  %v1101_v24 = vrot.slane %v4343_v55, 2 }
  0x4a   : > { %786 = vrot.lane.b32.xlu1 %v4552_v27, %s4156_s10  ;;  %v4611_v27 = vsel %vm734_vm3, %v750_v50, %v752_v18  ;;  %v760_v50 = vrot.slane %v4352_v58, 1  ;;  %v762_v18 = vrot.slane %v4360_v61, 1  ;;  %v1099_v58 = vor.u32 %v1098_v45, %v1097_v54  ;;  %3856 = vmatprep.subr.bf16.mxu1 %v4157_v63 }
  0x4b   : > { %784 = vrot.lane.b32.xlu0 %v4568_v57, %s4156_s10  ;;  %6549 = vst [vmem:[#allocation15_spill] sm:$0xff] %v4611_v27  ;;  %v4618_v57 = vsel %vm734_vm3, %v6526_v60, %v808_v62  ;;  %v4638_v62 = vsel %vm734_vm3, %v754_v16, %v756_v34  ;;  %v764_v61 = vrot.slane %v4387_v28, 1  ;;  %v766_v60 = vrot.slane %v4392_v31, 1  ;;  %v3948_v16 = vld [vmem:[%s6499_s2 + $0x20] sm:$0xff]  }
  0x4c   : > { %6551 = vst [vmem:[#allocation17_spill] sm:$0xff] %v4638_v62  ;;  %1817 = vmatpush1.bf16.msra.mxu0 %v3947_v42  ;;  %v4654_v34 = vsel %vm1077_vm2, %v1095_v26, %v1099_v58  ;;  %v1102_v54 = vrot.slane %v4315_v43, 3 }
  0x4d   : > { %6552 = vst [vmem:[#allocation18_spill] sm:$0xff] %v4654_v34  ;;  %1818 = vmatprep.subr.bf16.mxu0 %v4157_v63  ;;  %3872 = vmatpush1.bf16.msra.mxu1 %v3947_v42  ;;  %v4673_v34 = vsel %vm734_vm3, %v764_v61, %v766_v60  ;;  %v4688_v42 = vsel %vm734_vm3, %v762_v18, %v764_v61  ;;  %v1110_v61 = vrot.slane %v4337_v52, 3 }
  0x4e   : > { %790 = vrot.lane.b32.xlu1 %v4588_v39, %s4156_s10  ;;  %v870_v39 = vrot.slane %v4310_v40, 1  ;;  %v4662_v40 = vsel %vm734_vm3, %v758_v30, %v760_v50  ;;  %v1103_v45 = vor.u32 %v1102_v54, %v1101_v24  ;;  %3857 = vmatprep.subr.bf16.mxu1 %v4157_v63  ;;  %v3949_v30 = vld [vmem:[%s6499_s2 + $0x18] sm:$0xff]  }
  0x4f   : > { %788 = vrot.lane.b32.xlu0 %v4611_v27, %s4156_s10  ;;  %v4648_v27 = vsel %vm734_vm3, %v760_v50, %v762_v18  ;;  %v1109_v18 = vrot.slane %v4376_v17, 2 }
  0x50   : > { %v872_v35 = vor.u32 %v871_v22, %v870_v39  ;;  %v768_v39 = vrot.slane %v4405_v38, 1  ;;  %1819 = vmatpush1.bf16.msra.mxu0 %v3948_v16  ;;  %v4680_v50 = vsel %vm1077_vm2, %v1099_v58, %v1103_v45  ;;  %v878_v22 = vrot.slane %v4328_v47, 1 }
  0x51   : > { %1820 = vmatprep.subr.bf16.mxu0 %v4157_v63  ;;  %3873 = vmatpush1.bf16.msra.mxu1 %v3948_v16 }
  0x52   : > { %794 = vrot.lane.b32.xlu1 %v4623_v32, %s4156_s10  ;;  %v4667_v26 = vsel %vm846_vm1, %v868_v44, %v872_v35  ;;  %v874_v32 = vrot.slane %v4343_v55, 1  ;;  %v1106_v44 = vrot.slane %v4325_v46, 3  ;;  %3858 = vmatprep.subr.bf16.mxu1 %v4157_v63 }
  0x53   : > { %792 = vrot.lane.b32.xlu0 %v4638_v62, %s4156_s10  ;;  %v875_v62 = vrot.slane %v4315_v43, 2  ;;  %v1105_v43 = vrot.slane %v4328_v47, 2  ;;  %v3951_v47 = vld [vmem:[%s6499_s2 + $0x10] sm:$0xff]  }
  0x54   : > { %1821 = vmatpush1.bf16.msra.mxu0 %v3949_v30 }
  0x55   : > { %v876_v55 = vor.u32 %v875_v62, %v874_v32  ;;  %v1107_v24 = vor.u32 %v1106_v44, %v1105_v43  ;;  %v879_v32 = vrot.slane %v4325_v46, 2  ;;  %v6553_v62 = vrot.slane %v4414_v49, 1  ;;  %1822 = vmatprep.subr.bf16.mxu0 %v4157_v63  ;;  %3874 = vmatpush1.bf16.msra.mxu1 %v3949_v30 }
  0x56   : > { %798 = vrot.lane.b32.xlu1 %v4648_v27, %s4156_s10  ;;  %v4717_v43 = vor.u32 %v1110_v61, %v1109_v18  ;;  %3859 = vmatprep.subr.bf16.mxu1 %v4157_v63  ;;  %v969_v30 = vrot.slane %v4231_v1, 2  ;;  %v3955_v18 = vld [vmem:[%s6499_s2 + $0x70] sm:$0xff]   ;;  %v6531_v61 = vrot.slane %v4387_v28, 2  ;;  %v3960_v1 = vld [vmem:[%s6499_s2 + $0x48] sm:$0xff]  }
  0x57   : > { %796 = vrot.lane.b32.xlu0 %v4662_v40, %s4156_s10  ;;  %v4695_v58 = vsel %vm846_vm1, %v872_v35, %v876_v55  ;;  %v4701_v54 = vsel %vm734_vm3, %v768_v39, %v6553_v62  ;;  %v4712_v46 = vsel %vm1077_vm2, %v1103_v45, %v1107_v24  ;;  %v880_v16 = vor.u32 %v879_v32, %v878_v22  ;;  %v3952_v45 = vld [vmem:[%s6499_s2 + $0x8] sm:$0xff]   ;;  %v3954_v62 = vld [vmem:[%s6499_s2 + $0x78] sm:$0xff]  }
  0x58   : > { %v4715_v35 = vsel %vm734_vm3, %v766_v60, %v768_v39  ;;  %1823 = vmatpush1.bf16.msra.mxu0 %v3951_v47  ;;  %v4730_v60 = vsel %vm1077_vm2, %v1107_v24, %v4717_v43  ;;  %v967_v39 = vrot.slane %v4228_v0, 2  ;;  %v882_v22 = vrot.slane %v4376_v17, 1 }
  0x59   : > { %v4723_v44 = vsel %vm846_vm1, %v876_v55, %v880_v16  ;;  %1824 = vmatprep.subr.bf16.mxu0 %v4157_v63  ;;  %3875 = vmatpush1.bf16.msra.mxu1 %v3951_v47  ;;  %v3953_v55 = vld [vmem:[%s6499_s2] sm:$0xff]   ;;  %v883_v24 = vrot.slane %v4337_v52, 2  ;;  %v966_v0 = vrot.slane %v4246_v6, 2  ;;  %v902_v52 = vrot.slane %v4419_v51, 1 }
  0x5a   : > { %802 = vrot.lane.b32.xlu1 %v4673_v34, %s4156_s10  ;;  %3860 = vmatprep.subr.bf16.mxu1 %v4157_v63  ;;  %v970_v17 = vsel %vm965_vm4, %v967_v39, %v969_v30  ;;  %v906_v32 = vrot.slane %v4451_v41, 1  ;;  %v907_v6 = vrot.slane %v4422_v53, 2 }
  0x5b   : > { %800 = vrot.lane.b32.xlu0 %v4688_v42, %s4156_s10  ;;  %v968_v47 = vsel %vm965_vm4, %v966_v0, %v967_v39  ;;  %v3957_v39 = vld [vmem:[%s6499_s2 + $0x60] sm:$0xff]  }
  0x5c   : > { %1825 = vmatpush1.bf16.msra.mxu0 %v3952_v45  ;;  %v908_v41 = vor.u32 %v907_v6, %v906_v32  ;;  %v921_v6 = vshrl.u32 %v4584_v14, 16 }
  0x5d   : > { %1826 = vmatprep.subr.bf16.mxu0 %v4157_v63  ;;  %3876 = vmatpush1.bf16.msra.mxu1 %v3952_v45  ;;  %v3956_v45 = vld [vmem:[%s6499_s2 + $0x68] sm:$0xff]  }
  0x5e   : > { %806 = vrot.lane.b32.xlu1 %v4701_v54, %s4156_s10  ;;  %3861 = vmatprep.subr.bf16.mxu1 %v4157_v63 }
  0x5f   : > { %804 = vrot.lane.b32.xlu0 %v4715_v35, %s4156_s10  ;;  %s4159_s10 = smov 16  }
  0x60   : > { %1827 = vmatpush1.bf16.msra.mxu0 %v3953_v55 }
  0x61   : > { %1828 = vmatprep.subr.bf16.mxu0 %v4157_v63  ;;  %3877 = vmatpush1.bf16.msra.mxu1 %v3953_v55 }
  0x62   : > { %812 = vrot.lane.b32.xlu1 %v4500_v7, %s4158_s30  ;;  %v4749_v7 = vor.u32 %v883_v24, %v882_v22  ;;  %3862 = vmatprep.subr.bf16.mxu1 %v4157_v63  ;;  %v3958_v22 = vld [vmem:[%s6499_s2 + $0x58] sm:$0xff]   ;;  %v3959_v24 = vld [vmem:[%s6499_s2 + $0x50] sm:$0xff]  }
  0x63   : > { %810 = vrot.lane.b32.xlu0 %v4484_v2, %s4158_s30  ;;  %v903_v2 = vrot.slane %v4402_v37, 2 }
  0x64   : > { %1829 = vmatpush2.bf16.msra.mxu0 %v3954_v62 }
  0x65   : > { %v4774_v53 = vor.u32 %v903_v2, %v902_v52  ;;  %1830 = vmatprep.subr.bf16.mxu0 %v4157_v63  ;;  %3878 = vmatpush2.bf16.msra.mxu1 %v3954_v62 }
  0x66   : > { %929 = vrot.lane.b32.xlu1 %v4481_v9, %s4159_s10  ;;  %v4766_v9 = vsel %vm846_vm1, %v880_v16, %v4749_v7  ;;  %3863 = vmatprep.subr.bf16.mxu1 %v4157_v63  ;;  %v995_v16 = vrot.slane %v4392_v31, 2 }
  0x67   : > { %814 = vrot.lane.b32.xlu0 %v4497_v10, %s4158_s30  ;;  %v909_v10 = vsel %vm846_vm1, %v4774_v53, %v908_v41 }
  0x68   : > { %1831 = vmatpush2.bf16.msra.mxu0 %v3955_v18  ;;  %v4799_v31 = vsel %vm965_vm4, %v6531_v61, %v995_v16  ;;  %v5058_v61 = vld [vmem:[%s4225_s28 + $0x68] sm:$0xff]  }
  0x69   : > { %1832 = vmatprep.subr.bf16.mxu0 %v4157_v63  ;;  %3879 = vmatpush2.bf16.msra.mxu1 %v3955_v18 }
  0x6a   : > { %1041 = vrot.lane.b32.xlu1 %v970_v17, %s4160_s13  ;;  %3864 = vmatprep.subr.bf16.mxu1 %v4157_v63 }
  0x6b   : > { %1003 = vrot.lane.b32.xlu0 %v968_v47, %s4161_s16  ;;  %v1001_v47 = vrot.slane %v4584_v14, 2 }
  0x6c   : > { %1833 = vmatpush2.bf16.msra.mxu0 %v3956_v45 }
  0x6d   : > { %1834 = vmatprep.subr.bf16.mxu0 %v4157_v63  ;;  %3880 = vmatpush2.bf16.msra.mxu1 %v3956_v45 }
  0x6e   : > { %838 = vrot.lane.b32.xlu1 %v4673_v34, %s4158_s30  ;;  %v997_v34 = vrot.slane %v4405_v38, 2  ;;  %3865 = vmatprep.subr.bf16.mxu1 %v4157_v63 }
  0x6f   : > { %1158 = vrot.lane.b32.xlu0 %v4492_v15, %s4162_s19  ;;  %v971_v15 = vrot.slane %v4256_v12, 2 }
  0x70   : > { %v998_v55 = vsel %vm965_vm4, %v995_v16, %v997_v34  ;;  %1835 = vmatpush2.bf16.msra.mxu0 %v3957_v39 }
  0x71   : > { %1836 = vmatprep.subr.bf16.mxu0 %v4157_v63  ;;  %v972_v12 = vsel %vm965_vm4, %v969_v30, %v971_v15  ;;  %3881 = vmatpush2.bf16.msra.mxu1 %v3957_v39  ;;  %v3961_v30 = vld [vmem:[%s6499_s2 + $0x40] sm:$0xff]   ;;  %v923_v39 = vrot.slane %v921_v6, 1 }
  0x72   : > { %957 = vrot.lane.b32.xlu1 %v909_v10, %s4159_s10  ;;  %3866 = vmatprep.subr.bf16.mxu1 %v4157_v63 }
  0x73   : > { %931 = vrot.lane.b32.xlu0 %v4507_v20, %s4159_s10  ;;  %v1140_v20 = vsel %vm1077_vm2, %v4511_v59, %v4523_v4  ;;  %v973_v4 = vrot.slane %v4259_v13, 2 }
  0x74   : > { %1837 = vmatpush2.bf16.msra.mxu0 %v3958_v22 }
  0x75   : > { %1838 = vmatprep.subr.bf16.mxu0 %v4157_v63  ;;  %3882 = vmatpush2.bf16.msra.mxu1 %v3958_v22  ;;  %v974_v13 = vsel %vm965_vm4, %v971_v15, %v973_v4  ;;  %v3962_v22 = vld [vmem:[%s6499_s2 + $0xa0] ss:$0 sps:$4 sm:$0x33]  }
  0x76   : > { %1031 = vrot.lane.b32.xlu1 %v4799_v31, %s4161_s16  ;;  %3867 = vmatprep.subr.bf16.mxu1 %v4157_v63 }
  0x77   : > { %1005 = vrot.lane.b32.xlu0 %v970_v17, %s4161_s16 }
  0x78   : > { %1839 = vmatpush2.bf16.msra.mxu0 %v3959_v24 }
  0x79   : > { %1840 = vmatprep.subr.bf16.mxu0 %v4157_v63  ;;  %3883 = vmatpush2.bf16.msra.mxu1 %v3959_v24 }
  0x7a   : > { %1069 = vrot.lane.b32.xlu1 %v998_v55, %s4160_s13  ;;  %3868 = vmatprep.subr.bf16.mxu1 %v4157_v63 }
  0x7b   : > { %1043 = vrot.lane.b32.xlu0 %v972_v12, %s4160_s13 }
  0x7c   : > { %1841 = vmatpush2.bf16.msra.mxu0 %v3960_v1 }
  0x7d   : > { %1842 = vmatprep.subr.bf16.mxu0 %v4157_v63  ;;  %3884 = vmatpush2.bf16.msra.mxu1 %v3960_v1 }
  0x7e   : > { %1186 = vrot.lane.b32.xlu1 %v1140_v20, %s4162_s19  ;;  %3869 = vmatprep.subr.bf16.mxu1 %v4157_v63  ;;  %v4923_v20 = vld [vmem:[%s4397_s9 + $0x10] sm:$0xff]  }
  0x7f   : > { %1160 = vrot.lane.b32.xlu0 %v4538_v29, %s4162_s19  ;;  %v913_v29 = vsel %vm846_vm1, %v908_v41, %v4529_v21 }
  0x80   : > { %1843 = vmatpush2.bf16.msra.mxu0 %v3961_v30 }
  0x81   : > { %3885 = vmatpush2.bf16.msra.mxu1 %v3961_v30 }
  0x82   : > { %933 = vrot.lane.b32.xlu1 %v4544_v11, %s4159_s10  ;;  %v999_v11 = vrot.slane %v4414_v49, 2  ;;  %3886 = vmatprep.subr.msk.bf16.mxu1 %vm1808_vm5, %v3962_v22 }
  0x83   : > { %840 = vrot.lane.b32.xlu0 %v4715_v35, %s4158_s30 }
  0x84   : > { %v1000_v21 = vsel %vm965_vm4, %v997_v34, %v999_v11  ;;  %v1002_v16 = vsel %vm965_vm4, %v999_v11, %v1001_v47 }
  0x86   : > { %1007 = vrot.lane.b32.xlu1 %v972_v12, %s4161_s16 }
  0x87   : > { %959 = vrot.lane.b32.xlu0 %v913_v29, %s4159_s10  ;;  %v1150_v29 = vshrl.u32 %v4923_v20, 16 }
  0x8a   : > { %1045 = vrot.lane.b32.xlu1 %v974_v13, %s4160_s13 }
  0x8b   : > { %1033 = vrot.lane.b32.xlu0 %v998_v55, %s4161_s16 }
  0x8c   : > { %v4858_v35 = vpop.permute.xlu1 %702 }
  0x8d   : > { %v4861_v0 = vpop.permute.xlu0 %698 }
  0x8e   : > { %1162 = vrot.lane.b32.xlu1 %v4555_v36, %s4162_s19  ;;  %v6554_v36 = vld [vmem:[#allocation2_spill] sm:$0xff] }
  0x8f   : > { %1071 = vrot.lane.b32.xlu0 %v1000_v21, %s4160_s13  ;;  %v975_v2 = vrot.slane %v6554_v36, 2  ;;  %v1152_v36 = vrot.slane %v1150_v29, 2  ;;  %v4982_v29 = vld [vmem:[%s4225_s28 + $0x38] sm:$0xff]  }
  0x90   : > { %v4866_v63 = vpop.permute.xlu1 %704 }
  0x91   : > { %v4868_v17 = vpop.permute.xlu0 %700 }
  0x92   : > { %816 = vrot.lane.b32.xlu1 %v4535_v8, %s4158_s30  ;;  %v924_v8 = vshll.u32 %v4584_v14, 16 }
  0x93   : > { %1188 = vrot.lane.b32.xlu0 %v4578_v33, %s4162_s19  ;;  %v976_v33 = vsel %vm965_vm4, %v973_v4, %v975_v2 }
  0x94   : > { %v4874_v49 = vpop.permute.xlu1 %708  ;;  %v1146_v41 = vrot.slane %v924_v8, 3  ;;  %v926_v15 = vrot.slane %v924_v8, 2 }
  0x95   : > { %v4876_v52 = vpop.permute.xlu0 %706 }
  0x96   : > { %935 = vrot.lane.b32.xlu1 %v4581_v3, %s4159_s10  ;;  %v927_v12 = vor.u32 %v926_v15, %v923_v39 }
  0x97   : > { %842 = vrot.lane.b32.xlu0 %v4701_v54, %s4158_s30  ;;  %v1145_v54 = vrot.slane %v921_v6, 2 }
  0x98   : > { %v4883_v32 = vpop.permute.xlu1 %712  ;;  %v928_v30 = vsel %vm846_vm1, %v4570_v19, %v927_v12 }
  0x99   : > { %v4887_v62 = vpop.permute.xlu0 %710  ;;  %v1147_v45 = vor.u32 %v1146_v41, %v1145_v54  ;;  %v6556_v41 = vld [vmem:[#allocation18_spill] sm:$0xff] }
  0x9a   : > { %1009 = vrot.lane.b32.xlu1 %v974_v13, %s4161_s16  ;;  %v1153_v13 = vshll.u32 %v4923_v20, 16 }
  0x9b   : > { %961 = vrot.lane.b32.xlu0 %v4594_v48, %s4159_s10  ;;  %v1148_v48 = vsel %vm1077_vm2, %v4563_v23, %v1147_v45  ;;  %v4925_v23 = vsel %vm1808_vm5, %v3962_v22, 0  ;;  %v4971_v22 = vld [vmem:[%s4225_s28 + $0x20] sm:$0xff]  }
  0x9c   : > { %v4893_v3 = vpop.permute.xlu1 %716  ;;  %v1155_v6 = vrot.slane %v1153_v13, 3  ;;  %v1278_v12 = vsel %vm1268_vm6, %v4971_v22, %v4876_v52 }
  0x9d   : > { %v4896_v18 = vpop.permute.xlu0 %714 }
  0x9e   : > { %1047 = vrot.lane.b32.xlu1 %v976_v33, %s4160_s13 }
  0x9f   : > { %1035 = vrot.lane.b32.xlu0 %v1000_v21, %s4161_s16 }
  0xa0   : > { %v4900_v10 = vpop.permute.xlu1 %720 }
  0xa1   : > { %v4903_v34 = vpop.permute.xlu0 %718 }
  0xa2   : > { %1164 = vrot.lane.b32.xlu1 %v4605_v56, %s4162_s19 }
  0xa3   : > { %1073 = vrot.lane.b32.xlu0 %v1002_v16, %s4160_s13 }
  0xa4   : > { %v4908_v14 = vpop.permute.xlu1 %724 }
  0xa5   : > { %v4912_v55 = vpop.permute.xlu0 %722 }
  0xa6   : > { %818 = vrot.lane.b32.xlu1 %v4527_v25, %s4158_s30  ;;  %v6555_v25 = vld [vmem:[#allocation3_spill] sm:$0xff] }
  0xa7   : > { %1190 = vrot.lane.b32.xlu0 %v1148_v48, %s4162_s19  ;;  %v977_v1 = vrot.slane %v6555_v25, 2  ;;  %v4960_v48 = vld [vmem:[%s4225_s28 + $0x28] sm:$0xff]  }
  0xa8   : > { %v4920_v56 = vpop.permute.xlu1 %728  ;;  %v1280_v39 = vsel %vm1268_vm6, %v4960_v48, %v4874_v49  ;;  %v6557_v49 = vld [vmem:[#allocation13_spill] sm:$0xff] }
  0xa9   : > { %v4927_v24 = vpop.permute.xlu0 %726 }
  0xaa   : > { %937 = vrot.lane.b32.xlu1 %v4634_v5, %s4159_s10  ;;  %v978_v5 = vsel %vm965_vm4, %v975_v2, %v977_v1  ;;  %v1156_v2 = vor.u32 %v1155_v6, %v1152_v36  ;;  %v4996_v6 = vld [vmem:[%s4225_s28 + $0x30] sm:$0xff]  }
  0xab   : > { %844 = vrot.lane.b32.xlu0 %v4618_v57, %s4158_s30  ;;  %v1039_v57 = vrot.slane %v4923_v20, 2 }
  0xac   : > { %v4934_v4 = vpop.permute.xlu1 %732  ;;  %v1157_v15 = vsel %vm1077_vm2, %v1147_v45, %v1156_v2  ;;  %v1284_v45 = vsel %vm1268_vm6, %v4982_v29, %v4883_v32 }
  0xad   : > { %v4940_v11 = vpop.permute.xlu0 %730 }
  0xae   : > { %1011 = vrot.lane.b32.xlu1 %v976_v33, %s4161_s16  ;;  %v1040_v33 = vsel %vm965_vm4, %v1001_v47, %v1039_v57  ;;  %v4992_v57 = vld [vmem:[%s4225_s28 + $0x40] sm:$0xff]  }
  0xaf   : > { %963 = vrot.lane.b32.xlu0 %v928_v30, %s4159_s10  ;;  %v979_v36 = vrot.slane %v4992_v57, 2 }
  0xb0   : > { %v4945_v21 = vpop.permute.xlu1 %774 }
  0xb1   : > { %v4948_v19 = vpop.permute.xlu0 %772 }
  0xb2   : > { %1049 = vrot.lane.b32.xlu1 %v978_v5, %s4160_s13 }
  0xb3   : > { %1037 = vrot.lane.b32.xlu0 %v1002_v16, %s4161_s16 }
  0xb4   : > { %v4952_v8 = vpop.permute.xlu1 %778 }
  0xb5   : > { %v4955_v54 = vpop.permute.xlu0 %776 }
  0xb6   : > { %1166 = vrot.lane.b32.xlu1 %v6556_v41, %s4162_s19  ;;  %v5006_v41 = vld [vmem:[%s4225_s28 + $0x18] sm:$0xff]  }
  0xb7   : > { %1075 = vrot.lane.b32.xlu0 %v1040_v33, %s4160_s13  ;;  %v1282_v33 = vsel %vm1268_vm6, %v4996_v6, %v4887_v62 }
  0xb8   : > { %v783_v47 = vpop.permute.xlu1 %782 }
  0xb9   : > { %v4967_v16 = vsel %vm1305_vm7, %v1280_v39, %v783_v47  ;;  %v781_v25 = vpop.permute.xlu0 %780  ;;  %v1196_v39 = vrot.slane %v5006_v41, 3  ;;  %v1198_v47 = vrot.slane %v4971_v22, 3 }
  0xba   : > { %820 = vrot.lane.b32.xlu1 %v6557_v49, %s4158_s30  ;;  %v4979_v30 = vsel %vm1305_vm7, %v1278_v12, %v781_v25  ;;  %v980_v25 = vsel %vm965_vm4, %v977_v1, %v979_v36  ;;  %v5023_v49 = vld [vmem:[%s4225_s28 + $0x10] sm:$0xff]  }
  0xbb   : > { %1192 = vrot.lane.b32.xlu0 %v1157_v15, %s4162_s19  ;;  %v5011_v15 = vld [vmem:[%s4225_s28 + $0x48] sm:$0xff]   ;;  %v1195_v22 = vrot.slane %v5023_v49, 3 }
  0xbc   : > { %v787_v13 = vpop.permute.xlu1 %786  ;;  %v1288_v12 = vsel %vm1268_vm6, %v5011_v15, %v4893_v3 }
  0xbd   : > { %v4989_v52 = vsel %vm1305_vm7, %v1284_v45, %v787_v13  ;;  %v785_v2 = vpop.permute.xlu0 %784  ;;  %v1286_v45 = vsel %vm1268_vm6, %v4992_v57, %v4896_v18  ;;  %v1199_v13 = vsel %vm1194_vm8, %v1196_v39, %v1198_v47 }
  0xbe   : > { %1013 = vrot.lane.b32.xlu1 %v978_v5, %s4161_s16  ;;  %v5003_v32 = vsel %vm1305_vm7, %v1282_v33, %v785_v2  ;;  %v5036_v33 = vld [vmem:[%s4225_s28 + $0x58] sm:$0xff]  }
  0xbf   : > { %939 = vrot.lane.b32.xlu0 %v4667_v26, %s4159_s10  ;;  %v1292_v1 = vsel %vm1268_vm6, %v5036_v33, %v4900_v10 }
  0xc0   : > { %v791_v62 = vpop.permute.xlu1 %790 }
  0xc1   : > { %v5019_v5 = vsel %vm1305_vm7, %v1288_v12, %v791_v62  ;;  %v789_v3 = vpop.permute.xlu0 %788  ;;  %v5047_v12 = vld [vmem:[%s4225_s28 + $0x50] sm:$0xff]  }
  0xc2   : > { %6558 = vst [vmem:[#allocation2_spill] sm:$0xff] %v5019_v5  ;;  %1168 = vrot.lane.b32.xlu1 %v4680_v50, %s4162_s19  ;;  %v5032_v26 = vsel %vm1305_vm7, %v1286_v45, %v789_v3  ;;  %v1197_v50 = vsel %vm1194_vm8, %v1195_v22, %v1196_v39  ;;  %v1290_v62 = vsel %vm1268_vm6, %v5047_v12, %v4903_v34  ;;  %v981_v3 = vrot.slane %v5011_v15, 2 }
  0xc3   : > { %6559 = vst [vmem:[#allocation3_spill] sm:$0xff] %v5032_v26  ;;  %1051 = vrot.lane.b32.xlu0 %v980_v25, %s4160_s13  ;;  %v1296_v39 = vsel %vm1268_vm6, %v5058_v61, %v4908_v14 }
  0xc4   : > { %v795_v18 = vpop.permute.xlu1 %794  ;;  %v982_v14 = vsel %vm965_vm4, %v979_v36, %v981_v3 }
  0xc5   : > { %v5043_v2 = vsel %vm1305_vm7, %v1292_v1, %v795_v18  ;;  %v793_v45 = vpop.permute.xlu0 %792  ;;  %v5068_v1 = vld [vmem:[%s4225_s28 + $0x60] sm:$0xff]  }
  0xc6   : > { %6560 = vst [vmem:[#allocation18_spill] sm:$0xff] %v5043_v2  ;;  %1234 = vrot.lane.b32.xlu1 %v1199_v13, %s4163_s18  ;;  %v5054_v10 = vsel %vm1305_vm7, %v1290_v62, %v793_v45  ;;  %v1294_v13 = vsel %vm1268_vm6, %v5068_v1, %v4912_v55  ;;  %v6564_v45 = vld [vmem:[#allocation12_spill] sm:$0xff] }
  0xc7   : > { %6561 = vst [vmem:[#allocation13_spill] sm:$0xff] %v5054_v10  ;;  %1232 = vrot.lane.b32.xlu0 %v1197_v50, %s4163_s18  ;;  %v1200_v50 = vrot.slane %v4960_v48, 3 }
  0xc8   : > { %v799_v22 = vpop.permute.xlu1 %798 }
  0xc9   : > { %v5065_v34 = vsel %vm1305_vm7, %v1296_v39, %v799_v22  ;;  %v797_v18 = vpop.permute.xlu0 %796  ;;  %v1201_v55 = vsel %vm1194_vm8, %v1198_v47, %v1200_v50 }
  0xca   : > { %6562 = vst [vmem:[#allocation19_spill] sm:$0xff] %v5065_v34  ;;  %941 = vrot.lane.b32.xlu1 %v4695_v58, %s4159_s10  ;;  %v5076_v62 = vsel %vm1305_vm7, %v1294_v13, %v797_v18  ;;  %v1304_v58 = vsel %vm1268_vm6, %v4405_v38, %v4934_v4  ;;  %v1202_v13 = vrot.slane %v4996_v6, 3  ;;  %v6565_v4 = vld [vmem:[#allocation15_spill] sm:$0xff]  ;;  %v983_v6 = vrot.slane %v5047_v12, 2  ;;  %v4123_v34 = vld [vmem:[%s4225_s28] sm:$0xff]  }
  0xcb   : > { %6563 = vst [vmem:[#allocation20_spill] sm:$0xff] %v5076_v62  ;;  %822 = vrot.lane.b32.xlu0 %v6564_v45, %s4158_s30  ;;  %v6532_v62 = vrot.slane %v5036_v33, 2 }
  0xcc   : > { %v5082_v39 = vpop.permute.xlu1 %802  ;;  %v1203_v45 = vsel %vm1194_vm8, %v1200_v50, %v1202_v13 }
  0xcd   : > { %v5084_v22 = vpop.permute.xlu0 %800 }
  0xce   : > { %1053 = vrot.lane.b32.xlu1 %v982_v14, %s4160_s13 }
  0xcf   : > { %1015 = vrot.lane.b32.xlu0 %v980_v25, %s4161_s16 }
  0xd0   : > { %v807_v36 = vpop.permute.xlu1 %806 }
  0xd1   : > { %v5093_v48 = vsel %vm1305_vm7, %v1304_v58, %v807_v36  ;;  %v5096_v18 = vpop.permute.xlu0 %804  ;;  %v984_v36 = vsel %vm965_vm4, %v981_v3, %v983_v6  ;;  %v1270_v3 = vsel %vm1268_vm6, %v4123_v34, %v4861_v0  ;;  %v6566_v34 = vld [vmem:[#allocation5_spill] sm:$0xff] }
  0xd2   : > { %1236 = vrot.lane.b32.xlu1 %v1201_v55, %s4163_s18  ;;  %v1206_v55 = vrot.slane %v4992_v57, 3 }
  0xd3   : > { %1170 = vrot.lane.b32.xlu0 %v4712_v46, %s4162_s19  ;;  %v1204_v46 = vrot.slane %v4982_v29, 3 }
  0xd4   : > { %v5101_v47 = vpop.permute.xlu1 %812 }
  0xd5   : > { %v811_v38 = vpop.permute.xlu0 %810  ;;  %v1207_v29 = vsel %vm1194_vm8, %v1204_v46, %v1206_v55 }
  0xd6   : > { %824 = vrot.lane.b32.xlu1 %v6565_v4, %s4158_s30 }
  0xd7   : > { %1238 = vrot.lane.b32.xlu0 %v1203_v45, %s4163_s18 }
  0xd8   : > { %v930_v25 = vpop.permute.xlu1 %929 }
  0xd9   : > { %v5108_v58 = vpop.permute.xlu0 %814  ;;  %v1399_v45 = vsel %vm1397_vm9, %v811_v38, %v930_v25 }
  0xda   : > { %1017 = vrot.lane.b32.xlu1 %v982_v14, %s4161_s16 }
  0xdb   : > { %943 = vrot.lane.b32.xlu0 %v4723_v44, %s4159_s10  ;;  %v1205_v44 = vsel %vm1194_vm8, %v1202_v13, %v1204_v46  ;;  %v1113_v46 = vrot.slane %v6566_v34, 2 }
  0xdc   : > { %v1042_v50 = vpop.permute.xlu1 %1041 }
  0xdd   : > { %v1004_v4 = vpop.permute.xlu0 %1003 }
  0xde   : > { %1172 = vrot.lane.b32.xlu1 %v4730_v60, %s4162_s19  ;;  %v1436_v14 = vsel %vm1434_vm10, %v1399_v45, %v1004_v4  ;;  %v1307_v45 = vsel %vm1305_vm7, %v1270_v3, %v4948_v19  ;;  %v986_v19 = vsel %vm965_vm4, %v983_v6, %v6532_v62  ;;  %v886_v6 = vrot.slane %v6566_v34, 1 }
  0xdf   : > { %1055 = vrot.lane.b32.xlu0 %v984_v36, %s4160_s13  ;;  %v1473_v60 = vsel %vm1471_vm11, %v1436_v14, %v1042_v50  ;;  %v1344_v13 = vsel %vm1342_vm13, %v1307_v45, %v811_v38  ;;  %v1208_v14 = vrot.slane %v5011_v15, 3 }
  0xe0   : > { %v839_v57 = vpop.permute.xlu1 %838 }
  0xe1   : > { %v5126_v25 = vpop.permute.xlu0 %1158  ;;  %v1209_v45 = vsel %vm1194_vm8, %v1206_v55, %v1208_v14 }
  0xe2   : > { %1242 = vrot.lane.b32.xlu1 %v1207_v29, %s4163_s18  ;;  %v1510_v4 = vsel %vm1508_vm12, %v1473_v60, %v5126_v25  ;;  %v6567_v29 = vld [vmem:[#allocation4_spill] sm:$0xff] }
  0xe3   : > { %1240 = vrot.lane.b32.xlu0 %v1205_v44, %s4163_s18  ;;  %1844 = vmatprep.mubr.bf16.mxu0 %v1510_v4  ;;  %v1114_v2 = vrot.slane %v6567_v29, 3  ;;  %v6568_v44 = vld [vmem:[#allocation14_spill] sm:$0xff]  ;;  %v6533_v4 = vrot.slane %v5047_v12, 3  ;;  %v887_v15 = vrot.slane %v6567_v29, 2  ;;  %v5164_v29 = vld [vmem:[%s4225_s28 + $0x70] sm:$0xff]  }
  0xe4   : > { %v958_v0 = vpop.permute.xlu1 %957  ;;  %1845 = vmatmul.mubr.bf16.vlgmr.msra.gmra.mxu0 %v1344_v13 }
  0xe5   : > { %v932_v50 = vpop.permute.xlu0 %931  ;;  %v1115_v3 = vor.u32 %v1114_v2, %v1113_v46  ;;  %v6570_v46 = vld [vmem:[#allocation6_spill] sm:$0xff]  ;;  %v1427_v10 = vsel %vm1397_vm9, %v839_v57, %v958_v0  ;;  %v1211_v34 = vsel %vm1194_vm8, %v1208_v14, %v6533_v4 }
  0xe6   : > { %945 = vrot.lane.b32.xlu1 %v4766_v9, %s4159_s10  ;;  %v1118_v62 = vrot.slane %v6570_v46, 3  ;;  %v1401_v5 = vsel %vm1397_vm9, %v5101_v47, %v932_v50 }
  0xe7   : > { %826 = vrot.lane.b32.xlu0 %v6568_v44, %s4158_s30  ;;  %v1116_v13 = vsel %vm1077_vm2, %v4717_v43, %v1115_v3  ;;  %v6569_v44 = vld [vmem:[#allocation10_spill] sm:$0xff]  ;;  %v1298_v43 = vsel %vm1268_vm6, %v5164_v29, %v4927_v24  ;;  %v4125_v24 = vld [vmem:[%s4225_s28 + $0x8] sm:$0xff]  }
  0xe8   : > { %v1032_v38 = vpop.permute.xlu1 %1031  ;;  %v1117_v2 = vrot.slane %v6569_v44, 2  ;;  %v1272_v50 = vsel %vm1268_vm6, %v4125_v24, %v4868_v17 }
  0xe9   : > { %v1006_v60 = vpop.permute.xlu0 %1005 }
  0xea   : > { %1057 = vrot.lane.b32.xlu1 %v986_v19, %s4160_s13  ;;  %v1438_v14 = vsel %vm1434_vm10, %v1401_v5, %v1006_v60  ;;  %v5180_v26 = vor.u32 %v1118_v62, %v1117_v2  ;;  %v3963_v5 = vld [vmem:[%s6499_s2 + $0x98] sm:$0xff]   ;;  %v1309_v62 = vsel %vm1305_vm7, %v1272_v50, %v4945_v21 }
  0xeb   : > { %1019 = vrot.lane.b32.xlu0 %v984_v36, %s4161_s16  ;;  %v1464_v36 = vsel %vm1434_vm10, %v1427_v10, %v1032_v38  ;;  %v888_v10 = vor.u32 %v887_v15, %v886_v6  ;;  %v1335_v38 = vsel %vm1305_vm7, %v1298_v43, %v5084_v22  ;;  %v6571_v6 = vld [vmem:[#allocation17_spill] sm:$0xff]  ;;  %v1347_v60 = vsel %vm1342_vm13, %v1309_v62, %v5101_v47  ;;  %v3964_v47 = vld [vmem:[%s6499_s2 + $0x90] sm:$0xff]  }
  0xec   : > { %v1070_v9 = vpop.permute.xlu1 %1069  ;;  %v1386_v22 = vsel %vm1342_vm13, %v1335_v38, %v839_v57  ;;  %v987_v15 = vrot.slane %v5068_v1, 2  ;;  %v1120_v2 = vsel %vm1077_vm2, %v1115_v3, %v5180_v26 }
  0xed   : > { %v1044_v55 = vpop.permute.xlu0 %1043  ;;  %v1501_v0 = vsel %vm1471_vm11, %v1464_v36, %v1070_v9  ;;  %v889_v57 = vsel %vm846_vm1, %v4749_v7, %v888_v10  ;;  %v1214_v7 = vrot.slane %v5068_v1, 3  ;;  %v890_v36 = vrot.slane %v6569_v44, 1  ;;  %v3965_v1 = vld [vmem:[%s6499_s2 + $0x88] sm:$0xff]  }
  0xee   : > { %1244 = vrot.lane.b32.xlu1 %v1209_v45, %s4163_s18  ;;  %v1475_v9 = vsel %vm1471_vm11, %v1438_v14, %v1044_v55  ;;  %v1212_v55 = vrot.slane %v5036_v33, 3 }
  0xef   : > { %1174 = vrot.lane.b32.xlu0 %v1116_v13, %s4162_s19 }
  0xf0   : > { %v5173_v45 = vpop.permute.xlu1 %1186  ;;  %v1215_v44 = vsel %vm1194_vm8, %v1212_v55, %v1214_v7 }
  0xf1   : > { %v1552_v4 = vsel %vm1508_vm12, %v1501_v0, %v5173_v45  ;;  %v5186_v13 = vpop.permute.xlu0 %1160 }
  0xf2   : > { %828 = vrot.lane.b32.xlu1 %v6571_v6, %s4158_s30  ;;  %1956 = vmatprep.mubr.bf16.mxu1 %v1552_v4  ;;  %v1513_v17 = vsel %vm1508_vm12, %v1475_v9, %v5186_v13  ;;  %v989_v6 = vrot.slane %v5058_v61, 2 }
  0xf3   : > { %1957 = vmatmul.mubr.bf16.vlgmr.msra.gmra.mxu1 %v1386_v22  ;;  %1246 = vrot.lane.b32.xlu0 %v1211_v34, %s4163_s18  ;;  %v1274_v22 = vsel %vm1268_vm6, %v5023_v49, %v4858_v35  ;;  %v1216_v49 = vrot.slane %v5058_v61, 3 }
  0xf4   : > { %1852 = vmatprep.mubr.bf16.mxu0 %v1513_v17  ;;  %v934_v4 = vpop.permute.xlu1 %933  ;;  %3809 = vmatpush3.bf16.msra.mxu1 %v4925_v23  ;;  %v891_v23 = vrot.slane %v6570_v46, 2  ;;  %v1311_v17 = vsel %vm1305_vm7, %v1274_v22, %v4955_v54  ;;  %v5262_v54 = vsel %vm965_vm4, %v987_v15, %v989_v6 }
  0xf5   : > { %1853 = vmatmul.mubr.bf16.gmra.mxu0 %v1347_v60  ;;  %v5205_v21 = vpop.permute.xlu0 %840  ;;  %3810 = vmatprep.subr.bf16.mxu1 %v3963_v5  ;;  %v1403_v14 = vsel %vm1397_vm9, %v5108_v58, %v934_v4  ;;  %v6574_v60 = vld [vmem:[#allocation8_spill] sm:$0xff]  ;;  %v1350_v35 = vsel %vm1342_vm13, %v1311_v17, %v5108_v58  ;;  %v6577_v58 = vld [vmem:[#allocation11_spill] sm:$0xff] }
  0xf6   : > { %1021 = vrot.lane.b32.xlu1 %v986_v19, %s4161_s16  ;;  %v6572_v19 = vrot.slane %v5036_v33, 2  ;;  %v5226_v0 = vor.u32 %v891_v23, %v890_v36  ;;  %v6573_v33 = vrot.slane %v5047_v12, 3  ;;  %v3966_v12 = vld [vmem:[%s6499_s2 + $0x80] sm:$0xff]   ;;  %v1121_v4 = vrot.slane %v6574_v60, 2  ;;  %v6576_v36 = vld [vmem:[#allocation16_spill] sm:$0xff] }
  0xf7   : > { %947 = vrot.lane.b32.xlu0 %v889_v57, %s4159_s10  ;;  %v6575_v57 = vld [vmem:[#allocation7_spill] sm:$0xff] }
  0xf8   : > { %v1008_v34 = vpop.permute.xlu1 %1007  ;;  %v988_v3 = vsel %vm965_vm4, %v6572_v19, %v987_v15  ;;  %3811 = vmatpush3.bf16.msra.mxu1 %v3963_v5  ;;  %v1213_v38 = vsel %vm1194_vm8, %v6573_v33, %v1212_v55  ;;  %v893_v9 = vsel %vm846_vm1, %v888_v10, %v5226_v0  ;;  %v5272_v33 = vld [vmem:[%s4225_s28 + $0x78] sm:$0xff]  }
  0xf9   : > { %v960_v43 = vpop.permute.xlu0 %959  ;;  %3812 = vmatprep.subr.bf16.mxu1 %v3964_v47  ;;  %v1440_v50 = vsel %vm1434_vm10, %v1403_v14, %v1008_v34  ;;  %v1300_v15 = vsel %vm1268_vm6, %v5272_v33, %v4920_v56  ;;  %v1217_v14 = vsel %vm1194_vm8, %v1214_v7, %v1216_v49  ;;  %v895_v56 = vrot.slane %v6575_v57, 2 }
  0xfa   : > { %1176 = vrot.lane.b32.xlu1 %v1120_v2, %s4162_s19  ;;  %v1122_v2 = vrot.slane %v6575_v57, 3  ;;  %v1429_v55 = vsel %vm1397_vm9, %v5205_v21, %v960_v43 }
  0xfb   : > { %1059 = vrot.lane.b32.xlu0 %v988_v3, %s4160_s13 }
  0xfc   : > { %v1046_v46 = vpop.permute.xlu1 %1045  ;;  %3813 = vmatpush3.bf16.msra.mxu1 %v3964_v47  ;;  %v1123_v19 = vor.u32 %v1122_v2, %v1121_v4 }
  0xfd   : > { %v1034_v24 = vpop.permute.xlu0 %1033  ;;  %3814 = vmatprep.subr.bf16.mxu1 %v3965_v1  ;;  %v1477_v5 = vsel %vm1471_vm11, %v1440_v50, %v1046_v46  ;;  %v1337_v50 = vsel %vm1305_vm7, %v1300_v15, %v5082_v39 }
  0xfe   : > { %1250 = vrot.lane.b32.xlu1 %v1215_v44, %s4163_s18  ;;  %v1466_v34 = vsel %vm1434_vm10, %v1429_v55, %v1034_v24  ;;  %v6578_v44 = vld [vmem:[#allocation9_spill] sm:$0xff]  ;;  %v1218_v24 = vrot.slane %v5164_v29, 3  ;;  %v1389_v22 = vsel %vm1342_vm13, %v1337_v50, %v5205_v21  ;;  %v1124_v7 = vsel %vm1077_vm2, %v5180_v26, %v1123_v19 }
  0xff   : > { %1248 = vrot.lane.b32.xlu0 %v1213_v38, %s4163_s18  ;;  %v1126_v46 = vrot.slane %v6578_v44, 3  ;;  %v991_v26 = vrot.slane %v5164_v29, 2  ;;  %v1220_v29 = vrot.slane %v5272_v33, 3  ;;  %v898_v33 = vrot.slane %v6577_v58, 1 }
 0x100   : > { %v5247_v62 = vpop.permute.xlu1 %1162  ;;  %3815 = vmatpush3.bf16.msra.mxu1 %v3965_v1  ;;  %v1125_v1 = vrot.slane %v6577_v58, 2  ;;  %v899_v15 = vrot.slane %v6578_v44, 2 }
 0x101   : > { %v1516_v10 = vsel %vm1508_vm12, %v1477_v5, %v5247_v62  ;;  %v1072_v47 = vpop.permute.xlu0 %1071  ;;  %3816 = vmatprep.subr.bf16.mxu1 %v3966_v12 }
 0x102   : > { %949 = vrot.lane.b32.xlu1 %v893_v9, %s4159_s10  ;;  %1860 = vmatprep.mubr.bf16.mxu0 %v1516_v10  ;;  %v1503_v43 = vsel %vm1471_vm11, %v1466_v34, %v1072_v47  ;;  %v1127_v17 = vor.u32 %v1126_v46, %v1125_v1  ;;  %v1219_v10 = vsel %vm1194_vm8, %v1216_v49, %v1218_v24  ;;  %v1129_v47 = vrot.slane %v4419_v51, 2  ;;  %v4127_v46 = vld [vmem:[%s4225_s28 + $0x80] sm:$0xff]  }
 0x103   : > { %1861 = vmatmul.mubr.bf16.gmra.mxu0 %v1350_v35  ;;  %830 = vrot.lane.b32.xlu0 %v6576_v36, %s4158_s30  ;;  %v1130_v35 = vrot.slane %v4402_v37, 3  ;;  %v1276_v51 = vsel %vm1268_vm6, %v5006_v41, %v4866_v63  ;;  %v1221_v41 = vsel %vm1194_vm8, %v1218_v24, %v1220_v29 }
 0x104   : > { %v817_v23 = vpop.permute.xlu1 %816  ;;  %3817 = vmatpush3.bf16.msra.mxu1 %v3966_v12  ;;  %v894_v12 = vrot.slane %v6574_v60, 1 }
 0x105   : > { %v5278_v38 = vpop.permute.xlu0 %1188 }
 0x106   : > { %1061 = vrot.lane.b32.xlu1 %v5262_v54, %s4160_s13  ;;  %v1555_v9 = vsel %vm1508_vm12, %v1503_v43, %v5278_v38  ;;  %v896_v60 = vor.u32 %v895_v56, %v894_v12  ;;  %v900_v12 = vor.u32 %v899_v15, %v898_v33 }
 0x107   : > { %1023 = vrot.lane.b32.xlu0 %v988_v3, %s4161_s16  ;;  %1964 = vmatprep.mubr.bf16.mxu1 %v1555_v9  ;;  %v1128_v3 = vsel %vm1077_vm2, %v1123_v19, %v1127_v17  ;;  %v1313_v19 = vsel %vm1305_vm7, %v1276_v51, %v4952_v8 }
 0x108   : > { %v936_v5 = vpop.permute.xlu1 %935  ;;  %1965 = vmatmul.mubr.bf16.gmra.mxu1 %v1389_v22  ;;  %v897_v21 = vsel %vm846_vm1, %v5226_v0, %v896_v60  ;;  %v992_v0 = vsel %vm965_vm4, %v989_v6, %v991_v26  ;;  %v1131_v6 = vor.u32 %v1130_v35, %v1129_v47  ;;  %v1353_v63 = vsel %vm1342_vm13, %v1313_v19, %v817_v23 }
 0x109   : > { %v843_v39 = vpop.permute.xlu0 %842  ;;  %v1405_v49 = vsel %vm1397_vm9, %v817_v23, %v936_v5  ;;  %v1302_v23 = vsel %vm1268_vm6, %v4127_v46, %v4940_v11 }
 0x10a   : > { %1252 = vrot.lane.b32.xlu1 %v1217_v14, %s4163_s18  ;;  %v1132_v50 = vsel %vm1077_vm2, %v1127_v17, %v1131_v6  ;;  %v1339_v58 = vsel %vm1305_vm7, %v1302_v23, %v5096_v18  ;;  %v1136_v22 = vsel %vm1077_vm2, %v1131_v6, %v4511_v59  ;;  %v901_v18 = vsel %vm846_vm1, %v896_v60, %v900_v12  ;;  %v4130_v6 = vld [vmem:[%s4397_s9 + $0x8] sm:$0xff]  }
 0x10b   : > { %1178 = vrot.lane.b32.xlu0 %v1124_v7, %s4162_s19  ;;  %v1392_v11 = vsel %vm1342_vm13, %v1339_v58, %v843_v39 }
 0x10c   : > { %v1010_v4 = vpop.permute.xlu1 %1009 }
 0x10d   : > { %v962_v57 = vpop.permute.xlu0 %961  ;;  %v1442_v36 = vsel %vm1434_vm10, %v1405_v49, %v1010_v4  ;;  %v4128_v4 = vld [vmem:[%s4225_s28 + $0x88] sm:$0xff]  }
 0x10e   : > { %1254 = vrot.lane.b32.xlu1 %v1219_v10, %s4163_s18  ;;  %v1431_v8 = vsel %vm1397_vm9, %v843_v39, %v962_v57  ;;  %v6579_v10 = vrot.slane %v4387_v28, 2  ;;  %v4129_v57 = vld [vmem:[%s4397_s9] sm:$0xff]  }
 0x10f   : > { %1180 = vrot.lane.b32.xlu0 %v1128_v3, %s4162_s19  ;;  %v1224_v3 = vrot.slane %v4128_v4, 3 }
 0x110   : > { %v1048_v2 = vpop.permute.xlu1 %1047  ;;  %v994_v39 = vsel %vm965_vm4, %v991_v26, %v6579_v10 }
 0x111   : > { %v1036_v55 = vpop.permute.xlu0 %1035  ;;  %v1479_v37 = vsel %vm1471_vm11, %v1442_v36, %v1048_v2 }
 0x112   : > { %951 = vrot.lane.b32.xlu1 %v897_v21, %s4159_s10  ;;  %v1468_v14 = vsel %vm1434_vm10, %v1431_v8, %v1036_v55  ;;  %v1226_v21 = vrot.slane %v4129_v57, 3 }
 0x113   : > { %832 = vrot.lane.b32.xlu0 %v4662_v40, %s4158_s30  ;;  %v1222_v40 = vrot.slane %v4127_v46, 3 }
 0x114   : > { %v5319_v34 = vpop.permute.xlu1 %1164  ;;  %v1227_v35 = vsel %vm1194_vm8, %v1224_v3, %v1226_v21 }
 0x115   : > { %v1519_v61 = vsel %vm1508_vm12, %v1479_v37, %v5319_v34  ;;  %v1074_v1 = vpop.permute.xlu0 %1073  ;;  %v1223_v44 = vsel %vm1194_vm8, %v1220_v29, %v1222_v40  ;;  %v1225_v49 = vsel %vm1194_vm8, %v1222_v40, %v1224_v3  ;;  %v905_v29 = vsel %vm846_vm1, %v900_v12, %v4774_v53 }
 0x116   : > { %1063 = vrot.lane.b32.xlu1 %v992_v0, %s4160_s13  ;;  %1868 = vmatprep.mubr.bf16.mxu0 %v1519_v61  ;;  %v1505_v24 = vsel %vm1471_vm11, %v1468_v14, %v1074_v1  ;;  %v1228_v1 = vrot.slane %v4130_v6, 3  ;;  %v1230_v53 = vrot.slane %v4923_v20, 3 }
 0x117   : > { %1869 = vmatmul.mubr.bf16.gmra.mxu0 %v1353_v63  ;;  %1025 = vrot.lane.b32.xlu0 %v5262_v54, %s4161_s16 }
 0x118   : > { %v819_v43 = vpop.permute.xlu1 %818  ;;  %v1231_v33 = vsel %vm1194_vm8, %v1228_v1, %v1230_v53 }
 0x119   : > { %v5339_v9 = vpop.permute.xlu0 %1190  ;;  %v1356_v36 = vsel %vm1342_vm13, %v4979_v30, %v819_v43 }
 0x11a   : > { %1256 = vrot.lane.b32.xlu1 %v1221_v41, %s4163_s18  ;;  %v1558_v54 = vsel %vm1508_vm12, %v1505_v24, %v5339_v9 }
 0x11b   : > { %1182 = vrot.lane.b32.xlu0 %v1132_v50, %s4162_s19  ;;  %1972 = vmatprep.mubr.bf16.mxu1 %v1558_v54 }
 0x11c   : > { %v938_v56 = vpop.permute.xlu1 %937  ;;  %1973 = vmatmul.mubr.bf16.gmra.mxu1 %v1392_v11 }
 0x11d   : > { %v845_v5 = vpop.permute.xlu0 %844  ;;  %v1407_v60 = vsel %vm1397_vm9, %v819_v43, %v938_v56 }
 0x11e   : > { %1258 = vrot.lane.b32.xlu1 %v1223_v44, %s4163_s18  ;;  %v1395_v63 = vsel %vm1342_vm13, %v5093_v48, %v845_v5 }
 0x11f   : > { %1184 = vrot.lane.b32.xlu0 %v1136_v22, %s4162_s19 }
 0x120   : > { %v1012_v7 = vpop.permute.xlu1 %1011 }
 0x121   : > { %v964_v17 = vpop.permute.xlu0 %963  ;;  %v1444_v47 = vsel %vm1434_vm10, %v1407_v60, %v1012_v7 }
 0x122   : > { %953 = vrot.lane.b32.xlu1 %v901_v18, %s4159_s10 }
 0x123   : > { %834 = vrot.lane.b32.xlu0 %v4648_v27, %s4158_s30 }
 0x124   : > { %v1050_v59 = vpop.permute.xlu1 %1049 }
 0x125   : > { %v1038_v2 = vpop.permute.xlu0 %1037  ;;  %v1481_v28 = vsel %vm1471_vm11, %v1444_v47, %v1050_v59 }
 0x126   : > { %1065 = vrot.lane.b32.xlu1 %v994_v39, %s4160_s13 }
 0x127   : > { %1027 = vrot.lane.b32.xlu0 %v992_v0, %s4161_s16  ;;  %v1433_v0 = vsel %vm1397_vm9, %v845_v5, %v964_v17 }
 0x128   : > { %v5368_v26 = vpop.permute.xlu1 %1166  ;;  %v1470_v37 = vsel %vm1434_vm10, %v1433_v0, %v1038_v2 }
 0x129   : > { %v1522_v27 = vsel %vm1508_vm12, %v1481_v28, %v5368_v26  ;;  %v1076_v55 = vpop.permute.xlu0 %1075 }
 0x12a   : > { %1262 = vrot.lane.b32.xlu1 %v1227_v35, %s4163_s18  ;;  %1876 = vmatprep.mubr.bf16.mxu0 %v1522_v27  ;;  %v1507_v19 = vsel %vm1471_vm11, %v1470_v37, %v1076_v55 }
 0x12b   : > { %1877 = vmatmul.mubr.bf16.gmra.mxu0 %v1356_v36  ;;  %1260 = vrot.lane.b32.xlu0 %v1225_v49, %s4163_s18 }
 0x12c   : > { %v821_v51 = vpop.permute.xlu1 %820 }
 0x12d   : > { %v5382_v61 = vpop.permute.xlu0 %1192  ;;  %v1359_v50 = vsel %vm1342_vm13, %v4967_v16, %v821_v51 }
 0x12e   : > { %955 = vrot.lane.b32.xlu1 %v905_v29, %s4159_s10  ;;  %v1561_v30 = vsel %vm1508_vm12, %v1507_v19, %v5382_v61 }
 0x12f   : > { %836 = vrot.lane.b32.xlu0 %v4688_v42, %s4158_s30  ;;  %1980 = vmatprep.mubr.bf16.mxu1 %v1561_v30  ;;  %v1229_v42 = vsel %vm1194_vm8, %v1226_v21, %v1228_v1  ;;  %s5407_s30 = scalar_lea.vmem %s6501_s4, %s4219_s25 }
 0x130   : > { %v1014_v41 = vpop.permute.xlu1 %1013  ;;  %1981 = vmatmul.mubr.bf16.gmra.mxu1 %v1395_v63  ;;  %v2386_v48 = vld [vmem:[%s5407_s30 + $0x8] sm:$0xff]  ;;  %v2385_v23 = vld [vmem:[%s5407_s30] sm:$0xff]  ;;  %v2388_v44 = vld [vmem:[%s5407_s30 + $0x18] sm:$0xff] }
 0x131   : > { %v940_v46 = vpop.permute.xlu0 %939  ;;  %v2387_v16 = vld [vmem:[%s5407_s30 + $0x10] sm:$0xff]  ;;  %v2390_v11 = vld [vmem:[%s5407_s30 + $0x28] sm:$0xff]  ;;  %v2392_v7 = vld [vmem:[%s5407_s30 + $0x38] sm:$0xff] }
 0x132   : > { %1067 = vrot.lane.b32.xlu1 %v4799_v31, %s4160_s13  ;;  %v1409_v40 = vsel %vm1397_vm9, %v821_v51, %v940_v46  ;;  %v2394_v21 = vld [vmem:[%s5407_s30 + $0x48] sm:$0xff]  ;;  %v2396_v35 = vld [vmem:[%s5407_s30 + $0x58] sm:$0xff]  ;;  %v2397_v29 = vld [vmem:[%s5407_s30 + $0x60] sm:$0xff] }
 0x133   : > { %1029 = vrot.lane.b32.xlu0 %v994_v39, %s4161_s16  ;;  %v1446_v15 = vsel %vm1434_vm10, %v1409_v40, %v1014_v41  ;;  %v2391_v39 = vld [vmem:[%s5407_s30 + $0x30] sm:$0xff]  ;;  %v2398_v55 = vld [vmem:[%s5407_s30 + $0x68] sm:$0xff]  ;;  %v2400_v37 = vld [vmem:[%s5407_s30 + $0x78] sm:$0xff]  ;;  %s4164_s16 = smov 96  }
 0x134   : > { %v5398_v20 = vpop.permute.xlu1 %1168  ;;  %v2399_v1 = vld [vmem:[%s5407_s30 + $0x70] sm:$0xff]  ;;  %v2402_v40 = vld [vmem:[%s5407_s30 + $0x88] sm:$0xff] }
 0x135   : > { %v1052_v8 = vpop.permute.xlu0 %1051 }
 0x136   : > { %1266 = vrot.lane.b32.xlu1 %v1231_v33, %s4163_s18  ;;  %v1483_v31 = vsel %vm1471_vm11, %v1446_v15, %v1052_v8  ;;  %v2404_v8 = vld [vmem:[%s5407_s30 + $0x98] sm:$0xff] }
 0x137   : > { %1264 = vrot.lane.b32.xlu0 %v1229_v42, %s4163_s18  ;;  %v1525_v43 = vsel %vm1508_vm12, %v1483_v31, %v5398_v20  ;;  %v2403_v42 = vld [vmem:[%s5407_s30 + $0x90] sm:$0xff] }
 0x138   : > { %v1235_v14 = vpop.permute.xlu1 %1234  ;;  %1884 = vmatprep.mubr.bf16.mxu0 %v1525_v43 }
 0x139   : > { %v1567_v24 = vsel %vm1563_vm14, %v5186_v13, %v1235_v14  ;;  %1885 = vmatmul.mubr.bf16.gmra.mxu0 %v1359_v50  ;;  %v1233_v58 = vpop.permute.xlu0 %1232 }
 0x13a   : > { %2459 = vrot.lane.b32.xlu1 %v2386_v48, %s4163_s18  ;;  %v1565_v54 = vsel %vm1563_vm14, %v5126_v25, %v1233_v58  ;;  %v2389_v25 = vld [vmem:[%s5407_s30 + $0x20] sm:$0xff]  ;;  %v6580_v58 = vld [vmem:[#allocation3_spill] sm:$0xff] }
 0x13b   : > { %3818 = vmatprep.mubr.msk.bf16.mxu1 %vm1771_vm15, %v1565_v54  ;;  %2457 = vrot.lane.b32.xlu0 %v2385_v23, %s4163_s18 }
 0x13c   : > { %v942_v12 = vpop.permute.xlu1 %941  ;;  %3819 = vmatmul.mubr.msk.bf16.vlgmr.msra.gmra.mxu1 %vm1771_vm15, %v1567_v24  ;;  %v2405_v24 = vld [vmem:[%s5407_s30 + $0xa0] sm:$0xff] }
 0x13d   : > { %v823_v13 = vpop.permute.xlu0 %822 }
 0x13e   : > { %2463 = vrot.lane.b32.xlu1 %v2388_v44, %s4163_s18  ;;  %v1411_v22 = vsel %vm1397_vm9, %v823_v13, %v942_v12  ;;  %v1362_v59 = vsel %vm1342_vm13, %v5003_v32, %v823_v13  ;;  %v2395_v32 = vld [vmem:[%s5407_s30 + $0x50] sm:$0xff] }
 0x13f   : > { %2461 = vrot.lane.b32.xlu0 %v2387_v16, %s4163_s18 }
 0x140   : > { %v1054_v56 = vpop.permute.xlu1 %1053 }
 0x141   : > { %v1016_v5 = vpop.permute.xlu0 %1015 }
 0x142   : > { %2467 = vrot.lane.b32.xlu1 %v2390_v11, %s4163_s18  ;;  %v1448_v18 = vsel %vm1434_vm10, %v1411_v22, %v1016_v5  ;;  %v2406_v22 = vld [vmem:[%s5407_s30 + $0xa8] sm:$0xff] }
 0x143   : > { %2465 = vrot.lane.b32.xlu0 %v2389_v25, %s4163_s18  ;;  %v1485_v3 = vsel %vm1471_vm11, %v1448_v18, %v1054_v56 }
 0x144   : > { %v1237_v17 = vpop.permute.xlu1 %1236 }
 0x145   : > { %v1569_v10 = vsel %vm1563_vm14, %v5247_v62, %v1237_v17  ;;  %v1171_v4 = vpop.permute.xlu0 %1170  ;;  %v2393_v62 = vld [vmem:[%s5407_s30 + $0x40] sm:$0xff] }
 0x146   : > { %3822 = vmatprep.mubr.msk.bf16.mxu1 %vm1771_vm15, %v1569_v10  ;;  %2471 = vrot.lane.b32.xlu1 %v2392_v7, %s4163_s18  ;;  %v1528_v57 = vsel %vm1508_vm12, %v1485_v3, %v1171_v4 }
 0x147   : > { %1892 = vmatprep.mubr.bf16.mxu0 %v1528_v57  ;;  %2469 = vrot.lane.b32.xlu0 %v2391_v39, %s4163_s18  ;;  %v6581_v39 = vld [vmem:[#allocation2_spill] sm:$0xff] }
 0x148   : > { %v825_v60 = vpop.permute.xlu1 %824  ;;  %1893 = vmatmul.mubr.bf16.gmra.mxu0 %v1362_v59 }
 0x149   : > { %v1239_v2 = vpop.permute.xlu0 %1238  ;;  %v1365_v6 = vsel %vm1342_vm13, %v4989_v52, %v825_v60  ;;  %v2401_v52 = vld [vmem:[%s5407_s30 + $0x80] sm:$0xff] }
 0x14a   : > { %2475 = vrot.lane.b32.xlu1 %v2394_v21, %s4163_s18  ;;  %v1571_v47 = vsel %vm1563_vm14, %v5319_v34, %v1239_v2 }
 0x14b   : > { %3823 = vmatmul.mubr.msk.bf16.gmra.mxu1 %vm1771_vm15, %v1571_v47  ;;  %2473 = vrot.lane.b32.xlu0 %v2393_v62, %s4163_s18  ;;  %v2407_v62 = vld [vmem:[%s5407_s30 + $0xb0] sm:$0xff] }
 0x14c   : > { %v1018_v28 = vpop.permute.xlu1 %1017 }
 0x14d   : > { %v944_v49 = vpop.permute.xlu0 %943 }
 0x14e   : > { %2479 = vrot.lane.b32.xlu1 %v2396_v35, %s4163_s18  ;;  %v1413_v27 = vsel %vm1397_vm9, %v825_v60, %v944_v49 }
 0x14f   : > { %2477 = vrot.lane.b32.xlu0 %v2395_v32, %s4163_s18  ;;  %v1450_v34 = vsel %vm1434_vm10, %v1413_v27, %v1018_v28  ;;  %v2408_v28 = vld [vmem:[%s5407_s30 + $0xb8] sm:$0xff]  ;;  %v2409_v32 = vld [vmem:[%s5407_s30 + $0xc0] sm:$0xff] }
 0x150   : > { %v1173_v36 = vpop.permute.xlu1 %1172 }
 0x151   : > { %v1056_v0 = vpop.permute.xlu0 %1055 }
 0x152   : > { %2483 = vrot.lane.b32.xlu1 %v2398_v55, %s4163_s18  ;;  %v1487_v51 = vsel %vm1471_vm11, %v1450_v34, %v1056_v0  ;;  %v2411_v34 = vld [vmem:[%s5407_s30 + $0xd0] sm:$0xff] }
 0x153   : > { %v1531_v19 = vsel %vm1508_vm12, %v1487_v51, %v1173_v36  ;;  %2481 = vrot.lane.b32.xlu0 %v2397_v29, %s4163_s18  ;;  %v2410_v29 = vld [vmem:[%s5407_s30 + $0xc8] sm:$0xff] }
 0x154   : > { %v1243_v30 = vpop.permute.xlu1 %1242  ;;  %1900 = vmatprep.mubr.bf16.mxu0 %v1531_v19 }
 0x155   : > { %v1575_v53 = vsel %vm1563_vm14, %v5398_v20, %v1243_v30  ;;  %1901 = vmatmul.mubr.bf16.gmra.mxu0 %v1365_v6  ;;  %v1241_v63 = vpop.permute.xlu0 %1240 }
 0x156   : > { %2487 = vrot.lane.b32.xlu1 %v2400_v37, %s4163_s18  ;;  %v1573_v41 = vsel %vm1563_vm14, %v5368_v26, %v1241_v63  ;;  %v6582_v37 = vld [vmem:[#allocation13_spill] sm:$0xff] }
 0x157   : > { %3826 = vmatprep.mubr.msk.bf16.mxu1 %vm1771_vm15, %v1573_v41  ;;  %2485 = vrot.lane.b32.xlu0 %v2399_v1, %s4163_s18  ;;  %v2412_v1 = vld [vmem:[%s5407_s30 + $0xd8] sm:$0xff] }
 0x158   : > { %v946_v46 = vpop.permute.xlu1 %945  ;;  %3827 = vmatmul.mubr.msk.bf16.gmra.mxu1 %vm1771_vm15, %v1575_v53  ;;  %v2413_v53 = vld [vmem:[%s5407_s30 + $0xe0] sm:$0xff] }
 0x159   : > { %v827_v33 = vpop.permute.xlu0 %826 }
 0x15a   : > { %2491 = vrot.lane.b32.xlu1 %v2402_v40, %s4163_s18  ;;  %v1415_v15 = vsel %vm1397_vm9, %v827_v33, %v946_v46  ;;  %v1368_v54 = vsel %vm1342_vm13, %v6580_v58, %v827_v33  ;;  %v2414_v40 = vld [vmem:[%s5407_s30 + $0xe8] sm:$0xff] }
 0x15b   : > { %2489 = vrot.lane.b32.xlu0 %v2401_v52, %s4163_s18  ;;  %v2415_v52 = vld [vmem:[%s5407_s30 + $0xf0] sm:$0xff] }
 0x15c   : > { %v1058_v20 = vpop.permute.xlu1 %1057 }
 0x15d   : > { %v1020_v26 = vpop.permute.xlu0 %1019 }
 0x15e   : > { %v1452_v31 = vsel %vm1434_vm10, %v1415_v15, %v1020_v26  ;;  %2495 = vrot.lane.b32.xlu1 %v2404_v8, %s4163_s18  ;;  %v2416_v15 = vld [vmem:[%s5407_s30 + $0xf8] sm:$0xff] }
 0x15f   : > { %2493 = vrot.lane.b32.xlu0 %v2403_v42, %s4163_s18  ;;  %v1489_v50 = vsel %vm1471_vm11, %v1452_v31, %v1058_v20 }
 0x160   : > { %v1245_v48 = vpop.permute.xlu1 %1244 }
 0x161   : > { %v1577_v43 = vsel %vm1563_vm14, %v1171_v4, %v1245_v48  ;;  %v1175_v14 = vpop.permute.xlu0 %1174 }
 0x162   : > { %3830 = vmatprep.mubr.msk.bf16.mxu1 %vm1771_vm15, %v1577_v43  ;;  %v1534_v23 = vsel %vm1508_vm12, %v1489_v50, %v1175_v14  ;;  %2499 = vrot.lane.b32.xlu1 %v2406_v22, %s4163_s18  ;;  %v2417_v43 = vld [vmem:[%s5407_s30 + $0x100] sm:$0xff] }
 0x163   : > { %1908 = vmatprep.mubr.bf16.mxu0 %v1534_v23  ;;  %2497 = vrot.lane.b32.xlu0 %v2405_v24, %s4163_s18  ;;  %v6583_v50 = vld [vmem:[#allocation18_spill] sm:$0xff] }
 0x164   : > { %v829_v44 = vpop.permute.xlu1 %828  ;;  %1909 = vmatmul.mubr.bf16.gmra.mxu0 %v1368_v54  ;;  %v2418_v54 = vld [vmem:[%s5407_s30 + $0x108] sm:$0xff] }
 0x165   : > { %v1247_v12 = vpop.permute.xlu0 %1246  ;;  %v1371_v4 = vsel %vm1342_vm13, %v6581_v39, %v829_v44 }
 0x166   : > { %v1579_v16 = vsel %vm1563_vm14, %v1173_v36, %v1247_v12  ;;  %2503 = vrot.lane.b32.xlu1 %v2408_v28, %s4163_s18 }
 0x167   : > { %3831 = vmatmul.mubr.msk.bf16.gmra.mxu1 %vm1771_vm15, %v1579_v16  ;;  %2501 = vrot.lane.b32.xlu0 %v2407_v62, %s4163_s18 }
 0x168   : > { %v1022_v13 = vpop.permute.xlu1 %1021 }
 0x169   : > { %v948_v11 = vpop.permute.xlu0 %947 }
 0x16a   : > { %v1417_v56 = vsel %vm1397_vm9, %v829_v44, %v948_v11  ;;  %2507 = vrot.lane.b32.xlu1 %v2410_v29, %s4163_s18  ;;  %v2419_v44 = vld [vmem:[%s5407_s30 + $0x110] sm:$0xff]  ;;  %v6585_v29 = vld [vmem:[#allocation19_spill] sm:$0xff] }
 0x16b   : > { %v1454_v5 = vsel %vm1434_vm10, %v1417_v56, %v1022_v13  ;;  %2505 = vrot.lane.b32.xlu0 %v2409_v32, %s4163_s18  ;;  %v2420_v56 = vld [vmem:[%s5407_s30 + $0x118] sm:$0xff] }
 0x16c   : > { %v1177_v25 = vpop.permute.xlu1 %1176 }
 0x16d   : > { %v1060_v18 = vpop.permute.xlu0 %1059 }
 0x16e   : > { %v1491_v7 = vsel %vm1471_vm11, %v1454_v5, %v1060_v18  ;;  %2511 = vrot.lane.b32.xlu1 %v2412_v1, %s4163_s18 }
 0x16f   : > { %v1537_v17 = vsel %vm1508_vm12, %v1491_v7, %v1177_v25  ;;  %2509 = vrot.lane.b32.xlu0 %v2411_v34, %s4163_s18 }
 0x170   : > { %v1251_v10 = vpop.permute.xlu1 %1250  ;;  %1916 = vmatprep.mubr.bf16.mxu0 %v1537_v17 }
 0x171   : > { %v1583_v3 = vsel %vm1563_vm14, %v1177_v25, %v1251_v10  ;;  %1917 = vmatmul.mubr.bf16.gmra.mxu0 %v1371_v4  ;;  %v1249_v57 = vpop.permute.xlu0 %1248 }
 0x172   : > { %v1581_v21 = vsel %vm1563_vm14, %v1175_v14, %v1249_v57  ;;  %2515 = vrot.lane.b32.xlu1 %v2414_v40, %s4163_s18 }
 0x173   : > { %3834 = vmatprep.mubr.msk.bf16.mxu1 %vm1771_vm15, %v1581_v21  ;;  %2513 = vrot.lane.b32.xlu0 %v2413_v53, %s4163_s18 }
 0x174   : > { %v950_v59 = vpop.permute.xlu1 %949  ;;  %3835 = vmatmul.mubr.msk.bf16.gmra.mxu1 %vm1771_vm15, %v1583_v3  ;;  %v6584_v3 = vld [vmem:[#allocation20_spill] sm:$0xff] }
 0x175   : > { %v831_v60 = vpop.permute.xlu0 %830 }
 0x176   : > { %v1419_v47 = vsel %vm1397_vm9, %v831_v60, %v950_v59  ;;  %v1374_v19 = vsel %vm1342_vm13, %v6582_v37, %v831_v60  ;;  %2519 = vrot.lane.b32.xlu1 %v2416_v15, %s4163_s18 }
 0x177   : > { %2517 = vrot.lane.b32.xlu0 %v2415_v52, %s4163_s18 }
 0x178   : > { %v1062_v2 = vpop.permute.xlu1 %1061 }
 0x179   : > { %v1024_v35 = vpop.permute.xlu0 %1023 }
 0x17a   : > { %v1456_v49 = vsel %vm1434_vm10, %v1419_v47, %v1024_v35  ;;  %2523 = vrot.lane.b32.xlu1 %v2418_v54, %s4163_s18 }
 0x17b   : > { %v1493_v36 = vsel %vm1471_vm11, %v1456_v49, %v1062_v2  ;;  %2521 = vrot.lane.b32.xlu0 %v2417_v43, %s4163_s18 }
 0x17c   : > { %v1253_v27 = vpop.permute.xlu1 %1252 }
 0x17d   : > { %v1179_v55 = vpop.permute.xlu0 %1178 }
 0x17e   : > { %v1540_v0 = vsel %vm1508_vm12, %v1493_v36, %v1179_v55  ;;  %v1585_v51 = vsel %vm1563_vm14, %v1179_v55, %v1253_v27  ;;  %2527 = vrot.lane.b32.xlu1 %v2420_v56, %s4163_s18 }
 0x17f   : > { %1924 = vmatprep.mubr.bf16.mxu0 %v1540_v0  ;;  %3838 = vmatprep.mubr.msk.bf16.mxu1 %vm1771_vm15, %v1585_v51 }
 0x180   : > { %v1255_v30 = vpop.permute.xlu1 %1254  ;;  %1925 = vmatmul.mubr.bf16.gmra.mxu0 %v1374_v19  ;;  %2525 = vrot.lane.b32.xlu0 %v2419_v44, %s4163_s18 }
 0x181   : > { %v1181_v6 = vpop.permute.xlu0 %1180 }
 0x182   : > { %v1587_v63 = vsel %vm1563_vm14, %v1181_v6, %v1255_v30 }
 0x183   : > { %3839 = vmatmul.mubr.msk.bf16.gmra.mxu1 %vm1771_vm15, %v1587_v63 }
 0x184   : > { %v952_v41 = vpop.permute.xlu1 %951 }
 0x185   : > { %v833_v46 = vpop.permute.xlu0 %832 }
 0x186   : > { %v1421_v20 = vsel %vm1397_vm9, %v833_v46, %v952_v41  ;;  %v1377_v23 = vsel %vm1342_vm13, %v6583_v50, %v833_v46 }
 0x188   : > { %v1064_v33 = vpop.permute.xlu1 %1063 }
 0x189   : > { %v1026_v42 = vpop.permute.xlu0 %1025 }
 0x18a   : > { %v1458_v26 = vsel %vm1434_vm10, %v1421_v20, %v1026_v42 }
 0x18b   : > { %v1495_v31 = vsel %vm1471_vm11, %v1458_v26, %v1064_v33 }
 0x18c   : > { %v1257_v8 = vpop.permute.xlu1 %1256  ;;  %v1543_v48 = vsel %vm1508_vm12, %v1495_v31, %v1181_v6 }
 0x18d   : > { %1932 = vmatprep.mubr.bf16.mxu0 %v1543_v48  ;;  %v1183_v14 = vpop.permute.xlu0 %1182 }
 0x18e   : > { %1933 = vmatmul.mubr.bf16.gmra.mxu0 %v1377_v23  ;;  %v1589_v24 = vsel %vm1563_vm14, %v1183_v14, %v1257_v8 }
 0x18f   : > { %3842 = vmatprep.mubr.msk.bf16.mxu1 %vm1771_vm15, %v1589_v24 }
 0x190   : > { %v1259_v58 = vpop.permute.xlu1 %1258 }
 0x191   : > { %v1185_v12 = vpop.permute.xlu0 %1184 }
 0x192   : > { %v1591_v16 = vsel %vm1563_vm14, %v1185_v12, %v1259_v58 }
 0x193   : > { %3843 = vmatmul.mubr.msk.bf16.gmra.mxu1 %vm1771_vm15, %v1591_v16 }
 0x194   : > { %v954_v13 = vpop.permute.xlu1 %953 }
 0x195   : > { %v835_v11 = vpop.permute.xlu0 %834 }
 0x196   : > { %v1423_v22 = vsel %vm1397_vm9, %v835_v11, %v954_v13  ;;  %v1380_v57 = vsel %vm1342_vm13, %v6584_v3, %v835_v11  ;;  %v2166_v11 = vlaneseq }
 0x198   : > { %v1066_v25 = vpop.permute.xlu1 %1065 }
 0x199   : > { %v1028_v5 = vpop.permute.xlu0 %1027 }
 0x19a   : > { %v1460_v18 = vsel %vm1434_vm10, %v1423_v22, %v1028_v5  ;;  %v5610_v22 = vand.u32 127, %v2166_v11 }
 0x19b   : > { %v1497_v17 = vsel %vm1471_vm11, %v1460_v18, %v1066_v25  ;;  %v5608_v25 = vld [vmem:[%s6500_s3] ss:$0 sm:$0xff] }
 0x19c   : > { %v1263_v7 = vpop.permute.xlu1 %1262  ;;  %v1546_v10 = vsel %vm1508_vm12, %v1497_v17, %v1183_v14  ;;  %vm2168_vm0 = vcmp.lt.s32.totalorder %v5610_v22, 96 }
 0x19d   : > { %v1595_v39 = vsel %vm1563_vm14, %v5278_v38, %v1263_v7  ;;  %1940 = vmatprep.mubr.bf16.mxu0 %v1546_v10  ;;  %v1261_v4 = vpop.permute.xlu0 %1260 }
 0x19e   : > { %v1593_v21 = vsel %vm1563_vm14, %v5173_v45, %v1261_v4  ;;  %1941 = vmatmul.mubr.bf16.gmra.mxu0 %v1380_v57 }
 0x19f   : > { %3846 = vmatprep.mubr.msk.bf16.mxu1 %vm1771_vm15, %v1593_v21 }
 0x1a0   : > { %v956_v59 = vpop.permute.xlu1 %955  ;;  %3847 = vmatmul.mubr.msk.bf16.gmra.mxu1 %vm1771_vm15, %v1595_v39 }
 0x1a1   : > { %v837_v60 = vpop.permute.xlu0 %836 }
 0x1a2   : > { %v1425_v47 = vsel %vm1397_vm9, %v837_v60, %v956_v59  ;;  %v1383_v34 = vsel %vm1342_vm13, %v6585_v29, %v837_v60 }
 0x1a4   : > { %v1068_v62 = vpop.permute.xlu1 %1067  ;;  %v1846_v2 = vpop.f32.mrf.mxu0 }
 0x1a5   : > { %v1030_v38 = vpop.permute.xlu0 %1029  ;;  %v1847_v17 = vadd.f32 %v5608_v25, %v1846_v2 }
 0x1a6   : > { %v1462_v35 = vsel %vm1434_vm10, %v1425_v47, %v1030_v38  ;;  %v1848_v28 = vpop.f32.mrf.mxu0 }
 0x1a7   : > { %v1499_v49 = vsel %vm1471_vm11, %v1462_v35, %v1068_v62 }
 0x1a8   : > { %v1267_v32 = vpop.permute.xlu1 %1266  ;;  %v1849_v27 = vpop.f32.mrf.mxu0  ;;  %v1549_v45 = vsel %vm1508_vm12, %v1499_v49, %v1185_v12 }
 0x1a9   : > { %v1599_v55 = vsel %vm1563_vm14, %v5382_v61, %v1267_v32  ;;  %1948 = vmatprep.mubr.bf16.mxu0 %v1549_v45  ;;  %v1265_v36 = vpop.permute.xlu0 %1264  ;;  %v1850_v62 = vadd.f32 %v5608_v25, %v1849_v27 }
 0x1aa   : > { %v1597_v0 = vsel %vm1563_vm14, %v5339_v9, %v1265_v36  ;;  %v1851_v51 = vpop.f32.mrf.mxu0  ;;  %1949 = vmatmul.mubr.bf16.gmra.mxu0 %v1383_v34 }
 0x1ab   : > { %3850 = vmatprep.mubr.msk.bf16.mxu1 %vm1771_vm15, %v1597_v0 }
 0x1ac   : > { %3851 = vmatmul.mubr.msk.bf16.gmra.mxu1 %vm1771_vm15, %v1599_v55 }
 0x1b3   : > { %v5581_v37 = vpop.f32.mrf.mxu1 }
 0x1b5   : > { %v1854_v19 = vpop.f32.mrf.mxu0  ;;  %v1960_v30 = vpop.f32.mrf.mxu1 }
 0x1b6   : > { %v1855_v5 = vadd.f32 %v5608_v25, %v1854_v19 }
 0x1b7   : > { %v1856_v6 = vpop.f32.mrf.mxu0  ;;  %v5583_v61 = vpop.f32.mrf.mxu1 }
 0x1b9   : > { %v1857_v1 = vpop.f32.mrf.mxu0  ;;  %v1963_v53 = vpop.f32.mrf.mxu1 }
 0x1ba   : > { %v1858_v3 = vadd.f32 %v5608_v25, %v1857_v1 }
 0x1bb   : > { %v1859_v63 = vpop.f32.mrf.mxu0 }
 0x1c3   : > { %v1862_v41 = vpop.f32.mrf.mxu0 }
 0x1c4   : > { %v1863_v51 = vadd.f32 %v5608_v25, %v1862_v41 }
 0x1c5   : > { %v1864_v46 = vpop.f32.mrf.mxu0 }
 0x1c7   : > { %v5585_v40 = vpop.f32.mrf.mxu0 }
 0x1c8   : > { %v5587_v9 = vpop.f32.mrf.mxu1 }
 0x1c9   : > { %v1867_v52 = vpop.f32.mrf.mxu0 }
 0x1ca   : > { %v1968_v33 = vpop.f32.mrf.mxu1 }
 0x1cb   : > { %v1866_v33 = vadd.f32 %v5608_v25, %v5585_v40 }
 0x1cc   : > { %v5589_v20 = vpop.f32.mrf.mxu1 }
 0x1ce   : > { %v1971_v42 = vpop.f32.mrf.mxu1 }
 0x1d7   : > { %v1870_v15 = vpop.f32.mrf.mxu0 }
 0x1d8   : > { %v1871_v29 = vadd.f32 %v5608_v25, %v1870_v15 }
 0x1d9   : > { %v1872_v26 = vpop.f32.mrf.mxu0 }
 0x1db   : > { %v1873_v8 = vpop.f32.mrf.mxu0 }
 0x1dc   : > { %v5591_v31 = vpop.f32.mrf.mxu1  ;;  %v1874_v1 = vadd.f32 %v5608_v25, %v1873_v8 }
 0x1dd   : > { %v1875_v48 = vpop.f32.mrf.mxu0 }
 0x1de   : > { %v1976_v43 = vpop.f32.mrf.mxu1 }
 0x1e0   : > { %v5593_v14 = vpop.f32.mrf.mxu1 }
 0x1e2   : > { %v1979_v50 = vpop.f32.mrf.mxu1 }
 0x1eb   : > { %v5595_v23 = vpop.f32.mrf.mxu0 }
 0x1ed   : > { %v1880_v24 = vpop.f32.mrf.mxu0 }
 0x1ef   : > { %v5597_v58 = vpop.f32.mrf.mxu0 }
 0x1f0   : > { %v5599_v54 = vpop.f32.mrf.mxu1 }
 0x1f1   : > { %v1883_v44 = vpop.f32.mrf.mxu0 }
 0x1f2   : > { %v1984_v12 = vpop.f32.mrf.mxu1 }
 0x1f4   : > { %v5601_v16 = vpop.f32.mrf.mxu1 }
 0x1f6   : > { %v1987_v13 = vpop.f32.mrf.mxu1 }
 0x1f9   : > { %v5603_v56 = vpop.f32.mrf.mxu0 }
 0x1fb   : > { %v1888_v18 = vpop.f32.mrf.mxu0 }
 0x1fc   : > { %v3820_v7 = vpop.f32.mrf.mxu1 }
 0x1fd   : > { %v2032_v10 = vadd.f32 %v3820_v7, %v1855_v5  ;;  %v5614_v39 = vpop.f32.mrf.mxu0 }
 0x1fe   : > { %v2023_v4 = vpop.f32.mrf.mxu1 }
 0x1ff   : > { %v2171_v57 = vmul.f32 0.5, %v2032_v10  ;;  %v2024_v21 = vadd.f32 %v2023_v4, %v1847_v17  ;;  %v1891_v59 = vpop.f32.mrf.mxu0 }
 0x200   : > { %v3821_v60 = vpop.f32.mrf.mxu1 }
 0x201   : > { %v2207_v47 = vsel %vm2168_vm0, %v2171_v57, %v2032_v10  ;;  %v2169_v38 = vmul.f32 0.5, %v2024_v21  ;;  %v2035_v35 = vadd.f32 %v3821_v60, %v1858_v3 }
 0x202   : > { %3967 = vtanh.f32 %v2207_v47  ;;  %v2026_v2 = vpop.f32.mrf.mxu1 }
 0x203   : > { %v2205_v28 = vsel %vm2168_vm0, %v2169_v38, %v2024_v21  ;;  %v2172_v32 = vmul.f32 0.5, %v2035_v35  ;;  %v2027_v49 = vadd.f32 %v2026_v2, %v1850_v62  ;;  %v1887_v21 = vadd.f32 %v5608_v25, %v5603_v56 }
 0x204   : > { %3969 = vtanh.f32 %v2205_v28  ;;  %v1879_v62 = vadd.f32 %v5608_v25, %v5595_v23  ;;  %v1890_v23 = vadd.f32 %v5608_v25, %v5614_v39 }
 0x205   : > { %v2208_v45 = vsel %vm2168_vm0, %v2172_v32, %v2035_v35  ;;  %v2170_v55 = vmul.f32 0.5, %v2027_v49 }
 0x206   : > { %3971 = vtanh.f32 %v2208_v45 }
 0x207   : > { %v2206_v27 = vsel %vm2168_vm0, %v2170_v55, %v2027_v49 }
 0x208   : > { %3973 = vtanh.f32 %v2206_v27  ;;  %v5627_v36 = vpop.f32.mrf.mxu0  ;;  %v1882_v27 = vadd.f32 %v5608_v25, %v5597_v58 }
 0x20a   : > { %v1896_v34 = vpop.f32.mrf.mxu0 }
 0x20b   : > { %v3824_v0 = vpop.f32.mrf.mxu1 }
 0x20c   : > { %v2048_v19 = vadd.f32 %v3824_v0, %v1871_v29  ;;  %v5631_v30 = vpop.f32.mrf.mxu0 }
 0x20d   : > { %v2039_v6 = vpop.f32.mrf.mxu1 }
 0x20e   : > { %v2175_v53 = vmul.f32 0.5, %v2048_v19  ;;  %v2040_v63 = vadd.f32 %v2039_v6, %v1863_v51  ;;  %v1899_v46 = vpop.f32.mrf.mxu0 }
 0x20f   : > { %v3968_v52 = vpop.eup %3967  ;;  %v3825_v42 = vpop.f32.mrf.mxu1 }
 0x210   : > { %v2211_v15 = vsel %vm2168_vm0, %v2175_v53, %v2048_v19  ;;  %v2173_v26 = vmul.f32 0.5, %v2040_v63  ;;  %v2051_v48 = vadd.f32 %v3825_v42, %v1874_v1  ;;  %v2279_v41 = vmul.f32 0.5, %v3968_v52 }
 0x211   : > { %v3970_v43 = vpop.eup %3969  ;;  %3975 = vtanh.f32 %v2211_v15  ;;  %v2042_v50 = vpop.f32.mrf.mxu1 }
 0x212   : > { %v2209_v8 = vsel %vm2168_vm0, %v2173_v26, %v2040_v63  ;;  %v2176_v24 = vmul.f32 0.5, %v2051_v48  ;;  %v2277_v44 = vmul.f32 0.5, %v3970_v43  ;;  %v2043_v12 = vadd.f32 %v2042_v50, %v1866_v33 }
 0x213   : > { %v3972_v13 = vpop.eup %3971  ;;  %3977 = vtanh.f32 %v2209_v8  ;;  %v2315_v11 = vadd.f32 0.5, %v2279_v41 }
 0x214   : > { %v2212_v40 = vsel %vm2168_vm0, %v2176_v24, %v2051_v48  ;;  %v2174_v5 = vmul.f32 0.5, %v2043_v12  ;;  %v2280_v18 = vmul.f32 0.5, %v3972_v13  ;;  %v2313_v17 = vadd.f32 0.5, %v2277_v44 }
 0x215   : > { %v3974_v7 = vpop.eup %3973  ;;  %3979 = vtanh.f32 %v2212_v40  ;;  %v5644_v10 = vsel %vm2168_vm0, %v2315_v11, %v3968_v52  ;;  %v1902_v4 = vpop.f32.mrf.mxu0 }
 0x216   : > { %v2210_v3 = vsel %vm2168_vm0, %v2174_v5, %v2043_v12  ;;  %v2278_v57 = vmul.f32 0.5, %v3974_v7  ;;  %2641 = vrot.lane.b32.xlu0 %v5644_v10, %s4163_s18  ;;  %v2316_v60 = vadd.f32 0.5, %v2280_v18  ;;  %v5656_v38 = vsel %vm2168_vm0, %v2313_v17, %v3970_v43 }
 0x217   : > { %3981 = vtanh.f32 %v2210_v3  ;;  %v1904_v59 = vpop.f32.mrf.mxu0  ;;  %v1895_v17 = vadd.f32 %v5608_v25, %v5627_v36 }
 0x218   : > { %v3828_v47 = vpop.f32.mrf.mxu1  ;;  %v2314_v35 = vadd.f32 0.5, %v2278_v57  ;;  %v5660_v2 = vsel %vm2168_vm0, %v2316_v60, %v3972_v13  ;;  %v1903_v13 = vadd.f32 %v5608_v25, %v1902_v4 }
 0x219   : > { %v2064_v28 = vadd.f32 %v3828_v47, %v1887_v21  ;;  %v1905_v32 = vpop.f32.mrf.mxu0  ;;  %2643 = vrot.lane.b32.xlu1 %v5660_v2, %s4163_s18 }
 0x21a   : > { %2637 = vrot.lane.b32.xlu0 %v5656_v38, %s4163_s18  ;;  %v2055_v56 = vpop.f32.mrf.mxu1  ;;  %v5672_v34 = vsel %vm2168_vm0, %v2314_v35, %v3974_v7  ;;  %v1906_v21 = vadd.f32 %v5608_v25, %v1905_v32  ;;  %v1898_v35 = vadd.f32 %v5608_v25, %v5631_v30 }
 0x21b   : > { %v2179_v49 = vmul.f32 0.5, %v2064_v28  ;;  %v2056_v45 = vadd.f32 %v2055_v56, %v1879_v62  ;;  %v1907_v55 = vpop.f32.mrf.mxu0 }
 0x21c   : > { %v3829_v29 = vpop.f32.mrf.mxu1 }
 0x21d   : > { %v2215_v0 = vsel %vm2168_vm0, %v2179_v49, %v2064_v28  ;;  %v2177_v51 = vmul.f32 0.5, %v2056_v45  ;;  %v2067_v19 = vadd.f32 %v3829_v29, %v1890_v23  ;;  %2639 = vrot.lane.b32.xlu1 %v5672_v34, %s4163_s18 }
 0x21e   : > { %v3976_v6 = vpop.eup %3975  ;;  %3983 = vtanh.f32 %v2215_v0  ;;  %v2058_v39 = vpop.f32.mrf.mxu1 }
 0x21f   : > { %v2213_v1 = vsel %vm2168_vm0, %v2177_v51, %v2056_v45  ;;  %v2180_v58 = vmul.f32 0.5, %v2067_v19  ;;  %v2059_v53 = vadd.f32 %v2058_v39, %v1882_v27  ;;  %v2283_v63 = vmul.f32 0.5, %v3976_v6 }
 0x220   : > { %v3978_v46 = vpop.eup %3977  ;;  %3985 = vtanh.f32 %v2213_v1 }
 0x221   : > { %v2216_v52 = vsel %vm2168_vm0, %v2180_v58, %v2067_v19  ;;  %v2178_v33 = vmul.f32 0.5, %v2059_v53  ;;  %v2281_v42 = vmul.f32 0.5, %v3978_v46  ;;  %v2319_v15 = vadd.f32 0.5, %v2283_v63  ;;  %v5718_v19 = vpop.permute.xlu0 %2457 }
 0x222   : > { %v3980_v26 = vpop.eup %3979  ;;  %3987 = vtanh.f32 %v2216_v52 }
 0x223   : > { %v2214_v48 = vsel %vm2168_vm0, %v2178_v33, %v2059_v53  ;;  %v2317_v41 = vadd.f32 0.5, %v2281_v42  ;;  %v5686_v43 = vsel %vm2168_vm0, %v2319_v15, %v3976_v6  ;;  %v2284_v50 = vmul.f32 0.5, %v3980_v26  ;;  %v5726_v33 = vpop.permute.xlu1 %2459 }
 0x224   : > { %v3982_v8 = vpop.eup %3981  ;;  %3989 = vtanh.f32 %v2214_v48  ;;  %2649 = vrot.lane.b32.xlu0 %v5686_v43, %s4163_s18  ;;  %v1910_v24 = vpop.f32.mrf.mxu0 }
 0x225   : > { %v2282_v44 = vmul.f32 0.5, %v3982_v8  ;;  %v2320_v12 = vadd.f32 0.5, %v2284_v50  ;;  %v5693_v40 = vsel %vm2168_vm0, %v2317_v41, %v3978_v46  ;;  %v1911_v50 = vadd.f32 %v5608_v25, %v1910_v24 }
 0x226   : > { %v1912_v11 = vpop.f32.mrf.mxu0 }
 0x227   : > { %v2318_v5 = vadd.f32 0.5, %v2282_v44  ;;  %v5697_v18 = vsel %vm2168_vm0, %v2320_v12, %v3980_v26  ;;  %v3832_v7 = vpop.f32.mrf.mxu1  ;;  %v5734_v44 = vpop.permute.xlu0 %2461 }
 0x228   : > { %v2080_v3 = vadd.f32 %v3832_v7, %v1903_v13  ;;  %2651 = vrot.lane.b32.xlu1 %v5697_v18, %s4163_s18  ;;  %2645 = vrot.lane.b32.xlu0 %v5693_v40, %s4163_s18  ;;  %v1913_v4 = vpop.f32.mrf.mxu0 }
 0x229   : > { %v2071_v57 = vpop.f32.mrf.mxu1  ;;  %v5710_v36 = vsel %vm2168_vm0, %v2318_v5, %v3982_v8 }
 0x22a   : > { %v2183_v59 = vmul.f32 0.5, %v2080_v3  ;;  %v2072_v60 = vadd.f32 %v2071_v57, %v1895_v17  ;;  %v1915_v62 = vpop.f32.mrf.mxu0 }
 0x22b   : > { %v3984_v47 = vpop.eup %3983  ;;  %v3833_v28 = vpop.f32.mrf.mxu1 }
 0x22c   : > { %v2219_v56 = vsel %vm2168_vm0, %v2183_v59, %v2080_v3  ;;  %v2181_v23 = vmul.f32 0.5, %v2072_v60  ;;  %v2083_v49 = vadd.f32 %v3833_v28, %v1906_v21  ;;  %2647 = vrot.lane.b32.xlu1 %v5710_v36, %s4163_s18  ;;  %v2287_v32 = vmul.f32 0.5, %v3984_v47  ;;  %v5749_v59 = vpop.permute.xlu1 %2463 }
 0x22d   : > { %v3986_v45 = vpop.eup %3985  ;;  %3991 = vtanh.f32 %v2219_v56  ;;  %v2074_v55 = vpop.f32.mrf.mxu1 }
 0x22e   : > { %v2217_v30 = vsel %vm2168_vm0, %v2181_v23, %v2072_v60  ;;  %v2184_v27 = vmul.f32 0.5, %v2083_v49  ;;  %v2285_v29 = vmul.f32 0.5, %v3986_v45  ;;  %v2075_v0 = vadd.f32 %v2074_v55, %v1898_v35 }
 0x22f   : > { %v3988_v51 = vpop.eup %3987  ;;  %3993 = vtanh.f32 %v2217_v30  ;;  %v2323_v6 = vadd.f32 0.5, %v2287_v32  ;;  %v1914_v60 = vadd.f32 %v5608_v25, %v1913_v4 }
 0x230   : > { %v2220_v39 = vsel %vm2168_vm0, %v2184_v27, %v2083_v49  ;;  %v2182_v1 = vmul.f32 0.5, %v2075_v0  ;;  %v2288_v58 = vmul.f32 0.5, %v3988_v51  ;;  %v2321_v63 = vadd.f32 0.5, %v2285_v29  ;;  %v5764_v27 = vpop.permute.xlu1 %2467 }
 0x231   : > { %v3990_v53 = vpop.eup %3989  ;;  %3995 = vtanh.f32 %v2220_v39  ;;  %v5724_v46 = vsel %vm2168_vm0, %v2323_v6, %v3984_v47  ;;  %v1918_v52 = vpop.f32.mrf.mxu0 }
 0x232   : > { %v2218_v42 = vsel %vm2168_vm0, %v2182_v1, %v2075_v0  ;;  %v2286_v15 = vmul.f32 0.5, %v3990_v53  ;;  %2657 = vrot.lane.b32.xlu0 %v5724_v46, %s4163_s18  ;;  %v1919_v26 = vadd.f32 %v5608_v25, %v1918_v52  ;;  %v2324_v41 = vadd.f32 0.5, %v2288_v58  ;;  %v5752_v47 = vpop.permute.xlu0 %2465 }
 0x233   : > { %3997 = vtanh.f32 %v2218_v42  ;;  %v1920_v48 = vpop.f32.mrf.mxu0  ;;  %v5738_v12 = vsel %vm2168_vm0, %v2321_v63, %v3986_v45 }
 0x234   : > { %v3836_v8 = vpop.f32.mrf.mxu1  ;;  %v2322_v13 = vadd.f32 0.5, %v2286_v15  ;;  %v5742_v11 = vsel %vm2168_vm0, %v2324_v41, %v3988_v51  ;;  %v5776_v41 = vpop.permute.xlu1 %2471 }
 0x235   : > { %v2096_v5 = vadd.f32 %v3836_v8, %v1919_v26  ;;  %v1921_v7 = vpop.f32.mrf.mxu0  ;;  %2659 = vrot.lane.b32.xlu1 %v5742_v11, %s4163_s18 }
 0x236   : > { %2653 = vrot.lane.b32.xlu0 %v5738_v12, %s4163_s18  ;;  %v1922_v24 = vadd.f32 %v5608_v25, %v1921_v7  ;;  %v2087_v17 = vpop.f32.mrf.mxu1  ;;  %v5756_v35 = vsel %vm2168_vm0, %v2322_v13, %v3990_v53  ;;  %v5768_v1 = vpop.permute.xlu0 %2469 }
 0x237   : > { %v2187_v3 = vmul.f32 0.5, %v2096_v5  ;;  %v2088_v57 = vadd.f32 %v2087_v17, %v1911_v50  ;;  %v1923_v21 = vpop.f32.mrf.mxu0 }
 0x238   : > { %v3837_v62 = vpop.f32.mrf.mxu1 }
 0x239   : > { %v2223_v28 = vsel %vm2168_vm0, %v2187_v3, %v2096_v5  ;;  %v2185_v56 = vmul.f32 0.5, %v2088_v57  ;;  %v2099_v23 = vadd.f32 %v3837_v62, %v1922_v24  ;;  %2655 = vrot.lane.b32.xlu1 %v5756_v35, %s4163_s18 }
 0x23a   : > { %v3992_v49 = vpop.eup %3991  ;;  %3999 = vtanh.f32 %v2223_v28  ;;  %v2090_v32 = vpop.f32.mrf.mxu1 }
 0x23b   : > { %v2221_v4 = vsel %vm2168_vm0, %v2185_v56, %v2088_v57  ;;  %v2188_v45 = vmul.f32 0.5, %v2099_v23  ;;  %v2091_v55 = vadd.f32 %v2090_v32, %v1914_v60  ;;  %v2291_v6 = vmul.f32 0.5, %v3992_v49  ;;  %v5780_v8 = vpop.permute.xlu0 %2473  ;;  %v5795_v56 = vpop.permute.xlu1 %2475 }
 0x23c   : > { %v3994_v30 = vpop.eup %3993  ;;  %4001 = vtanh.f32 %v2221_v4  ;;  %6586 = vst [vmem:[#allocation12_spill] sm:$0xff] %v5795_v56 }
 0x23d   : > { %v2224_v29 = vsel %vm2168_vm0, %v2188_v45, %v2099_v23  ;;  %v2186_v0 = vmul.f32 0.5, %v2091_v55  ;;  %v2289_v51 = vmul.f32 0.5, %v3994_v30  ;;  %v2327_v26 = vadd.f32 0.5, %v2291_v6 }
 0x23e   : > { %v3996_v39 = vpop.eup %3995  ;;  %4003 = vtanh.f32 %v2224_v29 }
 0x23f   : > { %v2222_v58 = vsel %vm2168_vm0, %v2186_v0, %v2091_v55  ;;  %v2325_v53 = vadd.f32 0.5, %v2289_v51  ;;  %v2292_v48 = vmul.f32 0.5, %v3996_v39  ;;  %v5789_v3 = vsel %vm2168_vm0, %v2327_v26, %v3992_v49  ;;  %v5798_v49 = vpop.permute.xlu0 %2477 }
 0x240   : > { %v3998_v63 = vpop.eup %3997  ;;  %4005 = vtanh.f32 %v2222_v58  ;;  %v1926_v52 = vpop.f32.mrf.mxu0 }
 0x241   : > { %v5774_v42 = vsel %vm2168_vm0, %v2325_v53, %v3994_v30  ;;  %v2290_v15 = vmul.f32 0.5, %v3998_v63  ;;  %v1927_v7 = vadd.f32 %v5608_v25, %v1926_v52  ;;  %v2328_v57 = vadd.f32 0.5, %v2292_v48 }
 0x242   : > { %2661 = vrot.lane.b32.xlu0 %v5774_v42, %s4163_s18  ;;  %v1928_v50 = vpop.f32.mrf.mxu0 }
 0x243   : > { %v2326_v13 = vadd.f32 0.5, %v2290_v15  ;;  %v3840_v5 = vpop.f32.mrf.mxu1  ;;  %v5802_v55 = vsel %vm2168_vm0, %v2328_v57, %v3996_v39  ;;  %v5808_v15 = vpop.permute.xlu1 %2479 }
 0x244   : > { %v1929_v24 = vpop.f32.mrf.mxu0  ;;  %6587 = vst [vmem:[#allocation15_spill] sm:$0xff] %v5808_v15  ;;  %v5810_v26 = vpop.permute.xlu0 %2481 }
 0x245   : > { %v5785_v17 = vsel %vm2168_vm0, %v2326_v13, %v3998_v63  ;;  %v2103_v21 = vpop.f32.mrf.mxu1  ;;  %v1930_v32 = vadd.f32 %v5608_v25, %v1929_v24  ;;  %6588 = vst [vmem:[#allocation5_spill] sm:$0xff] %v5810_v26 }
 0x246   : > { %v2104_v60 = vadd.f32 %v2103_v21, %v1927_v7  ;;  %2663 = vrot.lane.b32.xlu1 %v5785_v17, %s4163_s18  ;;  %2665 = vrot.lane.b32.xlu0 %v5789_v3, %s4163_s18  ;;  %v1931_v62 = vpop.f32.mrf.mxu0 }
 0x247   : > { %v4000_v28 = vpop.eup %3999  ;;  %v3841_v23 = vpop.f32.mrf.mxu1 }
 0x248   : > { %v2189_v4 = vmul.f32 0.5, %v2104_v60  ;;  %v2295_v29 = vmul.f32 0.5, %v4000_v28 }
 0x249   : > { %v4002_v45 = vpop.eup %4001  ;;  %v2106_v30 = vpop.f32.mrf.mxu1 }
 0x24a   : > { %v2225_v0 = vsel %vm2168_vm0, %v2189_v4, %v2104_v60  ;;  %v2293_v51 = vmul.f32 0.5, %v4002_v45  ;;  %v2107_v6 = vadd.f32 %v2106_v30, %v1930_v32  ;;  %2667 = vrot.lane.b32.xlu1 %v5802_v55, %s4163_s18  ;;  %v2331_v39 = vadd.f32 0.5, %v2295_v29  ;;  %v5820_v60 = vpop.permute.xlu1 %2483  ;;  %v5830_v30 = vpop.permute.xlu0 %2485 }
 0x24b   : > { %v4004_v58 = vpop.eup %4003  ;;  %4007 = vtanh.f32 %v2225_v0  ;;  %6589 = vst [vmem:[#allocation4_spill] sm:$0xff] %v5820_v60  ;;  %6590 = vst [vmem:[#allocation14_spill] sm:$0xff] %v5830_v30 }
 0x24c   : > { %v2329_v53 = vadd.f32 0.5, %v2293_v51  ;;  %v2190_v63 = vmul.f32 0.5, %v2107_v6  ;;  %v2296_v24 = vmul.f32 0.5, %v4004_v58  ;;  %v5828_v32 = vsel %vm2168_vm0, %v2331_v39, %v4000_v28 }
 0x24d   : > { %v4006_v52 = vpop.eup %4005 }
 0x24e   : > { %v5814_v48 = vsel %vm2168_vm0, %v2329_v53, %v4002_v45  ;;  %v2226_v50 = vsel %vm2168_vm0, %v2190_v63, %v2107_v6  ;;  %v2294_v13 = vmul.f32 0.5, %v4006_v52  ;;  %v1934_v7 = vpop.f32.mrf.mxu0  ;;  %v2332_v4 = vadd.f32 0.5, %v2296_v24  ;;  %v5843_v53 = vpop.permute.xlu1 %2487 }
 0x24f   : > { %4009 = vtanh.f32 %v2226_v50  ;;  %2669 = vrot.lane.b32.xlu0 %v5814_v48, %s4163_s18  ;;  %v1935_v51 = vadd.f32 %v5608_v25, %v1934_v7  ;;  %6591 = vst [vmem:[#allocation10_spill] sm:$0xff] %v5843_v53  ;;  %v5845_v63 = vpop.permute.xlu0 %2489 }
 0x250   : > { %v2330_v57 = vadd.f32 0.5, %v2294_v13  ;;  %v1936_v21 = vpop.f32.mrf.mxu0  ;;  %v5841_v6 = vsel %vm2168_vm0, %v2332_v4, %v4004_v58  ;;  %6592 = vst [vmem:[#allocation6_spill] sm:$0xff] %v5845_v63 }
 0x251   : > { %v2112_v39 = vadd.f32 %v3840_v5, %v1935_v51 }
 0x252   : > { %v5824_v62 = vsel %vm2168_vm0, %v2330_v57, %v4006_v52  ;;  %v1937_v45 = vpop.f32.mrf.mxu0  ;;  %v5852_v7 = vpop.permute.xlu1 %2491 }
 0x253   : > { %2671 = vrot.lane.b32.xlu1 %v5824_v62, %s4163_s18  ;;  %2673 = vrot.lane.b32.xlu0 %v5828_v32, %s4163_s18  ;;  %v5836_v29 = vpop.f32.mrf.mxu1  ;;  %v1938_v50 = vadd.f32 %v5608_v25, %v1937_v45  ;;  %6593 = vst [vmem:[#allocation17_spill] sm:$0xff] %v5852_v7  ;;  %v5854_v21 = vpop.permute.xlu0 %2493  ;;  %v2191_v4 = vmul.f32 0.5, %v2112_v39  ;;  %v1967_v45 = vadd.f32 %v5608_v25, %v5587_v9 }
 0x254   : > { %v1939_v0 = vpop.f32.mrf.mxu0  ;;  %6594 = vst [vmem:[#allocation8_spill] sm:$0xff] %v5854_v21 }
 0x255   : > { %v2119_v28 = vpop.f32.mrf.mxu1  ;;  %v2115_v0 = vadd.f32 %v3841_v23, %v1938_v50 }
 0x257   : > { %2675 = vrot.lane.b32.xlu1 %v5841_v6, %s4163_s18  ;;  %v5850_v24 = vpop.f32.mrf.mxu1  ;;  %v2192_v7 = vmul.f32 0.5, %v2115_v0  ;;  %v5871_v60 = vpop.permute.xlu0 %2497 }
 0x258   : > { %v4008_v52 = vpop.eup %4007  ;;  %6596 = vst [vmem:[#allocation16_spill] sm:$0xff] %v5871_v60 }
 0x259   : > { %v2297_v13 = vmul.f32 0.5, %v4008_v52  ;;  %v2122_v30 = vpop.f32.mrf.mxu1 }
 0x25b   : > { %v2333_v57 = vadd.f32 0.5, %v2297_v13  ;;  %v1959_v13 = vadd.f32 %v5608_v25, %v5581_v37  ;;  %v5890_v56 = vpop.permute.xlu0 %2501 }
 0x25c   : > { %v4010_v58 = vpop.eup %4009 }
 0x25d   : > { %v5858_v63 = vsel %vm2168_vm0, %v2333_v57, %v4008_v52  ;;  %v2298_v53 = vmul.f32 0.5, %v4010_v58  ;;  %v2227_v52 = vsel %vm2168_vm0, %v2191_v4, %v2112_v39  ;;  %v5869_v57 = vpop.permute.xlu1 %2495  ;;  %v1962_v39 = vadd.f32 %v5608_v25, %v5583_v61 }
 0x25e   : > { %2677 = vrot.lane.b32.xlu0 %v5858_v63, %s4163_s18  ;;  %v1942_v5 = vpop.f32.mrf.mxu0  ;;  %6595 = vst [vmem:[#allocation7_spill] sm:$0xff] %v5869_v57  ;;  %v1970_v4 = vadd.f32 %v5608_v25, %v5589_v20  ;;  %4011 = vtanh.f32 %v2227_v52 }
 0x25f   : > { %v2334_v51 = vadd.f32 0.5, %v2298_v53  ;;  %v1943_v21 = vadd.f32 %v5608_v25, %v1942_v5 }
 0x260   : > { %v1944_v23 = vpop.f32.mrf.mxu0  ;;  %v3848_v50 = vpop.f32.mrf.mxu1 }
 0x261   : > { %v2144_v26 = vadd.f32 %v3848_v50, %v1967_v45  ;;  %v5875_v9 = vsel %vm2168_vm0, %v2334_v51, %v4010_v58  ;;  %v2120_v60 = vadd.f32 %v2119_v28, %v1943_v21  ;;  %v2228_v58 = vsel %vm2168_vm0, %v2192_v7, %v2115_v0  ;;  %v5887_v57 = vpop.permute.xlu1 %2499 }
 0x262   : > { %2679 = vrot.lane.b32.xlu1 %v5875_v9, %s4163_s18  ;;  %v1945_v37 = vpop.f32.mrf.mxu0  ;;  %v2135_v53 = vpop.f32.mrf.mxu1 }
 0x263   : > { %v2199_v5 = vmul.f32 0.5, %v2144_v26  ;;  %v2136_v23 = vadd.f32 %v2135_v53, %v1959_v13  ;;  %v1946_v13 = vadd.f32 %v5608_v25, %v1945_v37  ;;  %v2193_v21 = vmul.f32 0.5, %v2120_v60 }
 0x264   : > { %v1947_v45 = vpop.f32.mrf.mxu0  ;;  %v3849_v50 = vpop.f32.mrf.mxu1 }
 0x265   : > { %v2235_v51 = vsel %vm2168_vm0, %v2199_v5, %v2144_v26  ;;  %v2197_v53 = vmul.f32 0.5, %v2136_v23  ;;  %v2147_v61 = vadd.f32 %v3849_v50, %v1970_v4  ;;  %v2123_v0 = vadd.f32 %v2122_v30, %v1946_v13  ;;  %v5894_v52 = vpop.permute.xlu1 %2503 }
 0x266   : > { %v2138_v15 = vpop.f32.mrf.mxu1  ;;  %4013 = vtanh.f32 %v2235_v51  ;;  %v1983_v4 = vadd.f32 %v5608_v25, %v5599_v54  ;;  %v1975_v30 = vadd.f32 %v5608_v25, %v5591_v31  ;;  %v2229_v45 = vsel %vm2168_vm0, %v2193_v21, %v2120_v60 }
 0x267   : > { %v2233_v20 = vsel %vm2168_vm0, %v2197_v53, %v2136_v23  ;;  %v2139_v28 = vadd.f32 %v2138_v15, %v1962_v39  ;;  %4015 = vtanh.f32 %v2228_v58  ;;  %v2200_v7 = vmul.f32 0.5, %v2147_v61  ;;  %v5903_v39 = vpop.permute.xlu0 %2505 }
 0x268   : > { %4017 = vtanh.f32 %v2233_v20  ;;  %6597 = vst [vmem:[#allocation11_spill] sm:$0xff] %v5903_v39  ;;  %v2194_v51 = vmul.f32 0.5, %v2123_v0  ;;  %v1978_v31 = vadd.f32 %v5608_v25, %v5593_v14  ;;  %v1986_v60 = vadd.f32 %v5608_v25, %v5601_v16 }
 0x269   : > { %v2198_v26 = vmul.f32 0.5, %v2139_v28  ;;  %v2236_v37 = vsel %vm2168_vm0, %v2200_v7, %v2147_v61 }
 0x26a   : > { %v1950_v5 = vpop.f32.mrf.mxu0  ;;  %4019 = vtanh.f32 %v2236_v37 }
 0x26b   : > { %v2234_v23 = vsel %vm2168_vm0, %v2198_v26, %v2139_v28  ;;  %v1951_v15 = vadd.f32 %v5608_v25, %v1950_v5  ;;  %v5911_v26 = vpop.permute.xlu1 %2507  ;;  %v4012_v5 = vpop.eup %4011 }
 0x26c   : > { %v1952_v50 = vpop.f32.mrf.mxu0  ;;  %v3852_v58 = vpop.f32.mrf.mxu1  ;;  %4021 = vtanh.f32 %v2234_v23  ;;  %6598 = vst [vmem:[#allocation9_spill] sm:$0xff] %v5911_v26 }
 0x26d   : > { %v2128_v54 = vadd.f32 %v5836_v29, %v1951_v15  ;;  %v2160_v13 = vadd.f32 %v3852_v58, %v1983_v4  ;;  %4023 = vtanh.f32 %v2229_v45  ;;  %v2230_v29 = vsel %vm2168_vm0, %v2194_v51, %v2123_v0 }
 0x26e   : > { %v1953_v53 = vpop.f32.mrf.mxu0  ;;  %v2151_v61 = vpop.f32.mrf.mxu1 }
 0x26f   : > { %v2203_v20 = vmul.f32 0.5, %v2160_v13  ;;  %v1954_v28 = vadd.f32 %v5608_v25, %v1953_v53  ;;  %v2152_v7 = vadd.f32 %v2151_v61, %v1975_v30  ;;  %v2195_v4 = vmul.f32 0.5, %v2128_v54  ;;  %v5921_v30 = vpop.permute.xlu0 %2509 }
 0x270   : > { %v1955_v21 = vpop.f32.mrf.mxu0  ;;  %v3853_v37 = vpop.f32.mrf.mxu1  ;;  %6599 = vst [vmem:[#allocation3_spill] sm:$0xff] %v5921_v30  ;;  %v2299_v53 = vmul.f32 0.5, %v4012_v5 }
 0x271   : > { %v2239_v23 = vsel %vm2168_vm0, %v2203_v20, %v2160_v13  ;;  %v2201_v15 = vmul.f32 0.5, %v2152_v7  ;;  %v2131_v50 = vadd.f32 %v5850_v24, %v1954_v28  ;;  %v2163_v14 = vadd.f32 %v3853_v37, %v1986_v60  ;;  %v5928_v20 = vpop.permute.xlu1 %2511 }
 0x272   : > { %v2154_v58 = vpop.f32.mrf.mxu1  ;;  %4025 = vtanh.f32 %v2239_v23  ;;  %v2231_v13 = vsel %vm2168_vm0, %v2195_v4, %v2128_v54  ;;  %6600 = vst [vmem:[#allocation2_spill] sm:$0xff] %v5928_v20  ;;  %v2335_v23 = vadd.f32 0.5, %v2299_v53 }
 0x273   : > { %v2237_v16 = vsel %vm2168_vm0, %v2201_v15, %v2152_v7  ;;  %v2155_v25 = vadd.f32 %v2154_v58, %v1978_v31  ;;  %v4014_v45 = vpop.eup %4013  ;;  %4027 = vtanh.f32 %v2230_v29  ;;  %v2204_v0 = vmul.f32 0.5, %v2163_v14  ;;  %v5934_v31 = vpop.permute.xlu0 %2513 }
 0x274   : > { %v4016_v51 = vpop.eup %4015  ;;  %4029 = vtanh.f32 %v2237_v16  ;;  %v2307_v24 = vmul.f32 0.5, %v4014_v45  ;;  %v2196_v60 = vmul.f32 0.5, %v2131_v50  ;;  %6601 = vst [vmem:[#allocation13_spill] sm:$0xff] %v5934_v31  ;;  %v5948_v53 = vsel %vm2168_vm0, %v2335_v23, %v4012_v5 }
 0x275   : > { %v2202_v61 = vmul.f32 0.5, %v2155_v25  ;;  %v4018_v28 = vpop.eup %4017  ;;  %v2240_v21 = vsel %vm2168_vm0, %v2204_v0, %v2163_v14  ;;  %v2300_v54 = vmul.f32 0.5, %v4016_v51 }
 0x276   : > { %4031 = vtanh.f32 %v2240_v21  ;;  %v2343_v37 = vadd.f32 0.5, %v2307_v24  ;;  %v2305_v4 = vmul.f32 0.5, %v4018_v28  ;;  %v2232_v14 = vsel %vm2168_vm0, %v2196_v60, %v2131_v50 }
 0x277   : > { %v2238_v7 = vsel %vm2168_vm0, %v2202_v61, %v2155_v25  ;;  %v4020_v29 = vpop.eup %4019  ;;  %4033 = vtanh.f32 %v2231_v13  ;;  %v5944_v25 = vpop.permute.xlu1 %2515  ;;  %v2336_v13 = vadd.f32 0.5, %v2300_v54 }
 0x278   : > { %4035 = vtanh.f32 %v2238_v7  ;;  %v5938_v15 = vsel %vm2168_vm0, %v2343_v37, %v4014_v45  ;;  %v2308_v58 = vmul.f32 0.5, %v4020_v29  ;;  %6602 = vst [vmem:[#allocation18_spill] sm:$0xff] %v5944_v25  ;;  %v2341_v45 = vadd.f32 0.5, %v2305_v4  ;;  %v5950_v21 = vpop.permute.xlu0 %2517 }
 0x279   : > { %v4022_v16 = vpop.eup %4021  ;;  %2697 = vrot.lane.b32.xlu0 %v5938_v15, %s4163_s18  ;;  %4037 = vtanh.f32 %v2232_v14  ;;  %v5962_v37 = vsel %vm2168_vm0, %v2336_v13, %v4016_v51 }
 0x27a   : > { %v2344_v0 = vadd.f32 0.5, %v2308_v58  ;;  %v4024_v61 = vpop.eup %4023  ;;  %v2306_v24 = vmul.f32 0.5, %v4022_v16  ;;  %v5966_v23 = vsel %vm2168_vm0, %v2341_v45, %v4018_v28 }
 0x27b   : > { %v2301_v5 = vmul.f32 0.5, %v4024_v61 }
 0x27c   : > { %v5954_v50 = vsel %vm2168_vm0, %v2344_v0, %v4020_v29  ;;  %v2342_v54 = vadd.f32 0.5, %v2306_v24  ;;  %v5968_v29 = vpop.permute.xlu1 %2519  ;;  %v5970_v4 = vpop.permute.xlu0 %2521 }
 0x27d   : > { %2681 = vrot.lane.b32.xlu0 %v5948_v53, %s4163_s18  ;;  %2699 = vrot.lane.b32.xlu1 %v5954_v50, %s4163_s18  ;;  %6603 = vst [vmem:[#allocation20_spill] sm:$0xff] %v5970_v4  ;;  %v2337_v13 = vadd.f32 0.5, %v2301_v5 }
 0x27e   : > { %v5978_v28 = vsel %vm2168_vm0, %v2342_v54, %v4022_v16 }
 0x27f   : > { %v4026_v60 = vpop.eup %4025  ;;  %v5994_v16 = vsel %vm2168_vm0, %v2337_v13, %v4024_v61 }
 0x280   : > { %v4028_v7 = vpop.eup %4027  ;;  %v2311_v58 = vmul.f32 0.5, %v4026_v60  ;;  %v5980_v24 = vpop.permute.xlu1 %2523 }
 0x281   : > { %v4030_v14 = vpop.eup %4029  ;;  %2683 = vrot.lane.b32.xlu1 %v5962_v37, %s4163_s18  ;;  %2693 = vrot.lane.b32.xlu0 %v5966_v23, %s4163_s18  ;;  %v2302_v20 = vmul.f32 0.5, %v4028_v7  ;;  %6604 = vst [vmem:[#allocation19_spill] sm:$0xff] %v5980_v24  ;;  %v5990_v5 = vpop.permute.xlu0 %2525 }
 0x282   : > { %v2347_v0 = vadd.f32 0.5, %v2311_v58  ;;  %v2309_v45 = vmul.f32 0.5, %v4030_v14 }
 0x283   : > { %v4032_v51 = vpop.eup %4031  ;;  %v2338_v54 = vadd.f32 0.5, %v2302_v20 }
 0x284   : > { %v4034_v30 = vpop.eup %4033  ;;  %v5984_v4 = vsel %vm2168_vm0, %v2347_v0, %v4026_v60  ;;  %v2312_v26 = vmul.f32 0.5, %v4032_v51  ;;  %v2345_v25 = vadd.f32 0.5, %v2309_v45 }
 0x285   : > { %v4036_v39 = vpop.eup %4035  ;;  %2695 = vrot.lane.b32.xlu1 %v5978_v28, %s4163_s18  ;;  %2705 = vrot.lane.b32.xlu0 %v5984_v4, %s4163_s18  ;;  %v2303_v24 = vmul.f32 0.5, %v4034_v30  ;;  %v6008_v61 = vsel %vm2168_vm0, %v2338_v54, %v4028_v7 }
 0x286   : > { %v2348_v58 = vadd.f32 0.5, %v2312_v26  ;;  %v2310_v60 = vmul.f32 0.5, %v4036_v39  ;;  %v4038_v31 = vpop.eup %4037  ;;  %v6004_v26 = vpop.permute.xlu1 %2527  ;;  %v6012_v45 = vsel %vm2168_vm0, %v2345_v25, %v4030_v14 }
 0x287   : > { %6605 = vst [vmem:[#allocation21_spill] sm:$0xff] %v6004_v26  ;;  %v2339_v20 = vadd.f32 0.5, %v2303_v24  ;;  %v2304_v13 = vmul.f32 0.5, %v4038_v31 }
 0x288   : > { %v5998_v0 = vsel %vm2168_vm0, %v2348_v58, %v4032_v51  ;;  %v2346_v51 = vadd.f32 0.5, %v2310_v60  ;;  %v2642_v58 = vpop.permute.xlu0 %2641 }
 0x289   : > { %2685 = vrot.lane.b32.xlu0 %v5994_v16, %s4163_s18  ;;  %2707 = vrot.lane.b32.xlu1 %v5998_v0, %s4163_s18  ;;  %v6020_v26 = vsel %vm2168_vm0, %v2339_v20, %v4034_v30  ;;  %v2340_v7 = vadd.f32 0.5, %v2304_v13  ;;  %v2747_v14 = vmul.f32 %v2642_v58, %v5644_v10 }
 0x28a   : > { %v6024_v24 = vsel %vm2168_vm0, %v2346_v51, %v4036_v39 }
 0x28b   : > { %v2644_v54 = vpop.permute.xlu1 %2643  ;;  %v6033_v60 = vsel %vm2168_vm0, %v2340_v7, %v4038_v31 }
 0x28c   : > { %v2638_v25 = vpop.permute.xlu0 %2637  ;;  %v2748_v20 = vmul.f32 %v2644_v54, %v5660_v2 }
 0x28d   : > { %2687 = vrot.lane.b32.xlu1 %v6008_v61, %s4163_s18  ;;  %2701 = vrot.lane.b32.xlu0 %v6012_v45, %s4163_s18  ;;  %v2745_v13 = vmul.f32 %v2638_v25, %v5656_v38 }
 0x28f   : > { %v2640_v39 = vpop.permute.xlu1 %2639 }
 0x290   : > { %v2746_v22 = vmul.f32 %v2640_v39, %v5672_v34 }
 0x291   : > { %2703 = vrot.lane.b32.xlu1 %v6024_v24, %s4163_s18  ;;  %2689 = vrot.lane.b32.xlu0 %v6020_v26, %s4163_s18 }
 0x295   : > { %2691 = vrot.lane.b32.xlu1 %v6033_v60, %s4163_s18  ;;  %2821 = vrot.lane.b32.xlu0 %v2747_v14, %s4163_s18 }
 0x296   : > { %v2650_v30 = vpop.permute.xlu0 %2649 }
 0x297   : > { %v2751_v31 = vmul.f32 %v2650_v30, %v5686_v43 }
 0x299   : > { %2823 = vrot.lane.b32.xlu1 %v2748_v20, %s4163_s18  ;;  %2817 = vrot.lane.b32.xlu0 %v2745_v13, %s4163_s18 }
 0x29a   : > { %v2652_v51 = vpop.permute.xlu1 %2651  ;;  %v2646_v58 = vpop.permute.xlu0 %2645 }
 0x29b   : > { %v2752_v7 = vmul.f32 %v2652_v51, %v5697_v18  ;;  %v2749_v54 = vmul.f32 %v2646_v58, %v5693_v40 }
 0x29d   : > { %2819 = vrot.lane.b32.xlu1 %v2746_v22, %s4163_s18  ;;  %2829 = vrot.lane.b32.xlu0 %v2751_v31, %s4163_s18 }
 0x29e   : > { %v2648_v14 = vpop.permute.xlu1 %2647 }
 0x29f   : > { %v2750_v25 = vmul.f32 %v2648_v14, %v5710_v36 }
 0x2a1   : > { %2831 = vrot.lane.b32.xlu1 %v2752_v7, %s4163_s18  ;;  %2825 = vrot.lane.b32.xlu0 %v2749_v54, %s4163_s18 }
 0x2a4   : > { %v2658_v20 = vpop.permute.xlu0 %2657 }
 0x2a5   : > { %v2755_v39 = vmul.f32 %v2658_v20, %v5724_v46  ;;  %2827 = vrot.lane.b32.xlu1 %v2750_v25, %s4163_s18 }
 0x2a7   : > { %2837 = vrot.lane.b32.xlu0 %v2755_v39, %s4163_s18  ;;  %v2660_v30 = vpop.permute.xlu1 %2659 }
 0x2a8   : > { %v2654_v13 = vpop.permute.xlu0 %2653  ;;  %v2756_v51 = vmul.f32 %v2660_v30, %v5742_v11 }
 0x2a9   : > { %v2753_v22 = vmul.f32 %v2654_v13, %v5738_v12 }
 0x2aa   : > { %2839 = vrot.lane.b32.xlu1 %v2756_v51, %s4163_s18 }
 0x2ab   : > { %2833 = vrot.lane.b32.xlu0 %v2753_v22, %s4163_s18  ;;  %v2656_v31 = vpop.permute.xlu1 %2655 }
 0x2ac   : > { %v2754_v58 = vmul.f32 %v2656_v31, %v5756_v35 }
 0x2ae   : > { %2835 = vrot.lane.b32.xlu1 %v2754_v58, %s4163_s18 }
 0x2b4   : > { %v2662_v7 = vpop.permute.xlu0 %2661 }
 0x2b5   : > { %v2757_v54 = vmul.f32 %v2662_v7, %v5774_v42 }
 0x2b7   : > { %2841 = vrot.lane.b32.xlu0 %v2757_v54, %s4163_s18 }
 0x2b8   : > { %v2664_v14 = vpop.permute.xlu1 %2663  ;;  %v2666_v25 = vpop.permute.xlu0 %2665 }
 0x2b9   : > { %v2758_v20 = vmul.f32 %v2664_v14, %v5785_v17  ;;  %v2759_v39 = vmul.f32 %v2666_v25, %v5789_v3 }
 0x2bb   : > { %2843 = vrot.lane.b32.xlu1 %v2758_v20, %s4163_s18  ;;  %2845 = vrot.lane.b32.xlu0 %v2759_v39, %s4163_s18 }
 0x2bc   : > { %v2668_v30 = vpop.permute.xlu1 %2667 }
 0x2bd   : > { %v2760_v13 = vmul.f32 %v2668_v30, %v5802_v55 }
 0x2bf   : > { %2847 = vrot.lane.b32.xlu1 %v2760_v13, %s4163_s18 }
 0x2c1   : > { %v2670_v51 = vpop.permute.xlu0 %2669 }
 0x2c2   : > { %v2761_v22 = vmul.f32 %v2670_v51, %v5814_v48 }
 0x2c4   : > { %2849 = vrot.lane.b32.xlu0 %v2761_v22, %s4163_s18 }
 0x2c5   : > { %v2672_v31 = vpop.permute.xlu1 %2671  ;;  %v2674_v58 = vpop.permute.xlu0 %2673 }
 0x2c6   : > { %v2762_v7 = vmul.f32 %v2672_v31, %v5824_v62  ;;  %v2763_v54 = vmul.f32 %v2674_v58, %v5828_v32 }
 0x2c8   : > { %2851 = vrot.lane.b32.xlu1 %v2762_v7, %s4163_s18  ;;  %2853 = vrot.lane.b32.xlu0 %v2763_v54, %s4163_s18 }
 0x2c9   : > { %v2676_v14 = vpop.permute.xlu1 %2675 }
 0x2ca   : > { %v2764_v25 = vmul.f32 %v2676_v14, %v5841_v6 }
 0x2cc   : > { %2855 = vrot.lane.b32.xlu1 %v2764_v25, %s4163_s18 }
 0x2d0   : > { %v2678_v20 = vpop.permute.xlu0 %2677 }
 0x2d1   : > { %v2765_v39 = vmul.f32 %v2678_v20, %v5858_v63 }
 0x2d3   : > { %2857 = vrot.lane.b32.xlu0 %v2765_v39, %s4163_s18 }
 0x2d4   : > { %v2680_v30 = vpop.permute.xlu1 %2679 }
 0x2d5   : > { %v2766_v13 = vmul.f32 %v2680_v30, %v5875_v9 }
 0x2d7   : > { %2859 = vrot.lane.b32.xlu1 %v2766_v13, %s4163_s18 }
 0x2eb   : > { %v2698_v51 = vpop.permute.xlu0 %2697 }
 0x2ec   : > { %v2775_v22 = vmul.f32 %v2698_v51, %v5938_v15 }
 0x2ee   : > { %2877 = vrot.lane.b32.xlu0 %v2775_v22, %s4163_s18 }
 0x2ef   : > { %v2700_v31 = vpop.permute.xlu1 %2699  ;;  %v2682_v58 = vpop.permute.xlu0 %2681 }
 0x2f0   : > { %v2776_v7 = vmul.f32 %v2700_v31, %v5954_v50  ;;  %v2767_v54 = vmul.f32 %v2682_v58, %v5948_v53 }
 0x2f2   : > { %2879 = vrot.lane.b32.xlu1 %v2776_v7, %s4163_s18  ;;  %2861 = vrot.lane.b32.xlu0 %v2767_v54, %s4163_s18 }
 0x2f3   : > { %v2684_v14 = vpop.permute.xlu1 %2683  ;;  %v2694_v25 = vpop.permute.xlu0 %2693 }
 0x2f4   : > { %v2768_v20 = vmul.f32 %v2684_v14, %v5962_v37  ;;  %v2773_v39 = vmul.f32 %v2694_v25, %v5966_v23 }
 0x2f6   : > { %2863 = vrot.lane.b32.xlu1 %v2768_v20, %s4163_s18  ;;  %2873 = vrot.lane.b32.xlu0 %v2773_v39, %s4163_s18 }
 0x2f7   : > { %v2696_v30 = vpop.permute.xlu1 %2695  ;;  %v2706_v13 = vpop.permute.xlu0 %2705 }
 0x2f8   : > { %v2774_v51 = vmul.f32 %v2696_v30, %v5978_v28  ;;  %v2779_v22 = vmul.f32 %v2706_v13, %v5984_v4 }
 0x2fa   : > { %2875 = vrot.lane.b32.xlu1 %v2774_v51, %s4163_s18  ;;  %2885 = vrot.lane.b32.xlu0 %v2779_v22, %s4163_s18 }
 0x2fb   : > { %v2708_v31 = vpop.permute.xlu1 %2707  ;;  %v2686_v58 = vpop.permute.xlu0 %2685 }
 0x2fc   : > { %v2780_v7 = vmul.f32 %v2708_v31, %v5998_v0  ;;  %v2769_v54 = vmul.f32 %v2686_v58, %v5994_v16  ;;  %v2567_v31 = vmul.f32 %v5734_v44, %v5644_v10 }
 0x2fe   : > { %2887 = vrot.lane.b32.xlu1 %v2780_v7, %s4163_s18  ;;  %2865 = vrot.lane.b32.xlu0 %v2769_v54, %s4163_s18 }
 0x2ff   : > { %v2688_v14 = vpop.permute.xlu1 %2687  ;;  %v2702_v25 = vpop.permute.xlu0 %2701 }
 0x300   : > { %v2770_v20 = vmul.f32 %v2688_v14, %v6008_v61  ;;  %v2777_v39 = vmul.f32 %v2702_v25, %v6012_v45  ;;  %v2565_v25 = vmul.f32 %v5718_v19, %v5656_v38 }
 0x302   : > { %2867 = vrot.lane.b32.xlu1 %v2770_v20, %s4163_s18  ;;  %2881 = vrot.lane.b32.xlu0 %v2777_v39, %s4163_s18  ;;  %v2568_v20 = vmul.f32 %v5749_v59, %v5660_v2 }
 0x303   : > { %v2704_v30 = vpop.permute.xlu1 %2703  ;;  %v2690_v13 = vpop.permute.xlu0 %2689 }
 0x304   : > { %v2778_v51 = vmul.f32 %v2704_v30, %v6024_v24  ;;  %v2771_v22 = vmul.f32 %v2690_v13, %v6020_v26 }
 0x306   : > { %2883 = vrot.lane.b32.xlu1 %v2778_v51, %s4163_s18  ;;  %2869 = vrot.lane.b32.xlu0 %v2771_v22, %s4163_s18  ;;  %v2566_v51 = vmul.f32 %v5726_v33, %v5672_v34  ;;  %v2571_v22 = vmul.f32 %v5768_v1, %v5686_v43 }
 0x307   : > { %v2692_v58 = vpop.permute.xlu1 %2691  ;;  %v2822_v7 = vpop.permute.xlu0 %2821 }
 0x308   : > { %v2772_v54 = vmul.f32 %v2692_v58, %v6033_v60  ;;  %v2927_v14 = vadd.f32 %v2822_v7, %v2567_v31  ;;  %v2569_v7 = vmul.f32 %v5752_v47, %v5693_v40 }
 0x30a   : > { %2871 = vrot.lane.b32.xlu1 %v2772_v54, %s4163_s18  ;;  %3397 = vrot.lane.b32.xlu0 %v2927_v14, %s4164_s16  ;;  %4039 = vtanh.f32 %v2927_v14  ;;  %v2572_v54 = vmul.f32 %v5776_v41, %v5697_v18 }
 0x30b   : > { %v2824_v44 = vpop.permute.xlu1 %2823  ;;  %v2818_v39 = vpop.permute.xlu0 %2817 }
 0x30c   : > { %v2928_v30 = vadd.f32 %v2824_v44, %v2568_v20  ;;  %v2925_v13 = vadd.f32 %v2818_v39, %v2565_v25  ;;  %v2570_v20 = vmul.f32 %v5764_v27, %v5710_v36 }
 0x30e   : > { %3399 = vrot.lane.b32.xlu1 %v2928_v30, %s4164_s16  ;;  %3393 = vrot.lane.b32.xlu0 %v2925_v13, %s4164_s16  ;;  %4041 = vtanh.f32 %v2928_v30 }
 0x30f   : > { %v2820_v19 = vpop.permute.xlu1 %2819  ;;  %v2830_v59 = vpop.permute.xlu0 %2829  ;;  %4043 = vtanh.f32 %v2925_v13 }
 0x310   : > { %v2926_v31 = vadd.f32 %v2820_v19, %v2566_v51  ;;  %v2931_v58 = vadd.f32 %v2830_v59, %v2571_v22  ;;  %v2575_v51 = vmul.f32 %v5798_v49, %v5724_v46 }
 0x312   : > { %3395 = vrot.lane.b32.xlu1 %v2926_v31, %s4164_s16  ;;  %3405 = vrot.lane.b32.xlu0 %v2931_v58, %s4164_s16  ;;  %4045 = vtanh.f32 %v2926_v31  ;;  %v2573_v31 = vmul.f32 %v5780_v8, %v5738_v12 }
 0x313   : > { %v2832_v33 = vpop.permute.xlu1 %2831  ;;  %v2826_v1 = vpop.permute.xlu0 %2825  ;;  %4047 = vtanh.f32 %v2931_v58 }
 0x314   : > { %v2932_v14 = vadd.f32 %v2832_v33, %v2572_v54  ;;  %v2929_v25 = vadd.f32 %v2826_v1, %v2569_v7  ;;  %v6606_v7 = vld [vmem:[#allocation15_spill] sm:$0xff]  ;;  %v6607_v1 = vld [vmem:[#allocation12_spill] sm:$0xff] }
 0x315   : > { %v2576_v58 = vmul.f32 %v6606_v7, %v5742_v11 }
 0x316   : > { %3407 = vrot.lane.b32.xlu1 %v2932_v14, %s4164_s16  ;;  %3401 = vrot.lane.b32.xlu0 %v2929_v25, %s4164_s16  ;;  %4049 = vtanh.f32 %v2932_v14  ;;  %v2574_v14 = vmul.f32 %v6607_v1, %v5756_v35 }
 0x317   : > { %v2828_v47 = vpop.permute.xlu1 %2827  ;;  %v4040_v39 = vpop.eup %4039  ;;  %4051 = vtanh.f32 %v2929_v25 }
 0x318   : > { %v2930_v44 = vadd.f32 %v2828_v47, %v2570_v20 }
 0x319   : > { %v2838_v41 = vpop.permute.xlu0 %2837 }
 0x31a   : > { %3403 = vrot.lane.b32.xlu1 %v2930_v44, %s4164_s16  ;;  %3037 = vrot.lane.b32.xlu0 %v4040_v39, %s4163_s18  ;;  %v2935_v22 = vadd.f32 %v2838_v41, %v2575_v51  ;;  %4053 = vtanh.f32 %v2930_v44  ;;  %v6608_v39 = vld [vmem:[#allocation5_spill] sm:$0xff] }
 0x31b   : > { %v4042_v30 = vpop.eup %4041  ;;  %v2577_v41 = vmul.f32 %v6608_v39, %v5774_v42 }
 0x31c   : > { %v4044_v13 = vpop.eup %4043  ;;  %v2840_v27 = vpop.permute.xlu1 %2839  ;;  %4055 = vtanh.f32 %v2935_v22 }
 0x31d   : > { %v2834_v59 = vpop.permute.xlu0 %2833  ;;  %v2936_v49 = vadd.f32 %v2840_v27, %v2576_v58 }
 0x31e   : > { %3039 = vrot.lane.b32.xlu1 %v4042_v30, %s4163_s18  ;;  %3033 = vrot.lane.b32.xlu0 %v4044_v13, %s4163_s18  ;;  %v2933_v54 = vadd.f32 %v2834_v59, %v2573_v31  ;;  %v6610_v31 = vld [vmem:[#allocation14_spill] sm:$0xff] }
 0x31f   : > { %v4046_v19 = vpop.eup %4045  ;;  %4057 = vtanh.f32 %v2936_v49 }
 0x320   : > { %v2836_v33 = vpop.permute.xlu1 %2835  ;;  %v4048_v8 = vpop.eup %4047  ;;  %4059 = vtanh.f32 %v2933_v54 }
 0x321   : > { %v2934_v25 = vadd.f32 %v2836_v33, %v2574_v14 }
 0x322   : > { %3035 = vrot.lane.b32.xlu1 %v4046_v19, %s4163_s18  ;;  %3413 = vrot.lane.b32.xlu0 %v2935_v22, %s4164_s16  ;;  %v6609_v19 = vld [vmem:[#allocation4_spill] sm:$0xff]  ;;  %v2579_v22 = vmul.f32 %v6610_v31, %v5789_v3 }
 0x323   : > { %v4050_v47 = vpop.eup %4049  ;;  %v2578_v59 = vmul.f32 %v6609_v19, %v5785_v17  ;;  %4061 = vtanh.f32 %v2934_v25  ;;  %v6614_v31 = vld [vmem:[#allocation8_spill] sm:$0xff] }
 0x324   : > { %v4052_v44 = vpop.eup %4051 }
 0x326   : > { %3415 = vrot.lane.b32.xlu1 %v2936_v49, %s4164_s16  ;;  %3409 = vrot.lane.b32.xlu0 %v2933_v54, %s4164_s16  ;;  %v6611_v49 = vld [vmem:[#allocation10_spill] sm:$0xff] }
 0x327   : > { %v4054_v51 = vpop.eup %4053  ;;  %v2580_v54 = vmul.f32 %v6611_v49, %v5802_v55 }
 0x329   : > { %v2842_v20 = vpop.permute.xlu0 %2841  ;;  %v4056_v14 = vpop.eup %4055 }
 0x32a   : > { %3411 = vrot.lane.b32.xlu1 %v2934_v25, %s4164_s16  ;;  %3045 = vrot.lane.b32.xlu0 %v4048_v8, %s4163_s18  ;;  %v2937_v13 = vadd.f32 %v2842_v20, %v2577_v41 }
 0x32c   : > { %4063 = vtanh.f32 %v2937_v13  ;;  %v4058_v8 = vpop.eup %4057 }
 0x32d   : > { %v2844_v30 = vpop.permute.xlu1 %2843  ;;  %v2846_v27 = vpop.permute.xlu0 %2845 }
 0x32e   : > { %3047 = vrot.lane.b32.xlu1 %v4050_v47, %s4163_s18  ;;  %3041 = vrot.lane.b32.xlu0 %v4052_v44, %s4163_s18  ;;  %v2938_v7 = vadd.f32 %v2844_v30, %v2578_v59  ;;  %v2939_v58 = vadd.f32 %v2846_v27, %v2579_v22  ;;  %v4060_v25 = vpop.eup %4059  ;;  %v6612_v47 = vld [vmem:[#allocation6_spill] sm:$0xff]  ;;  %v2583_v22 = vmul.f32 %v6614_v31, %v5828_v32 }
 0x32f   : > { %v2581_v44 = vmul.f32 %v6612_v47, %v5814_v48  ;;  %v6616_v47 = vld [vmem:[#allocation16_spill] sm:$0xff] }
 0x330   : > { %4065 = vtanh.f32 %v2938_v7  ;;  %v4062_v41 = vpop.eup %4061 }
 0x331   : > { %v2848_v33 = vpop.permute.xlu1 %2847  ;;  %4067 = vtanh.f32 %v2939_v58 }
 0x332   : > { %3043 = vrot.lane.b32.xlu1 %v4054_v51, %s4163_s18  ;;  %3417 = vrot.lane.b32.xlu0 %v2937_v13, %s4164_s16  ;;  %v2940_v1 = vadd.f32 %v2848_v33, %v2580_v54  ;;  %v6613_v13 = vld [vmem:[#allocation17_spill] sm:$0xff]  ;;  %v6615_v54 = vld [vmem:[#allocation7_spill] sm:$0xff] }
 0x333   : > { %v2582_v51 = vmul.f32 %v6613_v13, %v5824_v62  ;;  %v2586_v13 = vmul.f32 %v5887_v57, %v5875_v9  ;;  %v2587_v57 = vmul.f32 %v5890_v56, %v5948_v53 }
 0x334   : > { %4069 = vtanh.f32 %v2940_v1 }
 0x336   : > { %3419 = vrot.lane.b32.xlu1 %v2938_v7, %s4164_s16  ;;  %3421 = vrot.lane.b32.xlu0 %v2939_v58, %s4164_s16  ;;  %v2850_v20 = vpop.permute.xlu0 %2849 }
 0x337   : > { %v2941_v39 = vadd.f32 %v2850_v20, %v2581_v44  ;;  %v2585_v44 = vmul.f32 %v6616_v47, %v5858_v63 }
 0x339   : > { %4071 = vtanh.f32 %v2941_v39  ;;  %v4064_v19 = vpop.eup %4063 }
 0x33a   : > { %3423 = vrot.lane.b32.xlu1 %v2940_v1, %s4164_s16  ;;  %3053 = vrot.lane.b32.xlu0 %v4056_v14, %s4163_s18  ;;  %v2852_v30 = vpop.permute.xlu1 %2851  ;;  %v2854_v59 = vpop.permute.xlu0 %2853  ;;  %v2584_v1 = vmul.f32 %v6615_v54, %v5841_v6 }
 0x33b   : > { %v2942_v27 = vadd.f32 %v2852_v30, %v2582_v51  ;;  %v2943_v58 = vadd.f32 %v2854_v59, %v2583_v22  ;;  %v2595_v59 = vmul.f32 %v5950_v21, %v5938_v15  ;;  %v6617_v21 = vld [vmem:[#allocation13_spill] sm:$0xff] }
 0x33d   : > { %v4066_v7 = vpop.eup %4065  ;;  %4073 = vtanh.f32 %v2942_v27 }
 0x33e   : > { %3055 = vrot.lane.b32.xlu1 %v4058_v8, %s4163_s18  ;;  %3049 = vrot.lane.b32.xlu0 %v4060_v25, %s4163_s18  ;;  %v4068_v33 = vpop.eup %4067  ;;  %v2856_v49 = vpop.permute.xlu1 %2855  ;;  %4075 = vtanh.f32 %v2943_v58 }
 0x33f   : > { %v2944_v14 = vadd.f32 %v2856_v49, %v2584_v1  ;;  %v2588_v1 = vmul.f32 %v5894_v52, %v5962_v37 }
 0x341   : > { %v4070_v8 = vpop.eup %4069  ;;  %4077 = vtanh.f32 %v2944_v14 }
 0x342   : > { %3051 = vrot.lane.b32.xlu1 %v4062_v41, %s4163_s18  ;;  %3425 = vrot.lane.b32.xlu0 %v2941_v39, %s4164_s16 }
 0x345   : > { %v2858_v20 = vpop.permute.xlu0 %2857 }
 0x346   : > { %3427 = vrot.lane.b32.xlu1 %v2942_v27, %s4164_s16  ;;  %3057 = vrot.lane.b32.xlu0 %v4064_v19, %s4163_s18  ;;  %v4072_v25 = vpop.eup %4071  ;;  %v2945_v39 = vadd.f32 %v2858_v20, %v2585_v44  ;;  %v6618_v20 = vld [vmem:[#allocation18_spill] sm:$0xff] }
 0x347   : > { %v2594_v47 = vmul.f32 %v6618_v20, %v5978_v28 }
 0x348   : > { %4079 = vtanh.f32 %v2945_v39 }
 0x349   : > { %v2860_v30 = vpop.permute.xlu1 %2859 }
 0x34a   : > { %3059 = vrot.lane.b32.xlu1 %v4066_v7, %s4163_s18  ;;  %3061 = vrot.lane.b32.xlu0 %v4068_v33, %s4163_s18  ;;  %v4074_v41 = vpop.eup %4073  ;;  %v2946_v51 = vadd.f32 %v2860_v30, %v2586_v13  ;;  %v2596_v7 = vmul.f32 %v5968_v29, %v5954_v50  ;;  %v6619_v30 = vld [vmem:[#allocation11_spill] sm:$0xff] }
 0x34b   : > { %v4076_v27 = vpop.eup %4075  ;;  %v2589_v13 = vmul.f32 %v6619_v30, %v5994_v16 }
 0x34c   : > { %4081 = vtanh.f32 %v2946_v51 }
 0x34e   : > { %3063 = vrot.lane.b32.xlu1 %v4070_v8, %s4163_s18  ;;  %3429 = vrot.lane.b32.xlu0 %v2943_v58, %s4164_s16  ;;  %v4078_v19 = vpop.eup %4077 }
 0x352   : > { %3431 = vrot.lane.b32.xlu1 %v2944_v14, %s4164_s16  ;;  %3065 = vrot.lane.b32.xlu0 %v4072_v25, %s4163_s18  ;;  %v2593_v14 = vmul.f32 %v6617_v21, %v5966_v23 }
 0x356   : > { %3067 = vrot.lane.b32.xlu1 %v4074_v41, %s4163_s18  ;;  %3433 = vrot.lane.b32.xlu0 %v2945_v39, %s4164_s16  ;;  %v4080_v41 = vpop.eup %4079 }
 0x35a   : > { %3435 = vrot.lane.b32.xlu1 %v2946_v51, %s4164_s16  ;;  %3069 = vrot.lane.b32.xlu0 %v4076_v27, %s4163_s18 }
 0x35e   : > { %3071 = vrot.lane.b32.xlu1 %v4078_v19, %s4163_s18 }
 0x360   : > { %v2878_v31 = vpop.permute.xlu0 %2877 }
 0x361   : > { %v2955_v22 = vadd.f32 %v2878_v31, %v2595_v59  ;;  %v4082_v59 = vpop.eup %4081  ;;  %v6620_v31 = vld [vmem:[#allocation9_spill] sm:$0xff] }
 0x363   : > { %3453 = vrot.lane.b32.xlu0 %v2955_v22, %s4164_s16  ;;  %4083 = vtanh.f32 %v2955_v22  ;;  %v6621_v22 = vld [vmem:[#allocation20_spill] sm:$0xff] }
 0x364   : > { %v2880_v58 = vpop.permute.xlu1 %2879  ;;  %v2862_v33 = vpop.permute.xlu0 %2861 }
 0x365   : > { %v2956_v49 = vadd.f32 %v2880_v58, %v2596_v7  ;;  %v2947_v54 = vadd.f32 %v2862_v33, %v2587_v57  ;;  %v2590_v57 = vmul.f32 %v6620_v31, %v6008_v61  ;;  %v2597_v7 = vmul.f32 %v6621_v22, %v6012_v45  ;;  %v6624_v31 = vld [vmem:[#allocation3_spill] sm:$0xff] }
 0x367   : > { %3455 = vrot.lane.b32.xlu1 %v2956_v49, %s4164_s16  ;;  %3437 = vrot.lane.b32.xlu0 %v2947_v54, %s4164_s16  ;;  %4085 = vtanh.f32 %v2956_v49 }
 0x368   : > { %v2864_v56 = vpop.permute.xlu1 %2863  ;;  %v2874_v8 = vpop.permute.xlu0 %2873  ;;  %4087 = vtanh.f32 %v2947_v54  ;;  %v6622_v54 = vld [vmem:[#allocation19_spill] sm:$0xff] }
 0x369   : > { %v2948_v29 = vadd.f32 %v2864_v56, %v2588_v1  ;;  %v2953_v25 = vadd.f32 %v2874_v8, %v2593_v14  ;;  %v2598_v21 = vmul.f32 %v6622_v54, %v6024_v24  ;;  %v2599_v14 = vmul.f32 %v5990_v5, %v5984_v4 }
 0x36b   : > { %3439 = vrot.lane.b32.xlu1 %v2948_v29, %s4164_s16  ;;  %3449 = vrot.lane.b32.xlu0 %v2953_v25, %s4164_s16  ;;  %4089 = vtanh.f32 %v2948_v29 }
 0x36c   : > { %v2876_v44 = vpop.permute.xlu1 %2875  ;;  %v2886_v52 = vpop.permute.xlu0 %2885  ;;  %4091 = vtanh.f32 %v2953_v25  ;;  %v6623_v25 = vld [vmem:[#allocation21_spill] sm:$0xff] }
 0x36d   : > { %v2954_v39 = vadd.f32 %v2876_v44, %v2594_v47  ;;  %v6227_v29 = vadd.f32 %v2886_v52, %v2599_v14  ;;  %v2600_v44 = vmul.f32 %v6623_v25, %v5998_v0 }
 0x36f   : > { %3451 = vrot.lane.b32.xlu1 %v2954_v39, %s4164_s16  ;;  %3073 = vrot.lane.b32.xlu0 %v4080_v41, %s4163_s18  ;;  %4093 = vtanh.f32 %v2954_v39 }
 0x370   : > { %v2888_v51 = vpop.permute.xlu1 %2887  ;;  %v2866_v27 = vpop.permute.xlu0 %2865  ;;  %4095 = vtanh.f32 %v6227_v29 }
 0x371   : > { %v2949_v19 = vadd.f32 %v2866_v27, %v2589_v13  ;;  %v4084_v47 = vpop.eup %4083  ;;  %v6239_v5 = vadd.f32 %v2888_v51, %v2600_v44 }
 0x373   : > { %3075 = vrot.lane.b32.xlu1 %v4082_v59, %s4163_s18  ;;  %3441 = vrot.lane.b32.xlu0 %v2949_v19, %s4164_s16  ;;  %4097 = vtanh.f32 %v6239_v5 }
 0x374   : > { %v2868_v58 = vpop.permute.xlu1 %2867  ;;  %v2882_v33 = vpop.permute.xlu0 %2881  ;;  %4099 = vtanh.f32 %v2949_v19 }
 0x375   : > { %v2950_v49 = vadd.f32 %v2868_v58, %v2590_v57  ;;  %v2957_v1 = vadd.f32 %v2882_v33, %v2597_v7  ;;  %v4086_v41 = vpop.eup %4085  ;;  %v2591_v57 = vmul.f32 %v6624_v31, %v6020_v26  ;;  %v6625_v33 = vld [vmem:[#allocation2_spill] sm:$0xff] }
 0x376   : > { %v4088_v30 = vpop.eup %4087  ;;  %v2592_v54 = vmul.f32 %v6625_v33, %v6033_v60 }
 0x377   : > { %3443 = vrot.lane.b32.xlu1 %v2950_v49, %s4164_s16  ;;  %3457 = vrot.lane.b32.xlu0 %v2957_v1, %s4164_s16  ;;  %4101 = vtanh.f32 %v2950_v49 }
 0x378   : > { %v2884_v56 = vpop.permute.xlu1 %2883  ;;  %v2870_v8 = vpop.permute.xlu0 %2869  ;;  %4103 = vtanh.f32 %v2957_v1 }
 0x379   : > { %v2958_v20 = vadd.f32 %v2884_v56, %v2598_v21  ;;  %v4090_v51 = vpop.eup %4089  ;;  %v2951_v58 = vadd.f32 %v2870_v8, %v2591_v57 }
 0x37a   : > { %v4092_v59 = vpop.eup %4091 }
 0x37b   : > { %3459 = vrot.lane.b32.xlu1 %v2958_v20, %s4164_s16  ;;  %3093 = vrot.lane.b32.xlu0 %v4084_v47, %s4163_s18  ;;  %4105 = vtanh.f32 %v2958_v20 }
 0x37c   : > { %v2872_v52 = vpop.permute.xlu1 %2871  ;;  %v3398_v39 = vpop.permute.xlu0 %3397  ;;  %4107 = vtanh.f32 %v2951_v58 }
 0x37d   : > { %3503 = vst.msk [vmem:[%s6235_s14 + $0x10] sm:$0xff] %vm1563_vm14, %v3398_v39  ;;  %v4094_v19 = vpop.eup %4093  ;;  %v2952_v14 = vadd.f32 %v2872_v52, %v2592_v54 }
 0x37e   : > { %v4096_v1 = vpop.eup %4095 }
 0x37f   : > { %3095 = vrot.lane.b32.xlu1 %v4086_v41, %s4163_s18  ;;  %3077 = vrot.lane.b32.xlu0 %v4088_v30, %s4163_s18  ;;  %4109 = vtanh.f32 %v2952_v14 }
 0x380   : > { %v3400_v13 = vpop.permute.xlu1 %3399  ;;  %v3394_v27 = vpop.permute.xlu0 %3393 }
 0x381   : > { %3504 = vst.msk [vmem:[%s6235_s14 + $0x18] sm:$0xff] %vm1563_vm14, %v3400_v13  ;;  %3501 = vst.msk [vmem:[%s6235_s14] sm:$0xff] %vm1563_vm14, %v3394_v27  ;;  %v4098_v47 = vpop.eup %4097 }
 0x382   : > { %v4100_v20 = vpop.eup %4099 }
 0x383   : > { %3079 = vrot.lane.b32.xlu1 %v4090_v51, %s4163_s18  ;;  %3089 = vrot.lane.b32.xlu0 %v4092_v59, %s4163_s18 }
 0x384   : > { %v3396_v22 = vpop.permute.xlu1 %3395  ;;  %v3406_v7 = vpop.permute.xlu0 %3405 }
 0x385   : > { %3502 = vst.msk [vmem:[%s6235_s14 + $0x8] sm:$0xff] %vm1563_vm14, %v3396_v22  ;;  %3507 = vst.msk [vmem:[%s6235_s14 + $0x30] sm:$0xff] %vm1563_vm14, %v3406_v7  ;;  %v4102_v52 = vpop.eup %4101 }
 0x386   : > { %v4104_v39 = vpop.eup %4103 }
 0x387   : > { %3091 = vrot.lane.b32.xlu1 %v4094_v19, %s4163_s18  ;;  %3445 = vrot.lane.b32.xlu0 %v2951_v58, %s4164_s16 }
 0x388   : > { %v3408_v49 = vpop.permute.xlu1 %3407  ;;  %v3402_v21 = vpop.permute.xlu0 %3401 }
 0x389   : > { %3508 = vst.msk [vmem:[%s6235_s14 + $0x38] sm:$0xff] %vm1563_vm14, %v3408_v49  ;;  %3505 = vst.msk [vmem:[%s6235_s14 + $0x20] sm:$0xff] %vm1563_vm14, %v3402_v21  ;;  %v4106_v13 = vpop.eup %4105 }
 0x38a   : > { %v4108_v27 = vpop.eup %4107 }
 0x38b   : > { %3447 = vrot.lane.b32.xlu1 %v2952_v14, %s4164_s16  ;;  %3101 = vrot.lane.b32.xlu0 %v4096_v1, %s4163_s18 }
 0x38c   : > { %v3404_v56 = vpop.permute.xlu1 %3403  ;;  %v3038_v8 = vpop.permute.xlu0 %3037 }
 0x38d   : > { %3506 = vst.msk [vmem:[%s6235_s14 + $0x28] sm:$0xff] %vm1563_vm14, %v3404_v56  ;;  %v3143_v31 = vmul.f32 %v3038_v8, %v5644_v10  ;;  %v4110_v57 = vpop.eup %4109 }
 0x38f   : > { %3103 = vrot.lane.b32.xlu1 %v4098_v47, %s4163_s18  ;;  %3081 = vrot.lane.b32.xlu0 %v4100_v20, %s4163_s18 }
 0x390   : > { %v3040_v25 = vpop.permute.xlu1 %3039  ;;  %v3034_v44 = vpop.permute.xlu0 %3033 }
 0x391   : > { %v3144_v58 = vmul.f32 %v3040_v25, %v5660_v2  ;;  %v3141_v19 = vmul.f32 %v3034_v44, %v5656_v38 }
 0x393   : > { %3083 = vrot.lane.b32.xlu1 %v4102_v52, %s4163_s18  ;;  %3097 = vrot.lane.b32.xlu0 %v4104_v39, %s4163_s18 }
 0x394   : > { %v3036_v41 = vpop.permute.xlu1 %3035  ;;  %v3414_v30 = vpop.permute.xlu0 %3413 }
 0x395   : > { %3511 = vst.msk [vmem:[%s6235_s14 + $0x50] sm:$0xff] %vm1563_vm14, %v3414_v30  ;;  %v3142_v54 = vmul.f32 %v3036_v41, %v5672_v34 }
 0x397   : > { %3099 = vrot.lane.b32.xlu1 %v4106_v13, %s4163_s18  ;;  %3085 = vrot.lane.b32.xlu0 %v4108_v27, %s4163_s18 }
 0x398   : > { %v3416_v51 = vpop.permute.xlu1 %3415  ;;  %v3410_v59 = vpop.permute.xlu0 %3409 }
 0x399   : > { %3512 = vst.msk [vmem:[%s6235_s14 + $0x58] sm:$0xff] %vm1563_vm14, %v3416_v51  ;;  %3509 = vst.msk [vmem:[%s6235_s14 + $0x40] sm:$0xff] %vm1563_vm14, %v3410_v59 }
 0x39b   : > { %3087 = vrot.lane.b32.xlu1 %v4110_v57, %s4163_s18  ;;  %3217 = vrot.lane.b32.xlu0 %v3143_v31, %s4165_s15 }
 0x39c   : > { %v3412_v22 = vpop.permute.xlu1 %3411  ;;  %v3046_v7 = vpop.permute.xlu0 %3045 }
 0x39d   : > { %3510 = vst.msk [vmem:[%s6235_s14 + $0x48] sm:$0xff] %vm1563_vm14, %v3412_v22  ;;  %v3147_v49 = vmul.f32 %v3046_v7, %v5686_v43 }
 0x39f   : > { %3219 = vrot.lane.b32.xlu1 %v3144_v58, %s4165_s15  ;;  %3213 = vrot.lane.b32.xlu0 %v3141_v19, %s4165_s15 }
 0x3a0   : > { %v3048_v10 = vpop.permute.xlu1 %3047  ;;  %v3042_v33 = vpop.permute.xlu0 %3041 }
 0x3a1   : > { %v3148_v21 = vmul.f32 %v3048_v10, %v5697_v18  ;;  %v3145_v14 = vmul.f32 %v3042_v33, %v5693_v40 }
 0x3a3   : > { %3215 = vrot.lane.b32.xlu1 %v3142_v54, %s4165_s15  ;;  %3225 = vrot.lane.b32.xlu0 %v3147_v49, %s4165_s15 }
 0x3a4   : > { %v3044_v38 = vpop.permute.xlu1 %3043  ;;  %v3418_v2 = vpop.permute.xlu0 %3417 }
 0x3a5   : > { %3513 = vst.msk [vmem:[%s6235_s14 + $0x60] sm:$0xff] %vm1563_vm14, %v3418_v2  ;;  %v3146_v43 = vmul.f32 %v3044_v38, %v5710_v36 }
 0x3a7   : > { %3227 = vrot.lane.b32.xlu1 %v3148_v21, %s4165_s15  ;;  %3221 = vrot.lane.b32.xlu0 %v3145_v14, %s4165_s15 }
 0x3a8   : > { %v3420_v34 = vpop.permute.xlu1 %3419  ;;  %v3422_v1 = vpop.permute.xlu0 %3421 }
 0x3a9   : > { %3514 = vst.msk [vmem:[%s6235_s14 + $0x68] sm:$0xff] %vm1563_vm14, %v3420_v34  ;;  %3515 = vst.msk [vmem:[%s6235_s14 + $0x70] sm:$0xff] %vm1563_vm14, %v3422_v1 }
 0x3ab   : > { %3223 = vrot.lane.b32.xlu1 %v3146_v43, %s4165_s15 }
 0x3ac   : > { %v3424_v18 = vpop.permute.xlu1 %3423  ;;  %v3054_v56 = vpop.permute.xlu0 %3053 }
 0x3ad   : > { %3516 = vst.msk [vmem:[%s6235_s14 + $0x78] sm:$0xff] %vm1563_vm14, %v3424_v18  ;;  %v3151_v40 = vmul.f32 %v3054_v56, %v5724_v46 }
 0x3af   : > { %3233 = vrot.lane.b32.xlu0 %v3151_v40, %s4165_s15 }
 0x3b0   : > { %v3056_v8 = vpop.permute.xlu1 %3055  ;;  %v3050_v47 = vpop.permute.xlu0 %3049 }
 0x3b1   : > { %v3152_v36 = vmul.f32 %v3056_v8, %v5742_v11  ;;  %v3149_v20 = vmul.f32 %v3050_v47, %v5738_v12 }
 0x3b3   : > { %3235 = vrot.lane.b32.xlu1 %v3152_v36, %s4165_s15  ;;  %3229 = vrot.lane.b32.xlu0 %v3149_v20, %s4165_s15 }
 0x3b4   : > { %v3052_v25 = vpop.permute.xlu1 %3051  ;;  %v3426_v44 = vpop.permute.xlu0 %3425 }
 0x3b5   : > { %v3150_v52 = vmul.f32 %v3052_v25, %v5756_v35  ;;  %3517 = vst.msk [vmem:[%s6235_s14 + $0x80] sm:$0xff] %vm1563_vm14, %v3426_v44 }
 0x3b7   : > { %3231 = vrot.lane.b32.xlu1 %v3150_v52, %s4165_s15 }
 0x3b8   : > { %v3428_v46 = vpop.permute.xlu1 %3427  ;;  %v3058_v39 = vpop.permute.xlu0 %3057 }
 0x3b9   : > { %3518 = vst.msk [vmem:[%s6235_s14 + $0x88] sm:$0xff] %vm1563_vm14, %v3428_v46  ;;  %v3153_v12 = vmul.f32 %v3058_v39, %v5774_v42 }
 0x3bb   : > { %3237 = vrot.lane.b32.xlu0 %v3153_v12, %s4165_s15 }
 0x3bc   : > { %v3060_v11 = vpop.permute.xlu1 %3059  ;;  %v3062_v41 = vpop.permute.xlu0 %3061 }
 0x3bd   : > { %v3154_v30 = vmul.f32 %v3060_v11, %v5785_v17  ;;  %v3155_v35 = vmul.f32 %v3062_v41, %v5789_v3 }
 0x3bf   : > { %3239 = vrot.lane.b32.xlu1 %v3154_v30, %s4165_s15  ;;  %3241 = vrot.lane.b32.xlu0 %v3155_v35, %s4165_s15 }
 0x3c0   : > { %v3064_v13 = vpop.permute.xlu1 %3063  ;;  %v3430_v27 = vpop.permute.xlu0 %3429 }
 0x3c1   : > { %v3156_v51 = vmul.f32 %v3064_v13, %v5802_v55  ;;  %3519 = vst.msk [vmem:[%s6235_s14 + $0x90] sm:$0xff] %vm1563_vm14, %v3430_v27 }
 0x3c3   : > { %3243 = vrot.lane.b32.xlu1 %v3156_v51, %s4165_s15 }
 0x3c4   : > { %v3432_v42 = vpop.permute.xlu1 %3431  ;;  %v3066_v59 = vpop.permute.xlu0 %3065 }
 0x3c5   : > { %3520 = vst.msk [vmem:[%s6235_s14 + $0x98] sm:$0xff] %vm1563_vm14, %v3432_v42  ;;  %v3157_v17 = vmul.f32 %v3066_v59, %v5814_v48 }
 0x3c7   : > { %3245 = vrot.lane.b32.xlu0 %v3157_v17, %s4165_s15 }
 0x3c8   : > { %v3068_v3 = vpop.permute.xlu1 %3067  ;;  %v3434_v31 = vpop.permute.xlu0 %3433 }
 0x3c9   : > { %v3158_v57 = vmul.f32 %v3068_v3, %v5824_v62  ;;  %3521 = vst.msk [vmem:[%s6235_s14 + $0xa0] sm:$0xff] %vm1563_vm14, %v3434_v31 }
 0x3cb   : > { %3247 = vrot.lane.b32.xlu1 %v3158_v57, %s4165_s15 }
 0x3cc   : > { %v3436_v55 = vpop.permute.xlu1 %3435  ;;  %v3070_v22 = vpop.permute.xlu0 %3069 }
 0x3cd   : > { %3522 = vst.msk [vmem:[%s6235_s14 + $0xa8] sm:$0xff] %vm1563_vm14, %v3436_v55  ;;  %v3159_v48 = vmul.f32 %v3070_v22, %v5828_v32 }
 0x3cf   : > { %3249 = vrot.lane.b32.xlu0 %v3159_v48, %s4165_s15 }
 0x3d0   : > { %v3072_v7 = vpop.permute.xlu1 %3071 }
 0x3d1   : > { %v3160_v58 = vmul.f32 %v3072_v7, %v5841_v6 }
 0x3d3   : > { %3251 = vrot.lane.b32.xlu1 %v3160_v58, %s4165_s15 }
 0x3d5   : > { %v3454_v62 = vpop.permute.xlu0 %3453 }
 0x3d6   : > { %3531 = vst.msk [vmem:[%s6235_s14 + $0xf0] sm:$0xff] %vm1563_vm14, %v3454_v62 }
 0x3d9   : > { %v3456_v19 = vpop.permute.xlu1 %3455  ;;  %v3438_v10 = vpop.permute.xlu0 %3437 }
 0x3da   : > { %3532 = vst.msk [vmem:[%s6235_s14 + $0xf8] sm:$0xff] %vm1563_vm14, %v3456_v19  ;;  %3523 = vst.msk [vmem:[%s6235_s14 + $0xb0] sm:$0xff] %vm1563_vm14, %v3438_v10 }
 0x3dd   : > { %v3440_v33 = vpop.permute.xlu1 %3439  ;;  %v3450_v32 = vpop.permute.xlu0 %3449 }
 0x3de   : > { %3524 = vst.msk [vmem:[%s6235_s14 + $0xb8] sm:$0xff] %vm1563_vm14, %v3440_v33  ;;  %3529 = vst.msk [vmem:[%s6235_s14 + $0xe0] sm:$0xff] %vm1563_vm14, %v3450_v32 }
 0x3e1   : > { %v3452_v6 = vpop.permute.xlu1 %3451  ;;  %v3074_v54 = vpop.permute.xlu0 %3073 }
 0x3e2   : > { %3530 = vst.msk [vmem:[%s6235_s14 + $0xe8] sm:$0xff] %vm1563_vm14, %v3452_v6  ;;  %v3161_v49 = vmul.f32 %v3074_v54, %v5858_v63 }
 0x3e4   : > { %3253 = vrot.lane.b32.xlu0 %v3161_v49, %s4165_s15 }
 0x3e5   : > { %v3076_v38 = vpop.permute.xlu1 %3075  ;;  %v3442_v2 = vpop.permute.xlu0 %3441 }
 0x3e6   : > { %v3162_v21 = vmul.f32 %v3076_v38, %v5875_v9  ;;  %3525 = vst.msk [vmem:[%s6235_s14 + $0xc0] sm:$0xff] %vm1563_vm14, %v3442_v2 }
 0x3e8   : > { %3255 = vrot.lane.b32.xlu1 %v3162_v21, %s4165_s15 }
 0x3e9   : > { %v3444_v14 = vpop.permute.xlu1 %3443  ;;  %v3458_v34 = vpop.permute.xlu0 %3457 }
 0x3ea   : > { %3526 = vst.msk [vmem:[%s6235_s14 + $0xc8] sm:$0xff] %vm1563_vm14, %v3444_v14  ;;  %3533 = vst.msk [vmem:[%s6235_s14 + $0x100] sm:$0xff] %vm1563_vm14, %v3458_v34 }
 0x3ed   : > { %v3460_v1 = vpop.permute.xlu1 %3459  ;;  %v3094_v43 = vpop.permute.xlu0 %3093 }
 0x3ee   : > { %3534 = vst.msk [vmem:[%s6235_s14 + $0x108] sm:$0xff] %vm1563_vm14, %v3460_v1  ;;  %v3171_v63 = vmul.f32 %v3094_v43, %v5938_v15 }
 0x3f0   : > { %3273 = vrot.lane.b32.xlu0 %v3171_v63, %s4165_s15 }
 0x3f1   : > { %v3096_v9 = vpop.permute.xlu1 %3095  ;;  %v3078_v18 = vpop.permute.xlu0 %3077 }
 0x3f2   : > { %v3172_v56 = vmul.f32 %v3096_v9, %v5954_v50  ;;  %v3163_v40 = vmul.f32 %v3078_v18, %v5948_v53 }
 0x3f4   : > { %3275 = vrot.lane.b32.xlu1 %v3172_v56, %s4165_s15  ;;  %3257 = vrot.lane.b32.xlu0 %v3163_v40, %s4165_s15 }
 0x3f5   : > { %v3080_v8 = vpop.permute.xlu1 %3079  ;;  %v3090_v47 = vpop.permute.xlu0 %3089 }
 0x3f6   : > { %v3164_v36 = vmul.f32 %v3080_v8, %v5962_v37  ;;  %v3169_v15 = vmul.f32 %v3090_v47, %v5966_v23 }
 0x3f8   : > { %3259 = vrot.lane.b32.xlu1 %v3164_v36, %s4165_s15  ;;  %3269 = vrot.lane.b32.xlu0 %v3169_v15, %s4165_s15 }
 0x3f9   : > { %v3092_v20 = vpop.permute.xlu1 %3091  ;;  %v3446_v25 = vpop.permute.xlu0 %3445 }
 0x3fa   : > { %v3170_v50 = vmul.f32 %v3092_v20, %v5978_v28  ;;  %3527 = vst.msk [vmem:[%s6235_s14 + $0xd0] sm:$0xff] %vm1563_vm14, %v3446_v25 }
 0x3fc   : > { %3271 = vrot.lane.b32.xlu1 %v3170_v50, %s4165_s15 }
 0x3fd   : > { %v3448_v53 = vpop.permute.xlu1 %3447  ;;  %v3102_v44 = vpop.permute.xlu0 %3101 }
 0x3fe   : > { %3528 = vst.msk [vmem:[%s6235_s14 + $0xd8] sm:$0xff] %vm1563_vm14, %v3448_v53  ;;  %v3175_v37 = vmul.f32 %v3102_v44, %v5984_v4 }
 0x400   : > { %3281 = vrot.lane.b32.xlu0 %v3175_v37, %s4165_s15 }
 0x401   : > { %v3104_v23 = vpop.permute.xlu1 %3103  ;;  %v3082_v52 = vpop.permute.xlu0 %3081 }
 0x402   : > { %v3176_v46 = vmul.f32 %v3104_v23, %v5998_v0  ;;  %v3165_v39 = vmul.f32 %v3082_v52, %v5994_v16 }
 0x404   : > { %3283 = vrot.lane.b32.xlu1 %v3176_v46, %s4165_s15  ;;  %3261 = vrot.lane.b32.xlu0 %v3165_v39, %s4165_s15 }
 0x405   : > { %v3084_v28 = vpop.permute.xlu1 %3083  ;;  %v3098_v12 = vpop.permute.xlu0 %3097 }
 0x406   : > { %v3166_v11 = vmul.f32 %v3084_v28, %v6008_v61  ;;  %v3173_v41 = vmul.f32 %v3098_v12, %v6012_v45 }
 0x408   : > { %3263 = vrot.lane.b32.xlu1 %v3166_v11, %s4165_s15  ;;  %3277 = vrot.lane.b32.xlu0 %v3173_v41, %s4165_s15 }
 0x409   : > { %v3100_v4 = vpop.permute.xlu1 %3099  ;;  %v3086_v30 = vpop.permute.xlu0 %3085 }
 0x40a   : > { %v3174_v0 = vmul.f32 %v3100_v4, %v6024_v24  ;;  %v3167_v16 = vmul.f32 %v3086_v30, %v6020_v26 }
 0x40c   : > { %3279 = vrot.lane.b32.xlu1 %v3174_v0, %s4165_s15  ;;  %3265 = vrot.lane.b32.xlu0 %v3167_v16, %s4165_s15 }
 0x40d   : > { %v3088_v61 = vpop.permute.xlu1 %3087  ;;  %v3218_v45 = vpop.permute.xlu0 %3217 }
 0x40e   : > { %v3168_v24 = vmul.f32 %v3088_v61, %v6033_v60  ;;  %3323 = vst.msk [vmem:[%s6402_s20 + $0x10] sm:$0xff] %vm1563_vm14, %v3218_v45 }
 0x410   : > { %3267 = vrot.lane.b32.xlu1 %v3168_v24, %s4165_s15  ;;  %3461 = vrot.lane.b32.xlu0 %v6227_v29, %s4164_s16 }
 0x411   : > { %v3220_v26 = vpop.permute.xlu1 %3219  ;;  %v3214_v35 = vpop.permute.xlu0 %3213 }
 0x412   : > { %3324 = vst.msk [vmem:[%s6402_s20 + $0x18] sm:$0xff] %vm1563_vm14, %v3220_v26  ;;  %3321 = vst.msk [vmem:[%s6402_s20] sm:$0xff] %vm1563_vm14, %v3214_v35 }
 0x414   : > { %3463 = vrot.lane.b32.xlu1 %v6239_v5, %s4164_s16 }
 0x415   : > { %v3216_v60 = vpop.permute.xlu1 %3215  ;;  %v3226_v13 = vpop.permute.xlu0 %3225 }
 0x416   : > { %3322 = vst.msk [vmem:[%s6402_s20 + $0x8] sm:$0xff] %vm1563_vm14, %v3216_v60  ;;  %3327 = vst.msk [vmem:[%s6402_s20 + $0x30] sm:$0xff] %vm1563_vm14, %v3226_v13 }
 0x419   : > { %v3228_v29 = vpop.permute.xlu1 %3227  ;;  %v3222_v27 = vpop.permute.xlu0 %3221 }
 0x41a   : > { %3328 = vst.msk [vmem:[%s6402_s20 + $0x38] sm:$0xff] %vm1563_vm14, %v3228_v29  ;;  %3325 = vst.msk [vmem:[%s6402_s20 + $0x20] sm:$0xff] %vm1563_vm14, %v3222_v27 }
 0x41d   : > { %v3224_v51 = vpop.permute.xlu1 %3223 }
 0x41e   : > { %3326 = vst.msk [vmem:[%s6402_s20 + $0x28] sm:$0xff] %vm1563_vm14, %v3224_v51 }
 0x421   : > { %v3234_v5 = vpop.permute.xlu0 %3233 }
 0x422   : > { %3331 = vst.msk [vmem:[%s6402_s20 + $0x50] sm:$0xff] %vm1563_vm14, %v3234_v5 }
 0x425   : > { %v3236_v42 = vpop.permute.xlu1 %3235  ;;  %v3230_v59 = vpop.permute.xlu0 %3229 }
 0x426   : > { %3332 = vst.msk [vmem:[%s6402_s20 + $0x58] sm:$0xff] %vm1563_vm14, %v3236_v42  ;;  %3329 = vst.msk [vmem:[%s6402_s20 + $0x40] sm:$0xff] %vm1563_vm14, %v3230_v59 }
 0x429   : > { %v3232_v17 = vpop.permute.xlu1 %3231 }
 0x42a   : > { %3330 = vst.msk [vmem:[%s6402_s20 + $0x48] sm:$0xff] %vm1563_vm14, %v3232_v17 }
 0x42d   : > { %v3238_v3 = vpop.permute.xlu0 %3237 }
 0x42e   : > { %3333 = vst.msk [vmem:[%s6402_s20 + $0x60] sm:$0xff] %vm1563_vm14, %v3238_v3 }
 0x431   : > { %v3240_v31 = vpop.permute.xlu1 %3239  ;;  %v3242_v57 = vpop.permute.xlu0 %3241 }
 0x432   : > { %3334 = vst.msk [vmem:[%s6402_s20 + $0x68] sm:$0xff] %vm1563_vm14, %v3240_v31  ;;  %3335 = vst.msk [vmem:[%s6402_s20 + $0x70] sm:$0xff] %vm1563_vm14, %v3242_v57 }
 0x435   : > { %v3244_v55 = vpop.permute.xlu1 %3243 }
 0x436   : > { %3336 = vst.msk [vmem:[%s6402_s20 + $0x78] sm:$0xff] %vm1563_vm14, %v3244_v55 }
 0x439   : > { %v3246_v22 = vpop.permute.xlu0 %3245 }
 0x43a   : > { %3337 = vst.msk [vmem:[%s6402_s20 + $0x80] sm:$0xff] %vm1563_vm14, %v3246_v22 }
 0x43d   : > { %v3248_v48 = vpop.permute.xlu1 %3247 }
 0x43e   : > { %3338 = vst.msk [vmem:[%s6402_s20 + $0x88] sm:$0xff] %vm1563_vm14, %v3248_v48 }
 0x441   : > { %v3250_v7 = vpop.permute.xlu0 %3249 }
 0x442   : > { %3339 = vst.msk [vmem:[%s6402_s20 + $0x90] sm:$0xff] %vm1563_vm14, %v3250_v7 }
 0x445   : > { %v3252_v58 = vpop.permute.xlu1 %3251 }
 0x446   : > { %3340 = vst.msk [vmem:[%s6402_s20 + $0x98] sm:$0xff] %vm1563_vm14, %v3252_v58 }
 0x456   : > { %v3254_v62 = vpop.permute.xlu0 %3253 }
 0x457   : > { %3341 = vst.msk [vmem:[%s6402_s20 + $0xa0] sm:$0xff] %vm1563_vm14, %v3254_v62 }
 0x45a   : > { %v3256_v19 = vpop.permute.xlu1 %3255 }
 0x45b   : > { %3342 = vst.msk [vmem:[%s6402_s20 + $0xa8] sm:$0xff] %vm1563_vm14, %v3256_v19 }
 0x462   : > { %v3274_v10 = vpop.permute.xlu0 %3273 }
 0x463   : > { %3351 = vst.msk [vmem:[%s6402_s20 + $0xf0] sm:$0xff] %vm1563_vm14, %v3274_v10 }
 0x466   : > { %v3276_v33 = vpop.permute.xlu1 %3275  ;;  %v3258_v32 = vpop.permute.xlu0 %3257 }
 0x467   : > { %3352 = vst.msk [vmem:[%s6402_s20 + $0xf8] sm:$0xff] %vm1563_vm14, %v3276_v33  ;;  %3343 = vst.msk [vmem:[%s6402_s20 + $0xb0] sm:$0xff] %vm1563_vm14, %v3258_v32 }
 0x46a   : > { %v3260_v6 = vpop.permute.xlu1 %3259  ;;  %v3270_v54 = vpop.permute.xlu0 %3269 }
 0x46b   : > { %3344 = vst.msk [vmem:[%s6402_s20 + $0xb8] sm:$0xff] %vm1563_vm14, %v3260_v6  ;;  %3349 = vst.msk [vmem:[%s6402_s20 + $0xe0] sm:$0xff] %vm1563_vm14, %v3270_v54 }
 0x46e   : > { %v3272_v49 = vpop.permute.xlu1 %3271 }
 0x46f   : > { %3350 = vst.msk [vmem:[%s6402_s20 + $0xe8] sm:$0xff] %vm1563_vm14, %v3272_v49 }
 0x472   : > { %v3282_v38 = vpop.permute.xlu0 %3281 }
 0x473   : > { %3355 = vst.msk [vmem:[%s6402_s20 + $0x110] sm:$0xff] %vm1563_vm14, %v3282_v38 }
 0x476   : > { %v3284_v2 = vpop.permute.xlu1 %3283  ;;  %v3262_v21 = vpop.permute.xlu0 %3261 }
 0x477   : > { %3356 = vst.msk [vmem:[%s6402_s20 + $0x118] sm:$0xff] %vm1563_vm14, %v3284_v2  ;;  %3345 = vst.msk [vmem:[%s6402_s20 + $0xc0] sm:$0xff] %vm1563_vm14, %v3262_v21 }
 0x47a   : > { %v3264_v14 = vpop.permute.xlu1 %3263  ;;  %v3278_v34 = vpop.permute.xlu0 %3277 }
 0x47b   : > { %3346 = vst.msk [vmem:[%s6402_s20 + $0xc8] sm:$0xff] %vm1563_vm14, %v3264_v14  ;;  %3353 = vst.msk [vmem:[%s6402_s20 + $0x100] sm:$0xff] %vm1563_vm14, %v3278_v34 }
 0x47e   : > { %v3280_v1 = vpop.permute.xlu1 %3279  ;;  %v3266_v43 = vpop.permute.xlu0 %3265 }
 0x47f   : > { %3354 = vst.msk [vmem:[%s6402_s20 + $0x108] sm:$0xff] %vm1563_vm14, %v3280_v1  ;;  %3347 = vst.msk [vmem:[%s6402_s20 + $0xd0] sm:$0xff] %vm1563_vm14, %v3266_v43 }
 0x482   : > { %v3268_v63 = vpop.permute.xlu1 %3267  ;;  %v3462_v9 = vpop.permute.xlu0 %3461 }
 0x483   : > { %3348 = vst.msk [vmem:[%s6402_s20 + $0xd8] sm:$0xff] %vm1563_vm14, %v3268_v63  ;;  %3535 = vst.msk [vmem:[%s6235_s14 + $0x110] sm:$0xff] %vm1563_vm14, %v3462_v9 }
 0x486   : > { %v3464_v18 = vpop.permute.xlu1 %3463 }
 0x487   : > { %3536 = vst.msk [vmem:[%s6235_s14 + $0x118] sm:$0xff] %vm1563_vm14, %v3464_v18 }
 0x488 PF: > { %s17_s23 = sadd.s32 1, %s4153_s23   ;;  %s6626_s21 = smov %s4149_s22 }
 0x489   : > { %p14_p5 = scmp.ge.s32.totalorder %s17_s23, 4   ;;  %s6627_s22 = smov %s6629_s24 }
 0x48b   :  { %16 = sbr.rel (!%p14_p5) target bundleno = 2 (0x2), region = 88 }

</bundles_post_ra>
